<compile_context>
chip_gen: v5e
topology: v5e:2x2
jax: 0.10.0
libtpu: 0.0.40
codegen_flags: <defaults>
</compile_context>

<pallas_src>
import jax
import jax.numpy as jnp
from jax.experimental import pallas as pl
from jax.experimental.pallas import tpu as pltpu


def _se_pointwise_conv_kernel(gate_ref, x_ref, w_ref, o_ref):
    # gate_ref: (1, Cin) f32     x_ref: (Cin, M) f32
    # w_ref:    (Cout_blk, Cin) bf16   o_ref: (Cout_blk, M) f32
    g = jax.nn.sigmoid(gate_ref[...])                 # (1, Cin) f32, lane-dense EUP
    # Fold the SE gate into this weight block: (W * sigma(g)) @ x == W @ (sigma(g) * x).
    w = (w_ref[...] * g).astype(jnp.bfloat16)         # (Cout_blk, Cin), bf16 for MXU
    x = x_ref[...].astype(jnp.bfloat16)               # (Cin, M), bf16 for MXU
    o_ref[...] = jnp.dot(
        w, x, preferred_element_type=jnp.float32
    ).astype(o_ref.dtype)


def se_gate_pointwise_conv(x519, x523, weight_bf16, *, n_blocks=None):
    """Equivalent of: conv2d_1x1(sigmoid(x523) * x519), bias-free.

    x519:        (N, Cin, H, W)    float32
    x523:        (N, Cin, 1, 1)    float32
    weight_bf16: (Cout, Cin, 1, 1) bfloat16 (converted once at init time)
    returns      (N, Cout, H, W)   float32
    """
    N, Cin, H, W = x519.shape
    Cout = weight_bf16.shape[0]
    assert N == 1, "module is defined for batch=1"
    M = H * W

    # Free views (no transposes): NCHW with N==1 is already (Cin, M) row-major.
    x_mat = x519.reshape(Cin, M)              # (Cin, M)
    gate = x523.reshape(1, Cin)               # (1, Cin), lane-dense row
    w_mat = weight_bf16.reshape(Cout, Cin)    # (Cout, Cin)

    # Tile the Cout axis: 2 blocks -> megacore sharding on v7x and weight-DMA /
    # compute overlap everywhere; sweep n_blocks=1 on single-TC chips if desired.
    if n_blocks is None:
        n_blocks = 2 if (Cout % 16 == 0) else 1
    blk = Cout // n_blocks

    cost = pl.CostEstimate(
        flops=2 * M * Cin * Cout + Cout * Cin,
        transcendentals=Cin,
        bytes_accessed=4 * Cin * M + 4 * Cin + 2 * Cout * Cin + 4 * Cout * M,
    )

    out_mat = pl.pallas_call(
        _se_pointwise_conv_kernel,
        out_shape=jax.ShapeDtypeStruct((Cout, M), x519.dtype),
        grid=(n_blocks,),
        in_specs=[
            pl.BlockSpec((1, Cin), lambda j: (0, 0)),    # gate, resident
            pl.BlockSpec((Cin, M), lambda j: (0, 0)),    # x,    resident
            pl.BlockSpec((blk, Cin), lambda j: (j, 0)),  # weight, tiled over Cout
        ],
        out_specs=pl.BlockSpec((blk, M), lambda j: (j, 0)),
        compiler_params=pltpu.CompilerParams(
            dimension_semantics=("parallel",),
        ),
        cost_estimate=cost,
    )(gate, x_mat, w_mat)

    # (Cout, M) -> (1, Cout, H, W): pure reshape, no transpose.
    return out_mat.reshape(N, Cout, H, W)


if __name__ == "__main__":
    key = jax.random.PRNGKey(0)
    k1, k2, k3 = jax.random.split(key, 3)

    # Shapes implied by the module: Conv2d(1344 -> 224, 1x1), 14x14 spatial, batch 1.
    N, Cin, H, W, Cout = 1, 1344, 14, 14, 224

    x519 = jax.random.normal(k1, (N, Cin, H, W), dtype=jnp.float32)
    x523 = jax.random.normal(k2, (N, Cin, 1, 1), dtype=jnp.float32)
    # Deterministic synthetic weight for Conv2d(1344, 224, 1x1, bias=False).
    weight = (jax.random.normal(k3, (Cout, Cin, 1, 1), dtype=jnp.float32)
              * (1.0 / jnp.sqrt(Cin)))
    # One-time parameter conversion (init-time, not per-call): ship bf16 weight.
    weight_bf16 = weight.astype(jnp.bfloat16)

    out = se_gate_pointwise_conv(x519, x523, weight_bf16)
    out = jax.block_until_ready(out)
    assert out.shape == (N, Cout, H, W), out.shape

    # Reference in plain JAX (f32 sigmoid-gate + 1x1 conv as matmul, f32 weight).
    gated = jax.nn.sigmoid(x523) * x519
    ref = jnp.einsum("nchw,oc->nohw", gated, weight.reshape(Cout, Cin))
    # Loose tolerance: kernel uses bf16 MXU operands (bf16 weight + in-kernel bf16
    # x cast) with f32 accumulation.
    max_err = float(jnp.max(jnp.abs(out - ref)))
    assert jnp.allclose(out, ref, atol=5e-2, rtol=5e-2), max_err

    print("KERNEL_OK")
</pallas_src>

<mosaic_0001>
module attributes {stable_mosaic.version = 11 : i64} {
  func.func @_se_pointwise_conv_kernel(%arg0: i32, %arg1: memref<1x1344xf32, #tpu.memory_space<vmem>>, %arg2: memref<1344x196xf32, #tpu.memory_space<vmem>>, %arg3: memref<112x1344xbf16, #tpu.memory_space<vmem>>, %arg4: memref<112x196xf32, #tpu.memory_space<vmem>>) attributes {dimension_semantics = [#tpu.dimension_semantics<parallel>], iteration_bounds = array<i64: 2>, scalar_prefetch = 0 : i64, scratch_operands = 0 : i64, tpu.core_type = #tpu.core_type<tc>, window_params = [{pipeline_mode = #tpu.pipeline_mode<synchronous>, transform_indices = @transform_0, window_bounds = array<i64: 1, 1344>}, {pipeline_mode = #tpu.pipeline_mode<synchronous>, transform_indices = @transform_1, window_bounds = array<i64: 1344, 196>}, {transform_indices = @transform_2, window_bounds = array<i64: 112, 1344>}, {transform_indices = @transform_3, window_bounds = array<i64: 112, 196>}]} {
    %c0 = arith.constant 0 : index
    %c0_0 = arith.constant 0 : index
    %0 = vector.load %arg1[%c0, %c0_0] : memref<1x1344xf32, #tpu.memory_space<vmem>>, vector<1x1344xf32>
    %1 = arith.negf %0 : vector<1x1344xf32>
    %2 = math.exp %1 : vector<1x1344xf32>
    %cst = arith.constant 1.000000e+00 : f32
    %3 = vector.broadcast %cst : f32 to vector<1x1344xf32>
    %4 = arith.addf %3, %2 : vector<1x1344xf32>
    %5 = arith.divf %3, %4 : vector<1x1344xf32>
    %c0_1 = arith.constant 0 : index
    %c0_2 = arith.constant 0 : index
    %6 = vector.load %arg3[%c0_1, %c0_2] : memref<112x1344xbf16, #tpu.memory_space<vmem>>, vector<112x1344xbf16>
    %7 = arith.extf %6 : vector<112x1344xbf16> to vector<112x1344xf32>
    %8 = vector.broadcast %5 : vector<1x1344xf32> to vector<112x1344xf32>
    %9 = arith.mulf %7, %8 : vector<112x1344xf32>
    %10 = arith.truncf %9 : vector<112x1344xf32> to vector<112x1344xbf16>
    %c0_3 = arith.constant 0 : index
    %c0_4 = arith.constant 0 : index
    %11 = vector.load %arg2[%c0_3, %c0_4] : memref<1344x196xf32, #tpu.memory_space<vmem>>, vector<1344x196xf32>
    %12 = arith.truncf %11 : vector<1344x196xf32> to vector<1344x196xbf16>
    %cst_5 = arith.constant dense<0.000000e+00> : vector<112x196xf32>
    %13 = tpu.matmul %10, %12, %cst_5 {dimension_numbers = #tpu.dot_dimension_numbers<[1], [0], [0], [1], [0, 0, 1, 1], [], []>} : vector<112x1344xbf16>, vector<1344x196xbf16>, vector<112x196xf32> -> vector<112x196xf32>
    %c0_6 = arith.constant 0 : index
    %c0_7 = arith.constant 0 : index
    %14 = vector.load %arg4[%c0_6, %c0_7] : memref<112x196xf32, #tpu.memory_space<vmem>>, vector<112x196xf32>
    tpu.vector_store %arg4[%c0_6, %c0_7], %13 {strides = array<i32>} : memref<112x196xf32, #tpu.memory_space<vmem>>, vector<112x196xf32>,
    return
  }
  func.func @transform_0(%arg0: i32) -> (i32, i32) {
    %c0_i32 = arith.constant 0 : i32
    %c0_i32_0 = arith.constant 0 : i32
    %c0_i32_1 = arith.constant 0 : i32
    return %c0_i32, %c0_i32_0 : i32, i32
  }
  func.func @transform_1(%arg0: i32) -> (i32, i32) {
    %c0_i32 = arith.constant 0 : i32
    %c0_i32_0 = arith.constant 0 : i32
    %c0_i32_1 = arith.constant 0 : i32
    return %c0_i32, %c0_i32_0 : i32, i32
  }
  func.func @transform_2(%arg0: i32) -> (i32, i32) {
    %c0_i32 = arith.constant 0 : i32
    %c0_i32_0 = arith.constant 0 : i32
    return %arg0, %c0_i32 : i32, i32
  }
  func.func @transform_3(%arg0: i32) -> (i32, i32) {
    %c0_i32 = arith.constant 0 : i32
    %c0_i32_0 = arith.constant 0 : i32
    return %arg0, %c0_i32 : i32, i32
  }
}

</mosaic_0001>

<bundles_post_ra>
// kernel: tpu_custom_call.1
= control target key start
LH: loop header
LB: loop body
LE: loop exit
PB: predicated region body
PF: predicated region fallthrough
CT: control target
= control target key end

     0   :  { %s2382_s12 = smov 0   ;;  %s4322_s0 = inlined_call_operand.vmem [shape: f32[1,1344], index: 0, kind: input, shape index: {}]   ;;  %s4323_s1 = inlined_call_operand.vmem [shape: f32[1344,196], index: 1, kind: input, shape index: {}]   ;;  %s4324_s2 = inlined_call_operand.vmem [shape: bf16[224,1344], index: 2, kind: input, shape index: {}]   ;;  %s4325_s3 = inlined_call_operand.vmem [shape: f32[224,196], index: 3, kind: output, shape index: {}]  }
   0x1 LB: > { %s2294_s13 = sadd.s32 4294967295, %s2360_s12   ;;  %p2298_p0 = scmp.ge.s32.totalorder %s2360_s12, 1  ;;  %s2360_s12 = sphi %s2382_s12, %s13_s12  }
   0x2   : > { %p139_p1 = scmp.lt.s32.totalorder %s2360_s12, 3 }
   0x4   : > { %p140_p2 = pnand %p2298_p0, %p139_p1 }
   0x6   : > { %143 = sbr.rel (%p140_p2) target bundleno = 803 (0x323), region = 32 }
   0xb   : > { %v741_v0 = vld [vmem:[%s4323_s1 + $0xe0] sm:$0xff]  ;;  %v743_v1 = vld [vmem:[%s4323_s1 + $0xf0] sm:$0xff]  ;;  %s165_s4 = smul.u32 14, %s2294_s13  ;;  %vm1217_vm8 = vcmask 523264   ;;  %vm2208_vm9 = vcmask 556032  }
   0xc   : > { %v773_v2 = vld [vmem:[%s4323_s1 + $0x1e0] sm:$0xff]  ;;  %v1063_v3 = vpack.c.bf16 %v743_v1, %v741_v0  ;;  %v775_v4 = vld [vmem:[%s4323_s1 + $0x1f0] sm:$0xff] }
   0xd   : > { %v737_v5 = vld [vmem:[%s4323_s1 + $0xc0] sm:$0xff]  ;;  %v739_v6 = vld [vmem:[%s4323_s1 + $0xd0] sm:$0xff]  ;;  %v1079_v7 = vpack.c.bf16 %v775_v4, %v773_v2  ;;  %p166_p3 = scmp.lt.s32.totalorder %s165_s4, 27 }
   0xe   : > { %v769_v8 = vld [vmem:[%s4323_s1 + $0x1c0] sm:$0xff]  ;;  %v771_v9 = vld [vmem:[%s4323_s1 + $0x1d0] sm:$0xff]  ;;  %1239 = vmatpush.bf16.msra.mxu0 %v1063_v3  ;;  %2321 = vmatpush.bf16.msra.mxu2 %v1063_v3  ;;  %v1061_v10 = vpack.c.bf16 %v739_v6, %v737_v5 }
   0xf   : > { %1283 = vmatpush.bf16.msra.mxu1 %v1079_v7  ;;  %2329 = vmatpush.bf16.msra.mxu3 %v1079_v7  ;;  %v1077_v11 = vpack.c.bf16 %v771_v9, %v769_v8  ;;  %v733_v12 = vld [vmem:[%s4323_s1 + $0xa0] sm:$0xff]  ;;  %v735_v13 = vld [vmem:[%s4323_s1 + $0xb0] sm:$0xff]  ;;  %s4462_s4 = smov (!%p166_p3, %s165_s4), 27 }
  0x10   : > { %v765_v14 = vld [vmem:[%s4323_s1 + $0x1a0] sm:$0xff]  ;;  %v767_v15 = vld [vmem:[%s4323_s1 + $0x1b0] sm:$0xff]  ;;  %v1059_v16 = vpack.c.bf16 %v735_v13, %v733_v12  ;;  %s2337_s30 = smul.u32 44, %s4462_s4  ;;  %s2320_s16 = sshll.u32 %s4462_s4, 4 }
  0x11   : > { %v1075_v17 = vpack.c.bf16 %v767_v15, %v765_v14  ;;  %v729_v18 = vld [vmem:[%s4323_s1 + $0x80] sm:$0xff]  ;;  %v731_v19 = vld [vmem:[%s4323_s1 + $0x90] sm:$0xff] }
  0x12   : > { %1240 = vmatpush.bf16.msra.mxu0 %v1061_v10  ;;  %2322 = vmatpush.bf16.msra.mxu2 %v1061_v10  ;;  %v761_v20 = vld [vmem:[%s4323_s1 + $0x180] sm:$0xff]  ;;  %v763_v21 = vld [vmem:[%s4323_s1 + $0x190] sm:$0xff]  ;;  %v1057_v23 = vpack.c.bf16 %v731_v19, %v729_v18  ;;  %s2526_s24 = scalar_lea.vmem %s4324_s2, %s2337_s30  ;;  %s4028_s30 = scalar_lea.vmem %s4325_s3, %s2320_s16 }
  0x13   : > { %1284 = vmatpush.bf16.msra.mxu1 %v1077_v11  ;;  %2330 = vmatpush.bf16.msra.mxu3 %v1077_v11  ;;  %v180_v22 = vld [vmem:[%s4322_s0] sm:$0xff]  ;;  %v1073_v25 = vpack.c.bf16 %v763_v21, %v761_v20  ;;  %v727_v27 = vld [vmem:[%s4323_s1 + $0x70] sm:$0xff] }
  0x14   : > { %v2302_v24 = vmul.f32 -1.442695, %v180_v22  ;;  %v725_v26 = vld [vmem:[%s4323_s1 + $0x60] sm:$0xff]  ;;  %v759_v29 = vld [vmem:[%s4323_s1 + $0x170] sm:$0xff] }
  0x15   : > { %v757_v28 = vld [vmem:[%s4323_s1 + $0x160] sm:$0xff]  ;;  %v1055_v30 = vpack.c.bf16 %v727_v27, %v725_v26  ;;  %v723_v33 = vld [vmem:[%s4323_s1 + $0x50] sm:$0xff] }
  0x16   : > { %1241 = vmatpush.bf16.msra.mxu0 %v1059_v16  ;;  %2323 = vmatpush.bf16.msra.mxu2 %v1059_v16  ;;  %2346 = vpow2.f32 %v2302_v24  ;;  %v1071_v31 = vpack.c.bf16 %v759_v29, %v757_v28  ;;  %v721_v32 = vld [vmem:[%s4323_s1 + $0x40] sm:$0xff]  ;;  %v755_v35 = vld [vmem:[%s4323_s1 + $0x150] sm:$0xff] }
  0x17   : > { %1285 = vmatpush.bf16.msra.mxu1 %v1075_v17  ;;  %2331 = vmatpush.bf16.msra.mxu3 %v1075_v17  ;;  %v753_v34 = vld [vmem:[%s4323_s1 + $0x140] sm:$0xff]  ;;  %v1053_v37 = vpack.c.bf16 %v723_v33, %v721_v32  ;;  %v719_v40 = vld [vmem:[%s4323_s1 + $0x30] sm:$0xff] }
  0x18   : > { %v1069_v38 = vpack.c.bf16 %v755_v35, %v753_v34  ;;  %v717_v39 = vld [vmem:[%s4323_s1 + $0x20] sm:$0xff]  ;;  %v751_v43 = vld [vmem:[%s4323_s1 + $0x130] sm:$0xff] }
  0x19   : > { %v749_v42 = vld [vmem:[%s4323_s1 + $0x120] sm:$0xff]  ;;  %v1051_v44 = vpack.c.bf16 %v719_v40, %v717_v39  ;;  %v715_v47 = vld [vmem:[%s4323_s1 + $0x10] sm:$0xff] }
  0x1a   : > { %1242 = vmatpush.bf16.msra.mxu0 %v1057_v23  ;;  %2324 = vmatpush.bf16.msra.mxu2 %v1057_v23  ;;  %v1067_v45 = vpack.c.bf16 %v751_v43, %v749_v42  ;;  %v713_v46 = vld [vmem:[%s4323_s1] sm:$0xff]  ;;  %v747_v49 = vld [vmem:[%s4323_s1 + $0x110] sm:$0xff] }
  0x1b   : > { %1286 = vmatpush.bf16.msra.mxu1 %v1073_v25  ;;  %2332 = vmatpush.bf16.msra.mxu3 %v1073_v25  ;;  %v745_v48 = vld [vmem:[%s4323_s1 + $0x100] sm:$0xff]  ;;  %v871_v51 = vld [vmem:[%s4323_s1 + $0x4f0] sm:$0xff]  ;;  %v1049_v55 = vpack.c.bf16 %v715_v47, %v713_v46 }
  0x1c   : > { %v2347_v36 = vpop.eup %2346  ;;  %v869_v50 = vld [vmem:[%s4323_s1 + $0x4e0] sm:$0xff]  ;;  %v903_v53 = vld [vmem:[%s4323_s1 + $0x5f0] sm:$0xff]  ;;  %v1065_v60 = vpack.c.bf16 %v747_v49, %v745_v48 }
  0x1d   : > { %v2473_v41 = vadd.f32 1.0, %v2347_v36  ;;  %v901_v52 = vld [vmem:[%s4323_s1 + $0x5e0] sm:$0xff]  ;;  %v807_v56 = vld [vmem:[%s4323_s1 + $0x2f0] sm:$0xff]  ;;  %v1127_v62 = vpack.c.bf16 %v871_v51, %v869_v50 }
  0x1e   : > { %1243 = vmatpush.bf16.msra.mxu0 %v1055_v30  ;;  %2325 = vmatpush.bf16.msra.mxu2 %v1055_v30  ;;  %v805_v54 = vld [vmem:[%s4323_s1 + $0x2e0] sm:$0xff]  ;;  %v839_v58 = vld [vmem:[%s4323_s1 + $0x3f0] sm:$0xff]  ;;  %v1143_v63 = vpack.c.bf16 %v903_v53, %v901_v52 }
  0x1f   : > { %1287 = vmatpush.bf16.msra.mxu1 %v1071_v31  ;;  %2333 = vmatpush.bf16.msra.mxu3 %v1071_v31  ;;  %2348 = vrcp.f32 %v2473_v41  ;;  %v837_v57 = vld [vmem:[%s4323_s1 + $0x3e0] sm:$0xff]  ;;  %v867_v1 = vld [vmem:[%s4323_s1 + $0x4d0] sm:$0xff]  ;;  %v201_v2 = vand.u32 2147483648, %v2473_v41  ;;  %v1095_v3 = vpack.c.bf16 %v807_v56, %v805_v54  ;;  %vm195_vm0 = vweird.f32 %v2473_v41 }
  0x20   : > { %v865_v0 = vld [vmem:[%s4323_s1 + $0x4c0] sm:$0xff]  ;;  %v1111_v4 = vpack.c.bf16 %v839_v58, %v837_v57  ;;  %v899_v6 = vld [vmem:[%s4323_s1 + $0x5d0] sm:$0xff]  ;;  %v199_v9 = vand.u32 2147483647, %v2473_v41 }
  0x21   : > { %v897_v5 = vld [vmem:[%s4323_s1 + $0x5c0] sm:$0xff]  ;;  %v803_v10 = vld [vmem:[%s4323_s1 + $0x2d0] sm:$0xff]  ;;  %v1125_v18 = vpack.c.bf16 %v867_v1, %v865_v0  ;;  %v202_v21 = vor.u32 1.1754944e-38, %v201_v2 }
  0x22   : > { %1244 = vmatpush.bf16.msra.mxu0 %v1053_v37  ;;  %2326 = vmatpush.bf16.msra.mxu2 %v1053_v37  ;;  %v801_v7 = vld [vmem:[%s4323_s1 + $0x2c0] sm:$0xff]  ;;  %v835_v12 = vld [vmem:[%s4323_s1 + $0x3d0] sm:$0xff]  ;;  %v1141_v19 = vpack.c.bf16 %v899_v6, %v897_v5  ;;  %vm2578_vm3 = vcmp.eq.f32.partialorder %v199_v9, 8.507059e+37 }
  0x23   : > { %1288 = vmatpush.bf16.msra.mxu1 %v1069_v38  ;;  %2334 = vmatpush.bf16.msra.mxu3 %v1069_v38  ;;  %v833_v11 = vld [vmem:[%s4323_s1 + $0x3c0] sm:$0xff]  ;;  %v226_v15 = vld [vmem:[%s2526_s24 + $0x2c] sm:$0xff]  ;;  %v1093_v22 = vpack.c.bf16 %v803_v10, %v801_v7 }
  0x24   : > { %v220_v13 = vld [vmem:[%s2526_s24] sm:$0xff]  ;;  %v274_v17 = vld [vmem:[%s2526_s24 + $0x18c] sm:$0xff]  ;;  %v1109_v23 = vpack.c.bf16 %v835_v12, %v833_v11  ;;  %v315_v31 = vunpack.c.l.bf16 %v226_v15  ;;  %v316_v38 = vunpack.c.h.bf16 %v226_v15 }
  0x25   : > { %v2521_v59 = vpop.eup %2348  ;;  %v268_v16 = vld [vmem:[%s2526_s24 + $0x160] sm:$0xff]  ;;  %v863_v25 = vld [vmem:[%s4323_s1 + $0x4b0] sm:$0xff]  ;;  %v304_v30 = vunpack.c.l.bf16 %v220_v13  ;;  %v305_v33 = vunpack.c.h.bf16 %v220_v13  ;;  %v403_v37 = vunpack.c.l.bf16 %v274_v17 }
  0x26   : > { %1245 = vmatpush.bf16.msra.mxu0 %v1051_v44  ;;  %2327 = vmatpush.bf16.msra.mxu2 %v1051_v44  ;;  %v191_v61 = vmul.f32 %v2521_v59, %v2473_v41  ;;  %vm196_vm1 = vweird.f32 %v2521_v59  ;;  %v861_v24 = vld [vmem:[%s4323_s1 + $0x4a0] sm:$0xff]  ;;  %v799_v29 = vld [vmem:[%s4323_s1 + $0x2b0] sm:$0xff]  ;;  %v392_v32 = vunpack.c.l.bf16 %v268_v16  ;;  %v393_v43 = vunpack.c.h.bf16 %v268_v16 }
  0x27   : > { %1289 = vmatpush.bf16.msra.mxu1 %v1067_v45  ;;  %2335 = vmatpush.bf16.msra.mxu3 %v1067_v45  ;;  %vm2567_vm2 = vmor %vm195_vm0, %vm196_vm1  ;;  %v797_v28 = vld [vmem:[%s4323_s1 + $0x2a0] sm:$0xff]  ;;  %v895_v35 = vld [vmem:[%s4323_s1 + $0x5b0] sm:$0xff]  ;;  %v1123_v39 = vpack.c.bf16 %v863_v25, %v861_v24  ;;  %v404_v44 = vunpack.c.h.bf16 %v274_v17 }
  0x28   : > { %v192_v8 = vsub.f32 1.0, %v191_v61  ;;  %v893_v34 = vld [vmem:[%s4323_s1 + $0x5a0] sm:$0xff]  ;;  %v831_v41 = vld [vmem:[%s4323_s1 + $0x3b0] sm:$0xff]  ;;  %v1091_v45 = vpack.c.bf16 %v799_v29, %v797_v28 }
  0x29   : > { %v829_v40 = vld [vmem:[%s4323_s1 + $0x3a0] sm:$0xff]  ;;  %v1139_v48 = vpack.c.bf16 %v895_v35, %v893_v34  ;;  %v795_v50 = vld [vmem:[%s4323_s1 + $0x290] sm:$0xff] }
  0x2a   : > { %1246 = vmatpush.bf16.msra.mxu0 %v1049_v55  ;;  %2328 = vmatpush.bf16.msra.mxu2 %v1049_v55  ;;  %v193_v14 = vmul.f32 %v2521_v59, %v192_v8  ;;  %v793_v49 = vld [vmem:[%s4323_s1 + $0x280] sm:$0xff]  ;;  %v1107_v51 = vpack.c.bf16 %v831_v41, %v829_v40  ;;  %v859_v53 = vld [vmem:[%s4323_s1 + $0x490] sm:$0xff]  ;;  %v232_v8 = vld [vmem:[%s2526_s24 + $0x58] sm:$0xff] }
  0x2b   : > { %1290 = vmatpush.bf16.msra.mxu1 %v1065_v60  ;;  %2336 = vmatpush.bf16.msra.mxu3 %v1065_v60  ;;  %v857_v52 = vld [vmem:[%s4323_s1 + $0x480] sm:$0xff]  ;;  %v891_v61 = vld [vmem:[%s4323_s1 + $0x590] sm:$0xff] }
  0x2c   : > { %v194_v26 = vadd.f32 %v2521_v59, %v193_v14  ;;  %v825_v54 = vld [vmem:[%s4323_s1 + $0x380] sm:$0xff]  ;;  %v1121_v5 = vpack.c.bf16 %v859_v53, %v857_v52  ;;  %v791_v12 = vld [vmem:[%s4323_s1 + $0x270] sm:$0xff]  ;;  %v280_v14 = vld [vmem:[%s2526_s24 + $0x1b8] sm:$0xff] }
  0x2d   : > { %v889_v60 = vld [vmem:[%s4323_s1 + $0x580] sm:$0xff]  ;;  %v823_v17 = vld [vmem:[%s4323_s1 + $0x370] sm:$0xff]  ;;  %v414_v28 = vunpack.c.l.bf16 %v280_v14  ;;  %v415_v35 = vunpack.c.h.bf16 %v280_v14 }
  0x2e   : > { %1415 = vmatpush.bf16.msrb.mxu0 %v1127_v62  ;;  %1327 = vmatpush.bf16.msrb.mxu2 %v1095_v3  ;;  %v198_v36 = vsel %vm2567_vm2, %v2521_v59, %v194_v26  ;;  %v827_v59 = vld [vmem:[%s4323_s1 + $0x390] sm:$0xff]  ;;  %v1137_v10 = vpack.c.bf16 %v891_v61, %v889_v60  ;;  %v789_v11 = vld [vmem:[%s4323_s1 + $0x260] sm:$0xff] }
  0x2f   : > { %1459 = vmatpush.bf16.msrb.mxu1 %v1143_v63  ;;  %1371 = vmatpush.bf16.msrb.mxu3 %v1111_v4  ;;  %v2605_v42 = vsel %vm2578_vm3, %v202_v21, %v198_v36  ;;  %v1089_v4 = vpack.c.bf16 %v795_v50, %v793_v49  ;;  %v1105_v9 = vpack.c.bf16 %v827_v59, %v825_v54  ;;  %v238_v13 = vld [vmem:[%s2526_s24 + $0x84] sm:$0xff]  ;;  %v855_v20 = vld [vmem:[%s4323_s1 + $0x470] sm:$0xff]  ;;  %v250_v14 = vld [vmem:[%s2526_s24 + $0xdc] sm:$0xff] }
  0x30   : > { %v2608_v46 = vperm.slane %v2605_v42, 0  ;;  %v2611_v47 = vperm.slane %v2605_v42, 1  ;;  %v286_v15 = vld [vmem:[%s2526_s24 + $0x1e4] sm:$0xff]  ;;  %v337_v24 = vunpack.c.l.bf16 %v238_v13  ;;  %v787_v26 = vld [vmem:[%s4323_s1 + $0x250] sm:$0xff] }
  0x31   : > { %v821_v16 = vld [vmem:[%s4323_s1 + $0x360] sm:$0xff]  ;;  %v425_v29 = vunpack.c.l.bf16 %v286_v15  ;;  %v851_v34 = vld [vmem:[%s4323_s1 + $0x450] sm:$0xff]  ;;  %v426_v36 = vunpack.c.h.bf16 %v286_v15 }
  0x32   : > { %1416 = vmatpush.bf16.msrb.mxu0 %v1125_v18  ;;  %1328 = vmatpush.bf16.msrb.mxu2 %v1093_v22  ;;  %v482_v55 = vmul.f32 %v2608_v46, %v304_v30  ;;  %v493_v56 = vmul.f32 %v2608_v46, %v315_v31  ;;  %v570_v57 = vmul.f32 %v2608_v46, %v392_v32  ;;  %v853_v18 = vld [vmem:[%s4323_s1 + $0x460] sm:$0xff]  ;;  %v887_v22 = vld [vmem:[%s4323_s1 + $0x570] sm:$0xff]  ;;  %v327_v30 = vunpack.c.h.bf16 %v232_v8 }
  0x33   : > { %1460 = vmatpush.bf16.msrb.mxu1 %v1141_v19  ;;  %1372 = vmatpush.bf16.msrb.mxu3 %v1109_v23  ;;  %v581_v58 = vmul.f32 %v2608_v46, %v403_v37  ;;  %v483_v62 = vmul.f32 %v2611_v47, %v305_v33  ;;  %v494_v63 = vmul.f32 %v2611_v47, %v316_v38  ;;  %v885_v21 = vld [vmem:[%s4323_s1 + $0x560] sm:$0xff]  ;;  %v326_v23 = vunpack.c.l.bf16 %v232_v8  ;;  %v819_v32 = vld [vmem:[%s4323_s1 + $0x350] sm:$0xff] }
  0x34   : > { %v571_v0 = vmul.f32 %v2611_v47, %v393_v43  ;;  %v582_v1 = vmul.f32 %v2611_v47, %v404_v44  ;;  %v2645_v2 = vpack.c.bf16 %v493_v56, %v482_v55  ;;  %v1087_v19 = vpack.c.bf16 %v791_v12, %v789_v11  ;;  %v785_v25 = vld [vmem:[%s4323_s1 + $0x240] sm:$0xff]  ;;  %v883_v43 = vld [vmem:[%s4323_s1 + $0x550] sm:$0xff] }
  0x35   : > { %v2647_v3 = vpack.c.bf16 %v581_v58, %v570_v57  ;;  %v2649_v6 = vpack.c.bf16 %v494_v63, %v483_v62  ;;  %v817_v27 = vld [vmem:[%s4323_s1 + $0x340] sm:$0xff]  ;;  %v338_v31 = vunpack.c.h.bf16 %v238_v13  ;;  %v1103_v37 = vpack.c.bf16 %v823_v17, %v821_v16  ;;  %v783_v50 = vld [vmem:[%s4323_s1 + $0x230] sm:$0xff] }
  0x36   : > { %1417 = vmatpush.bf16.msrb.mxu0 %v1123_v39  ;;  %1329 = vmatpush.bf16.msrb.mxu2 %v1091_v45  ;;  %v2651_v7 = vpack.c.bf16 %v582_v1, %v571_v0  ;;  %v849_v33 = vld [vmem:[%s4323_s1 + $0x440] sm:$0xff]  ;;  %v1119_v38 = vpack.c.bf16 %v855_v20, %v853_v18  ;;  %v1135_v40 = vpack.c.bf16 %v887_v22, %v885_v21  ;;  %v815_v55 = vld [vmem:[%s4323_s1 + $0x330] sm:$0xff] }
  0x37   : > { %1461 = vmatpush.bf16.msrb.mxu1 %v1139_v48  ;;  %1373 = vmatpush.bf16.msrb.mxu3 %v1107_v51  ;;  %v881_v39 = vld [vmem:[%s4323_s1 + $0x540] sm:$0xff]  ;;  %v1085_v41 = vpack.c.bf16 %v787_v26, %v785_v25  ;;  %v504_v44 = vmul.f32 %v2608_v46, %v326_v23  ;;  %v1101_v45 = vpack.c.bf16 %v819_v32, %v817_v27  ;;  %v779_v0 = vld [vmem:[%s4323_s1 + $0x210] sm:$0xff]  ;;  %v359_v25 = vunpack.c.l.bf16 %v250_v14 }
  0x38   : > { %1247 = vmatmul.bf16.vlgmr.msra.gmra.mxu0 %v2645_v2  ;;  %1267 = vmatmul.bf16.vlgmr.msra.gmra.mxu2 %v2647_v3  ;;  %v1117_v48 = vpack.c.bf16 %v851_v34, %v849_v33  ;;  %v781_v49 = vld [vmem:[%s4323_s1 + $0x220] sm:$0xff]  ;;  %v515_v51 = vmul.f32 %v2608_v46, %v337_v24  ;;  %v592_v52 = vmul.f32 %v2608_v46, %v414_v28  ;;  %v811_v8 = vld [vmem:[%s4323_s1 + $0x310] sm:$0xff]  ;;  %v360_v34 = vunpack.c.h.bf16 %v250_v14 }
  0x39   : > { %1291 = vmatmul.bf16.vlgmr.msra.gmra.mxu1 %v2649_v6  ;;  %1311 = vmatmul.bf16.vlgmr.msra.gmra.mxu3 %v2651_v7  ;;  %v603_v53 = vmul.f32 %v2608_v46, %v425_v29  ;;  %v813_v54 = vld [vmem:[%s4323_s1 + $0x320] sm:$0xff]  ;;  %v1133_v56 = vpack.c.bf16 %v883_v43, %v881_v39  ;;  %v505_v57 = vmul.f32 %v2611_v47, %v327_v30  ;;  %v244_v12 = vld [vmem:[%s2526_s24 + $0xb0] sm:$0xff] }
  0x3a   : > { %1330 = vmatpush.bf16.msrb.mxu2 %v1089_v4  ;;  %1418 = vmatpush.bf16.msrb.mxu0 %v1121_v5  ;;  %v516_v58 = vmul.f32 %v2611_v47, %v338_v31  ;;  %v593_v59 = vmul.f32 %v2611_v47, %v415_v35  ;;  %v604_v60 = vmul.f32 %v2611_v47, %v426_v36  ;;  %v777_v63 = vld [vmem:[%s4323_s1 + $0x200] sm:$0xff]  ;;  %v292_v15 = vld [vmem:[%s2526_s24 + $0x210] sm:$0xff]  ;;  %v348_v20 = vunpack.c.l.bf16 %v244_v12 }
  0x3b   : > { %1374 = vmatpush.bf16.msrb.mxu3 %v1105_v9  ;;  %1462 = vmatpush.bf16.msrb.mxu1 %v1137_v10  ;;  %v1083_v61 = vpack.c.bf16 %v783_v50, %v781_v49  ;;  %v1099_v62 = vpack.c.bf16 %v815_v55, %v813_v54  ;;  %v2735_v1 = vpack.c.bf16 %v515_v51, %v504_v44  ;;  %v809_v5 = vld [vmem:[%s4323_s1 + $0x300] sm:$0xff]  ;;  %v847_v18 = vld [vmem:[%s4323_s1 + $0x430] sm:$0xff]  ;;  %v436_v26 = vunpack.c.l.bf16 %v292_v15 }
  0x3c   : > { %v2737_v4 = vpack.c.bf16 %v603_v53, %v592_v52  ;;  %v2745_v9 = vpack.c.bf16 %v516_v58, %v505_v57  ;;  %v2747_v10 = vpack.c.bf16 %v604_v60, %v593_v59  ;;  %v1081_v11 = vpack.c.bf16 %v779_v0, %v777_v63  ;;  %v298_v16 = vld [vmem:[%s2526_s24 + $0x23c] sm:$0xff]  ;;  %v879_v22 = vld [vmem:[%s4323_s1 + $0x530] sm:$0xff]  ;;  %v256_v58 = vld [vmem:[%s2526_s24 + $0x108] sm:$0xff] }
  0x3d   : > { %v1097_v13 = vpack.c.bf16 %v811_v8, %v809_v5  ;;  %v845_v17 = vld [vmem:[%s4323_s1 + $0x420] sm:$0xff]  ;;  %v935_v24 = vld [vmem:[%s4323_s1 + $0x6f0] sm:$0xff]  ;;  %v447_v32 = vunpack.c.l.bf16 %v298_v16  ;;  %v349_v33 = vunpack.c.h.bf16 %v244_v12  ;;  %v437_v39 = vunpack.c.h.bf16 %v292_v15  ;;  %v221_v60 = vld [vmem:[%s2526_s24 + $0x8] sm:$0xff] }
  0x3e   : > { %1331 = vmatpush.bf16.msrb.mxu2 %v1087_v19  ;;  %1419 = vmatpush.bf16.msrb.mxu0 %v1119_v38  ;;  %v877_v19 = vld [vmem:[%s4323_s1 + $0x520] sm:$0xff]  ;;  %v1115_v21 = vpack.c.bf16 %v847_v18, %v845_v17  ;;  %v843_v30 = vld [vmem:[%s4323_s1 + $0x410] sm:$0xff]  ;;  %v526_v44 = vmul.f32 %v2608_v46, %v348_v20  ;;  %v538_v51 = vmul.f32 %v2611_v47, %v360_v34  ;;  %v370_v5 = vunpack.c.l.bf16 %v256_v58 }
  0x3f   : > { %1375 = vmatpush.bf16.msrb.mxu3 %v1103_v37  ;;  %1463 = vmatpush.bf16.msrb.mxu1 %v1135_v40  ;;  %v933_v23 = vld [vmem:[%s4323_s1 + $0x6e0] sm:$0xff]  ;;  %v1131_v27 = vpack.c.bf16 %v879_v22, %v877_v19  ;;  %v967_v36 = vld [vmem:[%s4323_s1 + $0x7f0] sm:$0xff]  ;;  %v448_v40 = vunpack.c.h.bf16 %v298_v16  ;;  %v625_v49 = vmul.f32 %v2608_v46, %v447_v32  ;;  %v527_v50 = vmul.f32 %v2611_v47, %v349_v33 }
  0x40   : > { %v1159_v28 = vpack.c.bf16 %v935_v24, %v933_v23  ;;  %v841_v29 = vld [vmem:[%s4323_s1 + $0x400] sm:$0xff]  ;;  %v875_v38 = vld [vmem:[%s4323_s1 + $0x510] sm:$0xff]  ;;  %v615_v52 = vmul.f32 %v2611_v47, %v437_v39  ;;  %v371_v15 = vunpack.c.h.bf16 %v256_v58  ;;  %v306_v22 = vunpack.c.l.bf16 %v221_v60 }
  0x41   : > { %v965_v31 = vld [vmem:[%s4323_s1 + $0x7e0] sm:$0xff]  ;;  %v1113_v35 = vpack.c.bf16 %v843_v30, %v841_v29  ;;  %v626_v53 = vmul.f32 %v2611_v47, %v448_v40  ;;  %v262_v59 = vld [vmem:[%s2526_s24 + $0x134] sm:$0xff]  ;;  %v2845_v24 = vperm.slane %v2605_v42, 2  ;;  %v2851_v29 = vperm.slane %v2605_v42, 3 }
  0x42   : > { %1332 = vmatpush.bf16.msrb.mxu2 %v1085_v41  ;;  %1420 = vmatpush.bf16.msrb.mxu0 %v1117_v48  ;;  %v873_v37 = vld [vmem:[%s4323_s1 + $0x500] sm:$0xff]  ;;  %v1175_v41 = vpack.c.bf16 %v967_v36, %v965_v31  ;;  %v614_v48 = vmul.f32 %v2608_v46, %v436_v26  ;;  %v999_v63 = vld [vmem:[%s4323_s1 + $0x8f0] sm:$0xff]  ;;  %v381_v8 = vunpack.c.l.bf16 %v262_v59  ;;  %v382_v16 = vunpack.c.h.bf16 %v262_v59 }
  0x43   : > { %1376 = vmatpush.bf16.msrb.mxu3 %v1101_v45  ;;  %1464 = vmatpush.bf16.msrb.mxu1 %v1133_v56  ;;  %v1129_v43 = vpack.c.bf16 %v875_v38, %v873_v37  ;;  %v537_v45 = vmul.f32 %v2608_v46, %v359_v25  ;;  %v2805_v56 = vpack.c.bf16 %v538_v51, %v527_v50  ;;  %v1029_v0 = vld [vmem:[%s4323_s1 + $0x9e0] sm:$0xff]  ;;  %v1031_v12 = vld [vmem:[%s4323_s1 + $0x9f0] sm:$0xff] }
  0x44   : > { %v2803_v55 = vpack.c.bf16 %v625_v49, %v614_v48  ;;  %v2807_v57 = vpack.c.bf16 %v626_v53, %v615_v52  ;;  %v931_v14 = vld [vmem:[%s4323_s1 + $0x6d0] sm:$0xff]  ;;  %v1207_v17 = vpack.c.bf16 %v1031_v12, %v1029_v0  ;;  %v961_v19 = vld [vmem:[%s4323_s1 + $0x7c0] sm:$0xff]  ;;  %v548_v31 = vmul.f32 %v2608_v46, %v370_v5 }
  0x45   : > { %v2801_v54 = vpack.c.bf16 %v537_v45, %v526_v44  ;;  %v963_v20 = vld [vmem:[%s4323_s1 + $0x7d0] sm:$0xff]  ;;  %v559_v32 = vmul.f32 %v2608_v46, %v381_v8  ;;  %v484_v33 = vmul.f32 %v2845_v24, %v306_v22  ;;  %v560_v36 = vmul.f32 %v2611_v47, %v382_v16  ;;  %v1025_v48 = vld [vmem:[%s4323_s1 + $0x9c0] sm:$0xff] }
  0x46   : > { %1333 = vmatpush.bf16.msrb.mxu2 %v1083_v61  ;;  %1421 = vmatpush.bf16.msrb.mxu0 %v1115_v21  ;;  %v227_v61 = vld [vmem:[%s2526_s24 + $0x34] sm:$0xff]  ;;  %v993_v21 = vld [vmem:[%s4323_s1 + $0x8c0] sm:$0xff]  ;;  %v1173_v25 = vpack.c.bf16 %v963_v20, %v961_v19  ;;  %v239_v44 = vld [vmem:[%s2526_s24 + $0x8c] sm:$0xff]  ;;  %v2911_v19 = vperm.slane %v2605_v42, 5 }
  0x47   : > { %1377 = vmatpush.bf16.msrb.mxu3 %v1099_v62  ;;  %1465 = vmatpush.bf16.msrb.mxu1 %v1131_v27  ;;  %v997_v62 = vld [vmem:[%s4323_s1 + $0x8e0] sm:$0xff]  ;;  %v317_v23 = vunpack.c.l.bf16 %v227_v61  ;;  %v995_v26 = vld [vmem:[%s4323_s1 + $0x8d0] sm:$0xff]  ;;  %v307_v27 = vunpack.c.h.bf16 %v221_v60  ;;  %v2861_v39 = vpack.c.bf16 %v559_v32, %v548_v31  ;;  %v339_v52 = vunpack.c.l.bf16 %v239_v44 }
  0x48   : > { %1252 = vmatmul.bf16.gmra.mxu0 %v2735_v1  ;;  %1272 = vmatmul.bf16.gmra.mxu2 %v2737_v4  ;;  %v1189_v30 = vpack.c.bf16 %v995_v26, %v993_v21  ;;  %v222_v45 = vld [vmem:[%s2526_s24 + $0x10] sm:$0xff]  ;;  %v925_v50 = vld [vmem:[%s4323_s1 + $0x6a0] sm:$0xff] }
  0x49   : > { %1296 = vmatmul.bf16.gmra.mxu1 %v2745_v9  ;;  %1316 = vmatmul.bf16.gmra.mxu3 %v2747_v10  ;;  %v495_v34 = vmul.f32 %v2845_v24, %v317_v23  ;;  %v485_v37 = vmul.f32 %v2851_v29, %v307_v27  ;;  %v1027_v49 = vld [vmem:[%s4323_s1 + $0x9d0] sm:$0xff]  ;;  %v957_v59 = vld [vmem:[%s4323_s1 + $0x7a0] sm:$0xff]  ;;  %v308_v12 = vunpack.c.l.bf16 %v222_v45  ;;  %v517_v22 = vmul.f32 %v2845_v24, %v339_v52 }
  0x4a   : > { %1334 = vmatpush.bf16.msrb.mxu2 %v1081_v11  ;;  %1422 = vmatpush.bf16.msrb.mxu0 %v1113_v35  ;;  %v1191_v11 = vpack.c.bf16 %v999_v63, %v997_v62  ;;  %v549_v35 = vmul.f32 %v2611_v47, %v371_v15  ;;  %v228_v47 = vld [vmem:[%s2526_s24 + $0x3c] sm:$0xff]  ;;  %v1205_v53 = vpack.c.bf16 %v1027_v49, %v1025_v48  ;;  %v927_v58 = vld [vmem:[%s4323_s1 + $0x6b0] sm:$0xff]  ;;  %v340_v62 = vunpack.c.h.bf16 %v239_v44 }
  0x4b   : > { %1378 = vmatpush.bf16.msrb.mxu3 %v1097_v13  ;;  %1466 = vmatpush.bf16.msrb.mxu1 %v1129_v43  ;;  %v929_v13 = vld [vmem:[%s4323_s1 + $0x6c0] sm:$0xff]  ;;  %v2863_v40 = vpack.c.bf16 %v495_v34, %v484_v33  ;;  %v959_v60 = vld [vmem:[%s4323_s1 + $0x7b0] sm:$0xff]  ;;  %v1155_v63 = vpack.c.bf16 %v927_v58, %v925_v50 }
  0x4c   : > { %v1157_v18 = vpack.c.bf16 %v931_v14, %v929_v13  ;;  %v2865_v46 = vpack.c.bf16 %v560_v36, %v549_v35  ;;  %v233_v43 = vld [vmem:[%s2526_s24 + $0x60] sm:$0xff]  ;;  %v1171_v0 = vpack.c.bf16 %v959_v60, %v957_v59  ;;  %v991_v8 = vld [vmem:[%s4323_s1 + $0x8b0] sm:$0xff]  ;;  %v319_v13 = vunpack.c.l.bf16 %v228_v47  ;;  %v245_v35 = vld [vmem:[%s2526_s24 + $0xb8] sm:$0xff] }
  0x4d   : > { %v328_v51 = vunpack.c.l.bf16 %v233_v43  ;;  %v989_v5 = vld [vmem:[%s4323_s1 + $0x8a0] sm:$0xff]  ;;  %v2905_v14 = vperm.slane %v2605_v42, 4  ;;  %v1023_v16 = vld [vmem:[%s4323_s1 + $0x9b0] sm:$0xff]  ;;  %v518_v27 = vmul.f32 %v2851_v29, %v340_v62  ;;  %v351_v62 = vunpack.c.h.bf16 %v245_v35 }
  0x4e   : > { %1503 = vmatpush.bf16.msra.mxu2 %v1159_v28  ;;  %1591 = vmatpush.bf16.msra.mxu0 %v1191_v11  ;;  %v318_v28 = vunpack.c.h.bf16 %v227_v61  ;;  %v329_v61 = vunpack.c.h.bf16 %v233_v43  ;;  %v1021_v11 = vld [vmem:[%s4323_s1 + $0x9a0] sm:$0xff]  ;;  %v1187_v15 = vpack.c.bf16 %v991_v8, %v989_v5  ;;  %v923_v44 = vld [vmem:[%s4323_s1 + $0x690] sm:$0xff] }
  0x4f   : > { %1547 = vmatpush.bf16.msra.mxu3 %v1175_v41  ;;  %1635 = vmatpush.bf16.msra.mxu1 %v1207_v17  ;;  %v309_v17 = vunpack.c.h.bf16 %v222_v45  ;;  %v1203_v20 = vpack.c.bf16 %v1023_v16, %v1021_v11  ;;  %v506_v21 = vmul.f32 %v2845_v24, %v328_v51  ;;  %v486_v23 = vmul.f32 %v2905_v14, %v308_v12  ;;  %v251_v36 = vld [vmem:[%s2526_s24 + $0xe4] sm:$0xff]  ;;  %v955_v48 = vld [vmem:[%s4323_s1 + $0x790] sm:$0xff] }
  0x50   : > { %v496_v38 = vmul.f32 %v2851_v29, %v318_v28  ;;  %v507_v26 = vmul.f32 %v2851_v29, %v329_v61  ;;  %v921_v43 = vld [vmem:[%s4323_s1 + $0x680] sm:$0xff]  ;;  %v987_v50 = vld [vmem:[%s4323_s1 + $0x890] sm:$0xff]  ;;  %v350_v51 = vunpack.c.l.bf16 %v245_v35  ;;  %v361_v52 = vunpack.c.l.bf16 %v251_v36 }
  0x51   : > { %v487_v28 = vmul.f32 %v2911_v19, %v309_v17  ;;  %v2921_v31 = vpack.c.bf16 %v517_v22, %v506_v21  ;;  %v953_v45 = vld [vmem:[%s4323_s1 + $0x780] sm:$0xff]  ;;  %v1019_v60 = vld [vmem:[%s4323_s1 + $0x990] sm:$0xff]  ;;  %v362_v11 = vunpack.c.h.bf16 %v251_v36  ;;  %v529_v21 = vmul.f32 %v2851_v29, %v351_v62 }
  0x52   : > { %1504 = vmatpush.bf16.msra.mxu2 %v1157_v18  ;;  %1592 = vmatpush.bf16.msra.mxu0 %v1189_v30  ;;  %v2867_v41 = vpack.c.bf16 %v496_v38, %v485_v37  ;;  %v320_v18 = vunpack.c.h.bf16 %v228_v47  ;;  %v2925_v33 = vpack.c.bf16 %v518_v27, %v507_v26  ;;  %v234_v37 = vld [vmem:[%s2526_s24 + $0x68] sm:$0xff]  ;;  %v240_v38 = vld [vmem:[%s2526_s24 + $0x94] sm:$0xff]  ;;  %v1153_v47 = vpack.c.bf16 %v923_v44, %v921_v43  ;;  %v985_v49 = vld [vmem:[%s4323_s1 + $0x880] sm:$0xff] }
  0x53   : > { %1548 = vmatpush.bf16.msra.mxu3 %v1173_v25  ;;  %1636 = vmatpush.bf16.msra.mxu1 %v1205_v53  ;;  %v497_v25 = vmul.f32 %v2905_v14, %v319_v13  ;;  %v1169_v53 = vpack.c.bf16 %v955_v48, %v953_v45  ;;  %v1185_v58 = vpack.c.bf16 %v987_v50, %v985_v49  ;;  %v1017_v59 = vld [vmem:[%s4323_s1 + $0x980] sm:$0xff]  ;;  %v919_v8 = vld [vmem:[%s4323_s1 + $0x670] sm:$0xff]  ;;  %v331_v12 = vunpack.c.h.bf16 %v234_v37 }
  0x54   : > { %v498_v30 = vmul.f32 %v2911_v19, %v320_v18  ;;  %4374 = vst [vmem:[#allocation3_spill] sm:$0xff] %v2925_v33  ;;  %v917_v61 = vld [vmem:[%s4323_s1 + $0x660] sm:$0xff]  ;;  %v1201_v5 = vpack.c.bf16 %v1019_v60, %v1017_v59  ;;  %v342_v13 = vunpack.c.h.bf16 %v240_v38  ;;  %v528_v16 = vmul.f32 %v2845_v24, %v350_v51  ;;  %v257_v35 = vld [vmem:[%s2526_s24 + $0x110] sm:$0xff] }
  0x55   : > { %v2923_v32 = vpack.c.bf16 %v497_v25, %v486_v23  ;;  %v539_v17 = vmul.f32 %v2845_v24, %v361_v52  ;;  %v540_v22 = vmul.f32 %v2851_v29, %v362_v11  ;;  %v509_v23 = vmul.f32 %v2911_v19, %v331_v12  ;;  %v263_v36 = vld [vmem:[%s2526_s24 + $0x13c] sm:$0xff]  ;;  %v951_v44 = vld [vmem:[%s4323_s1 + $0x770] sm:$0xff] }
  0x56   : > { %1505 = vmatpush.bf16.msra.mxu2 %v1155_v63  ;;  %1593 = vmatpush.bf16.msra.mxu0 %v1187_v15  ;;  %v2927_v34 = vpack.c.bf16 %v498_v30, %v487_v28  ;;  %v330_v63 = vunpack.c.l.bf16 %v234_v37  ;;  %v1151_v15 = vpack.c.bf16 %v919_v8, %v917_v61  ;;  %v520_v25 = vmul.f32 %v2911_v19, %v342_v13  ;;  %v246_v37 = vld [vmem:[%s2526_s24 + $0xc0] sm:$0xff]  ;;  %v983_v48 = vld [vmem:[%s4323_s1 + $0x870] sm:$0xff] }
  0x57   : > { %1549 = vmatpush.bf16.msra.mxu3 %v1171_v0  ;;  %1637 = vmatpush.bf16.msra.mxu1 %v1203_v20  ;;  %4373 = vst [vmem:[#allocation2_spill] sm:$0xff] %v2923_v32  ;;  %v341_v0 = vunpack.c.l.bf16 %v240_v38  ;;  %v2975_v26 = vpack.c.bf16 %v539_v17, %v528_v16  ;;  %v2979_v28 = vpack.c.bf16 %v540_v22, %v529_v21  ;;  %v252_v38 = vld [vmem:[%s2526_s24 + $0xec] sm:$0xff]  ;;  %v949_v43 = vld [vmem:[%s4323_s1 + $0x760] sm:$0xff]  ;;  %v372_v51 = vunpack.c.l.bf16 %v257_v35 }
  0x58   : > { %1257 = vmatmul.bf16.gmra.mxu0 %v2801_v54  ;;  %1277 = vmatmul.bf16.gmra.mxu2 %v2803_v55  ;;  %4375 = vst [vmem:[#allocation4_spill] sm:$0xff] %v2927_v34  ;;  %v508_v18 = vmul.f32 %v2905_v14, %v330_v63  ;;  %v2981_v30 = vpack.c.bf16 %v520_v25, %v509_v23  ;;  %v981_v45 = vld [vmem:[%s4323_s1 + $0x860] sm:$0xff]  ;;  %v1015_v50 = vld [vmem:[%s4323_s1 + $0x970] sm:$0xff]  ;;  %v383_v60 = vunpack.c.l.bf16 %v263_v36  ;;  %v352_v61 = vunpack.c.l.bf16 %v246_v37 }
  0x59   : > { %1301 = vmatmul.bf16.gmra.mxu1 %v2805_v56  ;;  %1321 = vmatmul.bf16.gmra.mxu3 %v2807_v57  ;;  %v519_v20 = vmul.f32 %v2905_v14, %v341_v0  ;;  %4377 = vst [vmem:[#allocation6_spill] sm:$0xff] %v2979_v28  ;;  %v1013_v49 = vld [vmem:[%s4323_s1 + $0x960] sm:$0xff]  ;;  %v1183_v52 = vpack.c.bf16 %v983_v48, %v981_v45  ;;  %v915_v59 = vld [vmem:[%s4323_s1 + $0x650] sm:$0xff]  ;;  %v363_v62 = vunpack.c.l.bf16 %v252_v38  ;;  %v373_v0 = vunpack.c.h.bf16 %v257_v35  ;;  %v258_v45 = vld [vmem:[%s2526_s24 + $0x118] sm:$0xff] }
  0x5a   : > { %1506 = vmatpush.bf16.msra.mxu2 %v1153_v47  ;;  %1594 = vmatpush.bf16.msra.mxu0 %v1185_v58  ;;  %4378 = vst [vmem:[#allocation7_spill] sm:$0xff] %v2981_v30  ;;  %v1167_v47 = vpack.c.bf16 %v951_v44, %v949_v43  ;;  %v913_v58 = vld [vmem:[%s4323_s1 + $0x640] sm:$0xff]  ;;  %v353_v8 = vunpack.c.h.bf16 %v246_v37  ;;  %v364_v11 = vunpack.c.h.bf16 %v252_v38  ;;  %v550_v12 = vmul.f32 %v2845_v24, %v372_v51  ;;  %v947_v37 = vld [vmem:[%s4323_s1 + $0x750] sm:$0xff]  ;;  %v269_v38 = vld [vmem:[%s2526_s24 + $0x168] sm:$0xff] }
  0x5b   : > { %1550 = vmatpush.bf16.msra.mxu3 %v1169_v53  ;;  %1638 = vmatpush.bf16.msra.mxu1 %v1201_v5  ;;  %v2977_v27 = vpack.c.bf16 %v519_v20, %v508_v18  ;;  %v1199_v53 = vpack.c.bf16 %v1015_v50, %v1013_v49  ;;  %v1149_v63 = vpack.c.bf16 %v915_v59, %v913_v58  ;;  %v384_v5 = vunpack.c.h.bf16 %v263_v36  ;;  %v945_v36 = vld [vmem:[%s4323_s1 + $0x740] sm:$0xff]  ;;  %v275_v43 = vld [vmem:[%s2526_s24 + $0x194] sm:$0xff] }
  0x5c   : > { %v561_v13 = vmul.f32 %v2845_v24, %v383_v60  ;;  %v541_v16 = vmul.f32 %v2905_v14, %v363_v62  ;;  %v551_v17 = vmul.f32 %v2851_v29, %v373_v0  ;;  %v531_v20 = vmul.f32 %v2911_v19, %v353_v8  ;;  %v979_v0 = vld [vmem:[%s4323_s1 + $0x850] sm:$0xff] }
  0x5d   : > { %4376 = vst [vmem:[#allocation5_spill] sm:$0xff] %v2977_v27  ;;  %v562_v18 = vmul.f32 %v2851_v29, %v384_v5  ;;  %v542_v21 = vmul.f32 %v2911_v19, %v364_v11  ;;  %v1165_v44 = vpack.c.bf16 %v947_v37, %v945_v36  ;;  %v394_v48 = vunpack.c.l.bf16 %v269_v38  ;;  %v1009_v5 = vld [vmem:[%s4323_s1 + $0x940] sm:$0xff] }
  0x5e   : > { %1507 = vmatpush.bf16.msra.mxu2 %v1151_v15  ;;  %1595 = vmatpush.bf16.msra.mxu0 %v1183_v52  ;;  %v530_v15 = vmul.f32 %v2905_v14, %v352_v61  ;;  %v3023_v22 = vpack.c.bf16 %v561_v13, %v550_v12  ;;  %v405_v49 = vunpack.c.l.bf16 %v275_v43  ;;  %v395_v50 = vunpack.c.h.bf16 %v269_v38 }
  0x5f   : > { %1551 = vmatpush.bf16.msra.mxu3 %v1167_v47  ;;  %1639 = vmatpush.bf16.msra.mxu1 %v1199_v53  ;;  %v3027_v25 = vpack.c.bf16 %v562_v18, %v551_v17  ;;  %v3029_v35 = vpack.c.bf16 %v542_v21, %v531_v20  ;;  %v264_v47 = vld [vmem:[%s2526_s24 + $0x144] sm:$0xff]  ;;  %v406_v51 = vunpack.c.h.bf16 %v275_v43  ;;  %v374_v52 = vunpack.c.l.bf16 %v258_v45  ;;  %v911_v17 = vld [vmem:[%s4323_s1 + $0x630] sm:$0xff] }
  0x60   : > { %v3025_v23 = vpack.c.bf16 %v541_v16, %v530_v15  ;;  %v385_v53 = vunpack.c.l.bf16 %v264_v47  ;;  %v375_v58 = vunpack.c.h.bf16 %v258_v45  ;;  %v386_v59 = vunpack.c.h.bf16 %v264_v47  ;;  %v1011_v15 = vld [vmem:[%s4323_s1 + $0x950] sm:$0xff]  ;;  %v909_v16 = vld [vmem:[%s4323_s1 + $0x620] sm:$0xff] }
  0x61   : > { %4380 = vst [vmem:[#allocation9_spill] sm:$0xff] %v3027_v25  ;;  %v572_v60 = vmul.f32 %v2845_v24, %v394_v48  ;;  %v583_v61 = vmul.f32 %v2845_v24, %v405_v49  ;;  %v573_v62 = vmul.f32 %v2851_v29, %v395_v50  ;;  %v584_v8 = vmul.f32 %v2851_v29, %v406_v51  ;;  %v941_v45 = vld [vmem:[%s4323_s1 + $0x720] sm:$0xff]  ;;  %v943_v47 = vld [vmem:[%s4323_s1 + $0x730] sm:$0xff] }
  0x62   : > { %1508 = vmatpush.bf16.msra.mxu2 %v1149_v63  ;;  %4379 = vst [vmem:[#allocation8_spill] sm:$0xff] %v3025_v23  ;;  %v977_v63 = vld [vmem:[%s4323_s1 + $0x840] sm:$0xff]  ;;  %v552_v11 = vmul.f32 %v2905_v14, %v374_v52  ;;  %v563_v12 = vmul.f32 %v2905_v14, %v385_v53  ;;  %v553_v18 = vmul.f32 %v2911_v19, %v375_v58  ;;  %v287_v50 = vld [vmem:[%s2526_s24 + $0x1ec] sm:$0xff]  ;;  %v181_v53 = vld [vmem:[%s4322_s0 + $0x8] sm:$0x7] }
  0x63   : > { %4381 = vst [vmem:[#allocation10_spill] sm:$0xff] %v3029_v35  ;;  %1552 = vmatpush.bf16.msra.mxu3 %v1165_v44  ;;  %v1181_v13 = vpack.c.bf16 %v979_v0, %v977_v63  ;;  %v564_v20 = vmul.f32 %v2911_v19, %v386_v59  ;;  %v1197_v21 = vpack.c.bf16 %v1011_v15, %v1009_v5  ;;  %v281_v49 = vld [vmem:[%s2526_s24 + $0x1c0] sm:$0xff]  ;;  %v270_v51 = vld [vmem:[%s2526_s24 + $0x170] sm:$0xff]  ;;  %v427_v59 = vunpack.c.l.bf16 %v287_v50 }
  0x64   : > { %v1147_v36 = vpack.c.bf16 %v911_v17, %v909_v16  ;;  %v3071_v37 = vpack.c.bf16 %v583_v61, %v572_v60  ;;  %v3073_v38 = vpack.c.bf16 %v563_v12, %v552_v11  ;;  %v3075_v43 = vpack.c.bf16 %v584_v8, %v573_v62  ;;  %v276_v52 = vld [vmem:[%s2526_s24 + $0x19c] sm:$0xff]  ;;  %v975_v12 = vld [vmem:[%s4323_s1 + $0x830] sm:$0xff] }
  0x65   : > { %1596 = vmatpush.bf16.msra.mxu0 %v1181_v13  ;;  %1640 = vmatpush.bf16.msra.mxu1 %v1197_v21  ;;  %v3077_v44 = vpack.c.bf16 %v564_v20, %v553_v18  ;;  %v1163_v48 = vpack.c.bf16 %v943_v47, %v941_v45  ;;  %v416_v58 = vunpack.c.l.bf16 %v281_v49  ;;  %v417_v60 = vunpack.c.h.bf16 %v281_v49  ;;  %v973_v11 = vld [vmem:[%s4323_s1 + $0x820] sm:$0xff]  ;;  %v1007_v21 = vld [vmem:[%s4323_s1 + $0x930] sm:$0xff] }
  0x66   : > { %1509 = vmatpush.bf16.msra.mxu2 %v1147_v36  ;;  %4382 = vst [vmem:[#allocation11_spill] sm:$0xff] %v3073_v38  ;;  %v428_v61 = vunpack.c.h.bf16 %v287_v50  ;;  %v396_v62 = vunpack.c.l.bf16 %v270_v51  ;;  %v407_v63 = vunpack.c.l.bf16 %v276_v52  ;;  %v2303_v0 = vmul.f32 -1.442695, %v181_v53  ;;  %v1005_v20 = vld [vmem:[%s4323_s1 + $0x920] sm:$0xff]  ;;  %v907_v49 = vld [vmem:[%s4323_s1 + $0x610] sm:$0xff] }
  0x67   : > { %4383 = vst [vmem:[#allocation12_spill] sm:$0xff] %v3075_v43  ;;  %1553 = vmatpush.bf16.msra.mxu3 %v1163_v48  ;;  %v397_v5 = vunpack.c.h.bf16 %v270_v51  ;;  %v408_v8 = vunpack.c.h.bf16 %v276_v52  ;;  %v1179_v13 = vpack.c.bf16 %v975_v12, %v973_v11  ;;  %v594_v15 = vmul.f32 %v2845_v24, %v416_v58  ;;  %v905_v36 = vld [vmem:[%s4323_s1 + $0x600] sm:$0xff]  ;;  %v939_v51 = vld [vmem:[%s4323_s1 + $0x710] sm:$0xff]  ;;  %v293_v12 = vld [vmem:[%s2526_s24 + $0x218] sm:$0xff] }
  0x68   : > { %1262 = vmatmul.bf16.gmra.mxu0 %v2861_v39  ;;  %1335 = vmatmul.bf16.vlgmr.msrb.gmra.mxu2 %v2863_v40  ;;  %4384 = vst [vmem:[#allocation13_spill] sm:$0xff] %v3077_v44  ;;  %v605_v16 = vmul.f32 %v2845_v24, %v427_v59  ;;  %v595_v17 = vmul.f32 %v2851_v29, %v417_v60  ;;  %v937_v50 = vld [vmem:[%s4323_s1 + $0x700] sm:$0xff]  ;;  %2350 = vpow2.f32 %v2303_v0 }
  0x69   : > { %1306 = vmatmul.bf16.gmra.mxu1 %v2865_v46  ;;  %1379 = vmatmul.bf16.vlgmr.msrb.gmra.mxu3 %v2867_v41  ;;  %v606_v18 = vmul.f32 %v2851_v29, %v428_v61  ;;  %v574_v45 = vmul.f32 %v2905_v14, %v396_v62  ;;  %v585_v47 = vmul.f32 %v2905_v14, %v407_v63 }
  0x6a   : > { %1597 = vmatpush.bf16.msra.mxu0 %v1179_v13  ;;  %v1195_v48 = vpack.c.bf16 %v1007_v21, %v1005_v20  ;;  %v575_v52 = vmul.f32 %v2911_v19, %v397_v5  ;;  %v586_v53 = vmul.f32 %v2911_v19, %v408_v8  ;;  %v1145_v58 = vpack.c.bf16 %v907_v49, %v905_v36  ;;  %v299_v13 = vld [vmem:[%s2526_s24 + $0x244] sm:$0xff] }
  0x6b   : > { %v1161_v59 = vpack.c.bf16 %v939_v51, %v937_v50  ;;  %v3128_v60 = vpack.c.bf16 %v605_v16, %v594_v15  ;;  %v3130_v61 = vpack.c.bf16 %v585_v47, %v574_v45  ;;  %v3132_v63 = vpack.c.bf16 %v606_v18, %v595_v17  ;;  %v282_v20 = vld [vmem:[%s2526_s24 + $0x1c8] sm:$0xff]  ;;  %v288_v15 = vld [vmem:[%s2526_s24 + $0x1f4] sm:$0xff]  ;;  %v969_v16 = vld [vmem:[%s4323_s1 + $0x800] sm:$0xff] }
  0x6c   : > { %1641 = vmatpush.bf16.msra.mxu1 %v1195_v48  ;;  %1510 = vmatpush.bf16.msra.mxu2 %v1145_v58  ;;  %v3134_v0 = vpack.c.bf16 %v586_v53, %v575_v52  ;;  %v971_v17 = vld [vmem:[%s4323_s1 + $0x810] sm:$0xff]  ;;  %v438_v45 = vunpack.c.l.bf16 %v293_v12  ;;  %v449_v47 = vunpack.c.l.bf16 %v299_v13  ;;  %v439_v49 = vunpack.c.h.bf16 %v293_v12 }
  0x6d   : > { %1554 = vmatpush.bf16.msra.mxu3 %v1161_v59  ;;  %4385 = vst [vmem:[#allocation14_spill] sm:$0xff] %v3130_v61  ;;  %v1177_v21 = vpack.c.bf16 %v971_v17, %v969_v16  ;;  %v450_v50 = vunpack.c.h.bf16 %v299_v13  ;;  %v418_v51 = vunpack.c.l.bf16 %v282_v20  ;;  %v429_v52 = vunpack.c.l.bf16 %v288_v15 }
  0x6e   : > { %4386 = vst [vmem:[#allocation15_spill] sm:$0xff] %v3132_v63  ;;  %v2351_v5 = vpop.eup %2350  ;;  %v419_v59 = vunpack.c.h.bf16 %v282_v20  ;;  %v616_v17 = vmul.f32 %v2845_v24, %v438_v45  ;;  %v1045_v20 = vld [vmem:[%s4323_s1 + $0xa60] sm:$0xff] }
  0x6f   : > { %4387 = vst [vmem:[#allocation16_spill] sm:$0xff] %v3134_v0  ;;  %v3152_v18 = vadd.f32 1.0, %v2351_v5  ;;  %1598 = vmatpush.bf16.msra.mxu0 %v1177_v21  ;;  %v1001_v5 = vld [vmem:[%s4323_s1 + $0x900] sm:$0xff]  ;;  %v627_v21 = vmul.f32 %v2845_v24, %v449_v47  ;;  %v607_v45 = vmul.f32 %v2905_v14, %v429_v52  ;;  %v744_v47 = vld [vmem:[%s4323_s1 + $0xf8] sm:$0xff] }
  0x71   : > { %2352 = vrcp.f32 %v3152_v18  ;;  %vm210_vm4 = vweird.f32 %v3152_v18 }
  0x78   : > { %1340 = vmatmul.bf16.gmra.mxu2 %v2921_v31  ;;  %1423 = vmatmul.bf16.vlgmr.msrb.gmra.mxu0 %v2923_v32 }
  0x79   : > { %1384 = vmatmul.bf16.gmra.mxu3 %v2925_v33  ;;  %1467 = vmatmul.bf16.vlgmr.msrb.gmra.mxu1 %v2927_v34 }
  0x88   : > { %1345 = vmatmul.bf16.gmra.mxu2 %v2975_v26  ;;  %1428 = vmatmul.bf16.gmra.mxu0 %v2977_v27 }
  0x89   : > { %1389 = vmatmul.bf16.gmra.mxu3 %v2979_v28  ;;  %1472 = vmatmul.bf16.gmra.mxu1 %v2981_v30 }
  0x98   : > { %1350 = vmatmul.bf16.gmra.mxu2 %v3023_v22  ;;  %1433 = vmatmul.bf16.gmra.mxu0 %v3025_v23 }
  0x99   : > { %1394 = vmatmul.bf16.gmra.mxu3 %v3027_v25  ;;  %1477 = vmatmul.bf16.gmra.mxu1 %v3029_v35 }
  0xa8   : > { %1355 = vmatmul.bf16.gmra.mxu2 %v3071_v37  ;;  %1438 = vmatmul.bf16.gmra.mxu0 %v3073_v38 }
  0xa9   : > { %1399 = vmatmul.bf16.gmra.mxu3 %v3075_v43  ;;  %1482 = vmatmul.bf16.gmra.mxu1 %v3077_v44 }
  0xb5   : > { %v1248_v62 = vpop.f32.mrf.mxu0 }
  0xb6   : > { %v1292_v8 = vpop.f32.mrf.mxu1 }
  0xb7   : > { %v3136_v11 = vadd.f32 %v1292_v8, %v1248_v62  ;;  %v430_v62 = vunpack.c.h.bf16 %v288_v15  ;;  %v1003_v8 = vld [vmem:[%s4323_s1 + $0x910] sm:$0xff] }
  0xb8   : > { %1360 = vmatmul.bf16.gmra.mxu2 %v3128_v60  ;;  %1443 = vmatmul.bf16.gmra.mxu0 %v3130_v61  ;;  %v1193_v13 = vpack.c.bf16 %v1003_v8, %v1001_v5  ;;  %v1047_v15 = vld [vmem:[%s4323_s1 + $0xa70] sm:$0xff]  ;;  %v628_v5 = vmul.f32 %v2851_v29, %v450_v50  ;;  %v597_v8 = vmul.f32 %v2911_v19, %v419_v59 }
  0xb9   : > { %1404 = vmatmul.bf16.gmra.mxu3 %v3132_v63  ;;  %1487 = vmatmul.bf16.gmra.mxu1 %v3134_v0  ;;  %v1215_v24 = vpack.c.bf16 %v1047_v15, %v1045_v20 }
  0xba   : > { %1642 = vmatpush.bf16.msra.mxu1 %v1193_v13  ;;  %v3187_v13 = vpack.c.bf16 %v627_v21, %v616_v17  ;;  %v223_v17 = vld [vmem:[%s2526_s24 + $0x18] sm:$0xff]  ;;  %v229_v21 = vld [vmem:[%s2526_s24 + $0x44] sm:$0xff] }
  0xbb   : > { %v1268_v36 = vpop.f32.mrf.mxu2  ;;  %1683 = vmatpush.bf16.msrb.mxu2 %v1215_v24  ;;  %v321_v44 = vunpack.c.l.bf16 %v229_v21 }
  0xbc   : > { %v1312_v48 = vpop.f32.mrf.mxu3  ;;  %4388 = vst [vmem:[#allocation17_spill] sm:$0xff] %v3187_v13 }
  0xbd   : > { %v3154_v53 = vadd.f32 %v1312_v48, %v1268_v36  ;;  %v1250_v58 = vpop.f32.mrf.mxu0  ;;  %v742_v36 = vld [vmem:[%s4323_s1 + $0xe8] sm:$0xff]  ;;  %v617_v48 = vmul.f32 %v2851_v29, %v439_v49  ;;  %v3185_v49 = vpop.eup %2352 }
  0xbe   : > { %v1294_v12 = vpop.f32.mrf.mxu1  ;;  %v1064_v0 = vpack.c.bf16 %v744_v47, %v742_v36  ;;  %v206_v36 = vmul.f32 %v3185_v49, %v3152_v18  ;;  %v300_v47 = vld [vmem:[%s2526_s24 + $0x24c] sm:$0xff]  ;;  %vm211_vm5 = vweird.f32 %v3185_v49 }
  0xbf   : > { %v3163_v16 = vadd.f32 %v1294_v12, %v1250_v58  ;;  %v596_v58 = vmul.f32 %v2905_v14, %v418_v51  ;;  %v608_v12 = vmul.f32 %v2911_v19, %v430_v62  ;;  %v3193_v59 = vpack.c.bf16 %v628_v5, %v617_v48  ;;  %v774_v48 = vld [vmem:[%s4323_s1 + $0x1e8] sm:$0xff]  ;;  %vm3251_vm6 = vmor %vm210_vm4, %vm211_vm5 }
  0xc0   : > { %1723 = vmatpush.bf16.msrb.mxu3 %v1064_v0  ;;  %v294_v0 = vld [vmem:[%s2526_s24 + $0x220] sm:$0xff]  ;;  %v452_v61 = vunpack.c.h.bf16 %v300_v47 }
  0xc1   : > { %v3189_v20 = vpack.c.bf16 %v607_v45, %v596_v58  ;;  %4390 = vst [vmem:[#allocation19_spill] sm:$0xff] %v3193_v59  ;;  %v3195_v62 = vpack.c.bf16 %v608_v12, %v597_v8  ;;  %v776_v58 = vld [vmem:[%s4323_s1 + $0x1f8] sm:$0xff]  ;;  %v806_v45 = vld [vmem:[%s4323_s1 + $0x2e8] sm:$0xff]  ;;  %v440_v5 = vunpack.c.l.bf16 %v294_v0  ;;  %v451_v8 = vunpack.c.l.bf16 %v300_v47 }
  0xc2   : > { %v207_v12 = vsub.f32 1.0, %v206_v36  ;;  %v311_v36 = vunpack.c.h.bf16 %v223_v17 }
  0xc3   : > { %v1270_v51 = vpop.f32.mrf.mxu2  ;;  %4389 = vst [vmem:[#allocation18_spill] sm:$0xff] %v3189_v20  ;;  %v629_v47 = vmul.f32 %v2905_v14, %v451_v8  ;;  %v214_v8 = vand.u32 2147483647, %v3152_v18 }
  0xc4   : > { %v1314_v52 = vpop.f32.mrf.mxu3  ;;  %4391 = vst [vmem:[#allocation20_spill] sm:$0xff] %v3195_v62  ;;  %v208_v25 = vmul.f32 %v3185_v49, %v207_v12 }
  0xc5   : > { %v3191_v29 = vadd.f32 %v1314_v52, %v1270_v51  ;;  %v1253_v50 = vpop.f32.mrf.mxu0  ;;  %v1080_v51 = vpack.c.bf16 %v776_v58, %v774_v48  ;;  %v808_v52 = vld [vmem:[%s4323_s1 + $0x2f8] sm:$0xff]  ;;  %v322_v48 = vunpack.c.h.bf16 %v229_v21  ;;  %v3227_v58 = vperm.slane %v2605_v42, 7 }
  0xc6   : > { %v1297_v15 = vpop.f32.mrf.mxu1  ;;  %v216_v21 = vand.u32 2147483648, %v3152_v18  ;;  %vm215_vm7 = vcmp.eq.f32.partialorder %v214_v8, 8.507059e+37 }
  0xc7   : > { %v3199_v24 = vadd.f32 %v1297_v15, %v1253_v50  ;;  %v441_v15 = vunpack.c.h.bf16 %v294_v0  ;;  %1767 = vmatpush.bf16.msrb.mxu0 %v1080_v51  ;;  %v618_v0 = vmul.f32 %v2905_v14, %v440_v5  ;;  %v630_v14 = vmul.f32 %v2911_v19, %v452_v61 }
  0xc8   : > { %1365 = vmatmul.bf16.gmra.mxu2 %v3187_v13  ;;  %1448 = vmatmul.bf16.gmra.mxu0 %v3189_v20  ;;  %v1096_v20 = vpack.c.bf16 %v808_v52, %v806_v45  ;;  %v209_v5 = vadd.f32 %v3185_v49, %v208_v25 }
  0xc9   : > { %1409 = vmatmul.bf16.gmra.mxu3 %v3193_v59  ;;  %1492 = vmatmul.bf16.gmra.mxu1 %v3195_v62  ;;  %v310_v62 = vunpack.c.l.bf16 %v223_v17  ;;  %v3222_v59 = vperm.slane %v2605_v42, 6  ;;  %v619_v45 = vmul.f32 %v2911_v19, %v441_v15  ;;  %v738_v17 = vld [vmem:[%s4323_s1 + $0xc8] sm:$0xff]  ;;  %v740_v42 = vld [vmem:[%s4323_s1 + $0xd8] sm:$0xff]  ;;  %v3255_v61 = vpack.c.bf16 %v629_v47, %v618_v0  ;;  %v235_v0 = vld [vmem:[%s2526_s24 + $0x70] sm:$0xff] }
  0xca   : > { %1811 = vmatpush.bf16.msrb.mxu1 %v1096_v20  ;;  %v217_v15 = vor.u32 1.1754944e-38, %v216_v21  ;;  %v241_v47 = vld [vmem:[%s2526_s24 + $0x9c] sm:$0xff] }
  0xcb   : > { %v1273_v50 = vpop.f32.mrf.mxu2  ;;  %v499_v20 = vmul.f32 %v3222_v59, %v321_v44  ;;  %4394 = vst [vmem:[#allocation21_spill] sm:$0xff] %v3255_v61  ;;  %v343_v12 = vunpack.c.l.bf16 %v241_v47 }
  0xcc   : > { %v1317_v63 = vpop.f32.mrf.mxu3 }
  0xcd   : > { %v3224_v43 = vadd.f32 %v1317_v63, %v1273_v50  ;;  %v1255_v38 = vpop.f32.mrf.mxu0  ;;  %v488_v63 = vmul.f32 %v3222_v59, %v310_v62  ;;  %v500_v62 = vmul.f32 %v3227_v58, %v322_v48  ;;  %v3261_v50 = vpack.c.bf16 %v630_v14, %v619_v45  ;;  %v230_v45 = vld [vmem:[%s2526_s24 + $0x4c] sm:$0xff] }
  0xce   : > { %v1299_v35 = vpop.f32.mrf.mxu1  ;;  %v213_v48 = vsel %vm3251_vm6, %v3185_v49, %v209_v5  ;;  %v802_v14 = vld [vmem:[%s4323_s1 + $0x2c8] sm:$0xff]  ;;  %v1043_v5 = vld [vmem:[%s4323_s1 + $0xa50] sm:$0xff] }
  0xcf   : > { %v3231_v23 = vadd.f32 %v1299_v35, %v1255_v38  ;;  %v1062_v35 = vpack.c.bf16 %v740_v42, %v738_v17  ;;  %v489_v38 = vmul.f32 %v3227_v58, %v311_v36  ;;  %v3257_v51 = vpack.c.bf16 %v499_v20, %v488_v63  ;;  %4396 = vst [vmem:[#allocation23_spill] sm:$0xff] %v3261_v50  ;;  %v224_v63 = vld [vmem:[%s2526_s24 + $0x20] sm:$0xff]  ;;  %v770_v42 = vld [vmem:[%s4323_s1 + $0x1c8] sm:$0xff]  ;;  %v772_v20 = vld [vmem:[%s4323_s1 + $0x1d8] sm:$0xff] }
  0xd0   : > { %v3284_v49 = vsel %vm215_vm7, %v217_v15, %v213_v48  ;;  %v312_v48 = vunpack.c.l.bf16 %v224_v63 }
  0xd1   : > { %1724 = vmatpush.bf16.msrb.mxu3 %v1062_v35  ;;  %4395 = vst [vmem:[#allocation22_spill] sm:$0xff] %v3257_v51  ;;  %v3263_v18 = vpack.c.bf16 %v500_v62, %v489_v38  ;;  %v1078_v35 = vpack.c.bf16 %v772_v20, %v770_v42  ;;  %v804_v38 = vld [vmem:[%s4323_s1 + $0x2d8] sm:$0xff]  ;;  %v1041_v62 = vld [vmem:[%s4323_s1 + $0xa40] sm:$0xff]  ;;  %v323_v42 = vunpack.c.l.bf16 %v230_v45  ;;  %v3299_v20 = vperm.slane %v3284_v49, 0 }
  0xd2   : > { %v1094_v21 = vpack.c.bf16 %v804_v38, %v802_v14  ;;  %v313_v38 = vunpack.c.h.bf16 %v224_v63  ;;  %v521_v63 = vmul.f32 %v3222_v59, %v343_v12 }
  0xd3   : > { %v1275_v44 = vpop.f32.mrf.mxu2  ;;  %4397 = vst [vmem:[#allocation24_spill] sm:$0xff] %v3263_v18  ;;  %1768 = vmatpush.bf16.msrb.mxu0 %v1078_v35  ;;  %v736_v35 = vld [vmem:[%s4323_s1 + $0xb8] sm:$0xff] }
  0xd4   : > { %v1319_v19 = vpop.f32.mrf.mxu3  ;;  %1812 = vmatpush.bf16.msrb.mxu1 %v1094_v21 }
  0xd5   : > { %v3259_v52 = vadd.f32 %v1319_v19, %v1275_v44  ;;  %v1258_v25 = vpop.f32.mrf.mxu0  ;;  %v332_v44 = vunpack.c.l.bf16 %v235_v0  ;;  %v333_v19 = vunpack.c.h.bf16 %v235_v0 }
  0xd6   : > { %v1302_v36 = vpop.f32.mrf.mxu1 }
  0xd7   : > { %v3268_v17 = vadd.f32 %v1302_v36, %v1258_v25  ;;  %v1213_v25 = vpack.c.bf16 %v1043_v5, %v1041_v62  ;;  %v344_v36 = vunpack.c.h.bf16 %v241_v47  ;;  %v734_v47 = vld [vmem:[%s4323_s1 + $0xa8] sm:$0xff]  ;;  %v510_v5 = vmul.f32 %v3222_v59, %v332_v44 }
  0xd8   : > { %1453 = vmatmul.bf16.gmra.mxu0 %v3255_v61  ;;  %1511 = vmatmul.bf16.vlgmr.msra.gmra.mxu2 %v3257_v51  ;;  %v3304_v61 = vperm.slane %v3284_v49, 1  ;;  %v1060_v21 = vpack.c.bf16 %v736_v35, %v734_v47  ;;  %v768_v35 = vld [vmem:[%s4323_s1 + $0x1b8] sm:$0xff] }
  0xd9   : > { %1497 = vmatmul.bf16.gmra.mxu1 %v3261_v50  ;;  %1555 = vmatmul.bf16.vlgmr.msra.gmra.mxu3 %v3263_v18  ;;  %v324_v50 = vunpack.c.h.bf16 %v230_v45  ;;  %v490_v45 = vmul.f32 %v3299_v20, %v312_v48  ;;  %v3322_v44 = vpack.c.bf16 %v521_v63, %v510_v5  ;;  %v247_v5 = vld [vmem:[%s2526_s24 + $0xc8] sm:$0xff]  ;;  %v253_v63 = vld [vmem:[%s2526_s24 + $0xf4] sm:$0xff] }
  0xda   : > { %1684 = vmatpush.bf16.msrb.mxu2 %v1213_v25  ;;  %v511_v25 = vmul.f32 %v3227_v58, %v333_v19  ;;  %v491_v30 = vmul.f32 %v3304_v61, %v313_v38  ;;  %1725 = vmatpush.bf16.msrb.mxu3 %v1060_v21  ;;  %v366_v28 = vunpack.c.h.bf16 %v253_v63 }
  0xdb   : > { %v1278_v8 = vpop.f32.mrf.mxu2  ;;  %4398 = vst [vmem:[#allocation25_spill] sm:$0xff] %v3322_v44 }
  0xdc   : > { %v1322_v15 = vpop.f32.mrf.mxu3 }
  0xdd   : > { %v3301_v18 = vadd.f32 %v1322_v15, %v1278_v8  ;;  %v1260_v14 = vpop.f32.mrf.mxu0  ;;  %v501_v8 = vmul.f32 %v3299_v20, %v323_v42  ;;  %v522_v15 = vmul.f32 %v3227_v58, %v344_v36 }
  0xde   : > { %v1304_v0 = vpop.f32.mrf.mxu1 }
  0xdf   : > { %v3312_v62 = vadd.f32 %v1304_v0, %v1260_v14  ;;  %v502_v14 = vmul.f32 %v3304_v61, %v324_v50  ;;  %v3324_v12 = vpack.c.bf16 %v501_v8, %v490_v45  ;;  %v3328_v19 = vpack.c.bf16 %v522_v15, %v511_v25  ;;  %v766_v50 = vld [vmem:[%s4323_s1 + $0x1a8] sm:$0xff]  ;;  %v800_v25 = vld [vmem:[%s4323_s1 + $0x2b8] sm:$0xff] }
  0xe0   : > { %v1076_v45 = vpack.c.bf16 %v768_v35, %v766_v50  ;;  %v798_v8 = vld [vmem:[%s4323_s1 + $0x2a8] sm:$0xff]  ;;  %v354_v50 = vunpack.c.l.bf16 %v247_v5  ;;  %v365_v35 = vunpack.c.l.bf16 %v253_v63 }
  0xe1   : > { %4399 = vst [vmem:[#allocation26_spill] sm:$0xff] %v3324_v12  ;;  %v3330_v36 = vpack.c.bf16 %v502_v14, %v491_v30  ;;  %v236_v30 = vld [vmem:[%s2526_s24 + $0x78] sm:$0xff]  ;;  %v242_v15 = vld [vmem:[%s2526_s24 + $0xa4] sm:$0xff]  ;;  %v1092_v14 = vpack.c.bf16 %v800_v25, %v798_v8 }
  0xe2   : > { %4400 = vst [vmem:[#allocation27_spill] sm:$0xff] %v3328_v19  ;;  %1769 = vmatpush.bf16.msrb.mxu0 %v1076_v45  ;;  %v345_v8 = vunpack.c.l.bf16 %v242_v15  ;;  %v335_v51 = vunpack.c.h.bf16 %v236_v30  ;;  %v346_v27 = vunpack.c.h.bf16 %v242_v15  ;;  %v532_v45 = vmul.f32 %v3222_v59, %v354_v50  ;;  %v762_v63 = vld [vmem:[%s4323_s1 + $0x188] sm:$0xff] }
  0xe3   : > { %v1280_v0 = vpop.f32.mrf.mxu2  ;;  %4401 = vst [vmem:[#allocation28_spill] sm:$0xff] %v3330_v36  ;;  %1813 = vmatpush.bf16.msrb.mxu1 %v1092_v14 }
  0xe4   : > { %v1324_v47 = vpop.f32.mrf.mxu3 }
  0xe5   : > { %v3326_v48 = vadd.f32 %v1324_v47, %v1280_v0  ;;  %v1263_v42 = vpop.f32.mrf.mxu0  ;;  %v730_v0 = vld [vmem:[%s4323_s1 + $0x88] sm:$0xff]  ;;  %v732_v47 = vld [vmem:[%s4323_s1 + $0x98] sm:$0xff] }
  0xe6   : > { %v1307_v38 = vpop.f32.mrf.mxu1 }
  0xe7   : > { %v3338_v21 = vadd.f32 %v1307_v38, %v1263_v42  ;;  %v1058_v42 = vpack.c.bf16 %v732_v47, %v730_v0  ;;  %v543_v0 = vmul.f32 %v3222_v59, %v365_v35 }
  0xe8   : > { %1516 = vmatmul.bf16.gmra.mxu2 %v3322_v44  ;;  %1599 = vmatmul.bf16.vlgmr.msra.gmra.mxu0 %v3324_v12  ;;  %v334_v44 = vunpack.c.l.bf16 %v236_v30  ;;  %v524_v30 = vmul.f32 %v3304_v61, %v346_v27 }
  0xe9   : > { %1560 = vmatmul.bf16.gmra.mxu3 %v3328_v19  ;;  %1643 = vmatmul.bf16.vlgmr.msra.gmra.mxu1 %v3330_v36  ;;  %v355_v36 = vunpack.c.h.bf16 %v247_v5  ;;  %v523_v5 = vmul.f32 %v3299_v20, %v345_v8 }
  0xea   : > { %1726 = vmatpush.bf16.msrb.mxu3 %v1058_v42  ;;  %v3378_v42 = vpack.c.bf16 %v543_v0, %v532_v45  ;;  %v259_v45 = vld [vmem:[%s2526_s24 + $0x120] sm:$0xff]  ;;  %v265_v0 = vld [vmem:[%s2526_s24 + $0x14c] sm:$0xff] }
  0xeb   : > { %v1336_v38 = vpop.f32.mrf.mxu2  ;;  %v533_v14 = vmul.f32 %v3227_v58, %v355_v36 }
  0xec   : > { %v1337_v19 = vadd.f32 %v1336_v38, %v3136_v11  ;;  %v1380_v12 = vpop.f32.mrf.mxu3  ;;  %v512_v11 = vmul.f32 %v3299_v20, %v334_v44  ;;  %4402 = vst [vmem:[#allocation29_spill] sm:$0xff] %v3378_v42 }
  0xed   : > { %v1265_v25 = vpop.f32.mrf.mxu0 }
  0xee   : > { %v1381_v34 = vadd.f32 %v1380_v12, %v1337_v19  ;;  %v1309_v33 = vpop.f32.mrf.mxu1  ;;  %v764_v12 = vld [vmem:[%s4323_s1 + $0x198] sm:$0xff]  ;;  %v513_v19 = vmul.f32 %v3304_v61, %v335_v51  ;;  %v3380_v38 = vpack.c.bf16 %v523_v5, %v512_v11 }
  0xef   : > { %v3361_v32 = vadd.f32 %v1309_v33, %v1265_v25  ;;  %v544_v33 = vmul.f32 %v3227_v58, %v366_v28  ;;  %v1074_v36 = vpack.c.bf16 %v764_v12, %v762_v63  ;;  %v794_v25 = vld [vmem:[%s4323_s1 + $0x288] sm:$0xff]  ;;  %v1039_v63 = vld [vmem:[%s4323_s1 + $0xa30] sm:$0xff]  ;;  %v254_v12 = vld [vmem:[%s2526_s24 + $0xfc] sm:$0xff] }
  0xf0   : > { %4403 = vst [vmem:[#allocation30_spill] sm:$0xff] %v3380_v38  ;;  %v3384_v28 = vpack.c.bf16 %v524_v30, %v513_v19  ;;  %v726_v19 = vld [vmem:[%s4323_s1 + $0x68] sm:$0xff]  ;;  %v728_v30 = vld [vmem:[%s4323_s1 + $0x78] sm:$0xff] }
  0xf1   : > { %1770 = vmatpush.bf16.msrb.mxu0 %v1074_v36  ;;  %v3382_v35 = vpack.c.bf16 %v544_v33, %v533_v14  ;;  %v248_v14 = vld [vmem:[%s2526_s24 + $0xd0] sm:$0xff]  ;;  %v1056_v36 = vpack.c.bf16 %v728_v30, %v726_v19 }
  0xf2   : > { %4405 = vst [vmem:[#allocation32_spill] sm:$0xff] %v3384_v28 }
  0xf3   : > { %v1338_v44 = vpop.f32.mrf.mxu2  ;;  %4404 = vst [vmem:[#allocation31_spill] sm:$0xff] %v3382_v35  ;;  %1727 = vmatpush.bf16.msrb.mxu3 %v1056_v36 }
  0xf4   : > { %v1339_v15 = vadd.f32 %v1338_v44, %v3163_v16  ;;  %v1382_v47 = vpop.f32.mrf.mxu3  ;;  %v796_v16 = vld [vmem:[%s4323_s1 + $0x298] sm:$0xff] }
  0xf5   : > { %v1424_v50 = vpop.f32.mrf.mxu0  ;;  %v1090_v11 = vpack.c.bf16 %v796_v16, %v794_v25  ;;  %v356_v25 = vunpack.c.l.bf16 %v248_v14  ;;  %v367_v16 = vunpack.c.l.bf16 %v254_v12 }
  0xf6   : > { %v1383_v51 = vadd.f32 %v1382_v47, %v1339_v15  ;;  %v1425_v27 = vadd.f32 %v1424_v50, %v1381_v34  ;;  %v1468_v8 = vpop.f32.mrf.mxu1  ;;  %v1037_v34 = vld [vmem:[%s4323_s1 + $0xa20] sm:$0xff]  ;;  %v376_v15 = vunpack.c.l.bf16 %v259_v45  ;;  %v387_v47 = vunpack.c.l.bf16 %v265_v0 }
  0xf7   : > { %v1211_v33 = vpack.c.bf16 %v1039_v63, %v1037_v34  ;;  %1814 = vmatpush.bf16.msrb.mxu1 %v1090_v11  ;;  %v388_v63 = vunpack.c.h.bf16 %v265_v0  ;;  %v758_v0 = vld [vmem:[%s4323_s1 + $0x168] sm:$0xff] }
  0xf8   : > { %v3394_v5 = vadd.f32 %v1468_v8, %v1425_v27  ;;  %1521 = vmatmul.bf16.gmra.mxu2 %v3378_v42  ;;  %1604 = vmatmul.bf16.gmra.mxu0 %v3380_v38  ;;  %v377_v8 = vunpack.c.h.bf16 %v259_v45  ;;  %v554_v11 = vmul.f32 %v3222_v59, %v376_v15  ;;  %v565_v19 = vmul.f32 %v3222_v59, %v387_v47 }
  0xf9   : > { %1565 = vmatmul.bf16.gmra.mxu3 %v3382_v35  ;;  %1648 = vmatmul.bf16.gmra.mxu1 %v3384_v28  ;;  %v357_v28 = vunpack.c.h.bf16 %v248_v14  ;;  %v368_v35 = vunpack.c.h.bf16 %v254_v12  ;;  %v534_v45 = vmul.f32 %v3299_v20, %v356_v25  ;;  %v790_v14 = vld [vmem:[%s4323_s1 + $0x268] sm:$0xff] }
  0xfa   : > { %1685 = vmatpush.bf16.msrb.mxu2 %v1211_v33  ;;  %v545_v33 = vmul.f32 %v3299_v20, %v367_v16 }
  0xfb   : > { %v1341_v44 = vpop.f32.mrf.mxu2  ;;  %v546_v12 = vmul.f32 %v3304_v61, %v368_v35 }
  0xfc   : > { %v1342_v50 = vadd.f32 %v1341_v44, %v3199_v24  ;;  %v1385_v27 = vpop.f32.mrf.mxu3  ;;  %v555_v24 = vmul.f32 %v3227_v58, %v377_v8  ;;  %v792_v44 = vld [vmem:[%s4323_s1 + $0x278] sm:$0xff]  ;;  %v3438_v8 = vpack.c.bf16 %v565_v19, %v554_v11  ;;  %v3440_v25 = vpack.c.bf16 %v545_v33, %v534_v45  ;;  %v722_v11 = vld [vmem:[%s4323_s1 + $0x48] sm:$0xff] }
  0xfd   : > { %v1426_v34 = vpop.f32.mrf.mxu0  ;;  %v1088_v15 = vpack.c.bf16 %v792_v44, %v790_v14  ;;  %v724_v19 = vld [vmem:[%s4323_s1 + $0x58] sm:$0xff] }
  0xfe   : > { %v1386_v38 = vadd.f32 %v1385_v27, %v1342_v50  ;;  %v1427_v42 = vadd.f32 %v1426_v34, %v1383_v51  ;;  %v1470_v13 = vpop.f32.mrf.mxu1  ;;  %v760_v51 = vld [vmem:[%s4323_s1 + $0x178] sm:$0xff]  ;;  %4406 = vst [vmem:[#allocation33_spill] sm:$0xff] %v3440_v25  ;;  %v1054_v45 = vpack.c.bf16 %v724_v19, %v722_v11 }
  0xff   : > { %v1072_v36 = vpack.c.bf16 %v760_v51, %v758_v0  ;;  %1815 = vmatpush.bf16.msrb.mxu1 %v1088_v15  ;;  %v271_v51 = vld [vmem:[%s2526_s24 + $0x178] sm:$0xff] }
 0x100   : > { %v3417_v30 = vadd.f32 %v1470_v13, %v1427_v42  ;;  %v566_v13 = vmul.f32 %v3227_v58, %v388_v63  ;;  %v535_v42 = vmul.f32 %v3304_v61, %v357_v28  ;;  %1728 = vmatpush.bf16.msrb.mxu3 %v1054_v45  ;;  %v399_v44 = vunpack.c.h.bf16 %v271_v51 }
 0x101   : > { %1771 = vmatpush.bf16.msrb.mxu0 %v1072_v36 }
 0x102   : > { %v3442_v28 = vpack.c.bf16 %v566_v13, %v555_v24  ;;  %v3444_v16 = vpack.c.bf16 %v546_v12, %v535_v42  ;;  %v266_v24 = vld [vmem:[%s2526_s24 + $0x154] sm:$0xff]  ;;  %v398_v13 = vunpack.c.l.bf16 %v271_v51  ;;  %v577_v45 = vmul.f32 %v3227_v58, %v399_v44 }
 0x103   : > { %v1343_v47 = vpop.f32.mrf.mxu2 }
 0x104   : > { %v1344_v50 = vadd.f32 %v1343_v47, %v3231_v23  ;;  %v1387_v27 = vpop.f32.mrf.mxu3  ;;  %4407 = vst [vmem:[#allocation34_spill] sm:$0xff] %v3442_v28  ;;  %v277_v23 = vld [vmem:[%s2526_s24 + $0x1a4] sm:$0xff]  ;;  %v389_v47 = vunpack.c.l.bf16 %v266_v24 }
 0x105   : > { %v1429_v35 = vpop.f32.mrf.mxu0  ;;  %4408 = vst [vmem:[#allocation35_spill] sm:$0xff] %v3444_v16  ;;  %v409_v42 = vunpack.c.l.bf16 %v277_v23 }
 0x106   : > { %v1388_v34 = vadd.f32 %v1387_v27, %v1344_v50  ;;  %v1430_v63 = vadd.f32 %v1429_v35, %v1386_v38  ;;  %v1473_v0 = vpop.f32.mrf.mxu1  ;;  %v260_v38 = vld [vmem:[%s2526_s24 + $0x128] sm:$0xff]  ;;  %v410_v27 = vunpack.c.h.bf16 %v277_v23  ;;  %v567_v51 = vmul.f32 %v3299_v20, %v389_v47 }
 0x107   : > { %v378_v15 = vunpack.c.l.bf16 %v260_v38  ;;  %v379_v35 = vunpack.c.h.bf16 %v260_v38  ;;  %v587_v11 = vmul.f32 %v3222_v59, %v409_v42  ;;  %v754_v23 = vld [vmem:[%s4323_s1 + $0x148] sm:$0xff]  ;;  %v1033_v42 = vld [vmem:[%s4323_s1 + $0xa00] sm:$0xff] }
 0x108   : > { %v3447_v14 = vadd.f32 %v1473_v0, %v1430_v63  ;;  %1526 = vmatmul.bf16.gmra.mxu2 %v3438_v8  ;;  %1609 = vmatmul.bf16.gmra.mxu0 %v3440_v25  ;;  %v390_v63 = vunpack.c.h.bf16 %v266_v24  ;;  %v576_v25 = vmul.f32 %v3222_v59, %v398_v13  ;;  %v786_v38 = vld [vmem:[%s4323_s1 + $0x248] sm:$0xff]  ;;  %v788_v13 = vld [vmem:[%s4323_s1 + $0x258] sm:$0xff] }
 0x109   : > { %1570 = vmatmul.bf16.gmra.mxu3 %v3442_v28  ;;  %1653 = vmatmul.bf16.gmra.mxu1 %v3444_v16 }
 0x10a   : > { %v568_v24 = vmul.f32 %v3304_v61, %v390_v63 }
 0x10b   : > { %v1346_v33 = vpop.f32.mrf.mxu2 }
 0x10c   : > { %v1347_v12 = vadd.f32 %v1346_v33, %v3268_v17  ;;  %v1390_v36 = vpop.f32.mrf.mxu3  ;;  %v556_v17 = vmul.f32 %v3299_v20, %v378_v15 }
 0x10d   : > { %v1431_v50 = vpop.f32.mrf.mxu0 }
 0x10e   : > { %v1391_v0 = vadd.f32 %v1390_v36, %v1347_v12  ;;  %v1432_v28 = vadd.f32 %v1431_v50, %v1388_v34  ;;  %v1475_v16 = vpop.f32.mrf.mxu1  ;;  %v756_v34 = vld [vmem:[%s4323_s1 + $0x158] sm:$0xff]  ;;  %v1035_v12 = vld [vmem:[%s4323_s1 + $0xa10] sm:$0xff]  ;;  %v1086_v36 = vpack.c.bf16 %v788_v13, %v786_v38 }
 0x10f   : > { %v1070_v33 = vpack.c.bf16 %v756_v34, %v754_v23  ;;  %v1209_v44 = vpack.c.bf16 %v1035_v12, %v1033_v42 }
 0x110   : > { %v3465_v19 = vadd.f32 %v1475_v16, %v1432_v28  ;;  %v588_v28 = vmul.f32 %v3227_v58, %v410_v27  ;;  %v557_v16 = vmul.f32 %v3304_v61, %v379_v35  ;;  %v3492_v27 = vpack.c.bf16 %v587_v11, %v576_v25  ;;  %1816 = vmatpush.bf16.msrb.mxu1 %v1086_v36  ;;  %v720_v25 = vld [vmem:[%s4323_s1 + $0x38] sm:$0xff] }
 0x111   : > { %1772 = vmatpush.bf16.msrb.mxu0 %v1070_v33  ;;  %v3494_v35 = vpack.c.bf16 %v567_v51, %v556_v17  ;;  %1686 = vmatpush.bf16.msrb.mxu2 %v1209_v44  ;;  %v289_v51 = vld [vmem:[%s2526_s24 + $0x1fc] sm:$0xff] }
 0x112   : > { %v3496_v23 = vpack.c.bf16 %v588_v28, %v577_v45  ;;  %v3498_v34 = vpack.c.bf16 %v568_v24, %v557_v16  ;;  %v283_v45 = vld [vmem:[%s2526_s24 + $0x1d0] sm:$0xff]  ;;  %v431_v42 = vunpack.c.l.bf16 %v289_v51 }
 0x113   : > { %v1348_v15 = vpop.f32.mrf.mxu2  ;;  %4409 = vst [vmem:[#allocation36_spill] sm:$0xff] %v3494_v35  ;;  %v278_v28 = vld [vmem:[%s2526_s24 + $0x1ac] sm:$0xff]  ;;  %v420_v24 = vunpack.c.l.bf16 %v283_v45  ;;  %v421_v44 = vunpack.c.h.bf16 %v283_v45 }
 0x114   : > { %v1349_v47 = vadd.f32 %v1348_v15, %v3312_v62  ;;  %v1392_v50 = vpop.f32.mrf.mxu3  ;;  %4410 = vst [vmem:[#allocation37_spill] sm:$0xff] %v3496_v23  ;;  %v718_v62 = vld [vmem:[%s4323_s1 + $0x28] sm:$0xff]  ;;  %v609_v45 = vmul.f32 %v3222_v59, %v431_v42 }
 0x115   : > { %v1434_v63 = vpop.f32.mrf.mxu0  ;;  %4411 = vst [vmem:[#allocation38_spill] sm:$0xff] %v3498_v34  ;;  %v1052_v11 = vpack.c.bf16 %v720_v25, %v718_v62 }
 0x116   : > { %v1393_v38 = vadd.f32 %v1392_v50, %v1349_v47  ;;  %v1435_v33 = vadd.f32 %v1434_v63, %v1391_v0  ;;  %v1478_v13 = vpop.f32.mrf.mxu1  ;;  %v272_v0 = vld [vmem:[%s2526_s24 + $0x180] sm:$0xff]  ;;  %v411_v47 = vunpack.c.l.bf16 %v278_v28  ;;  %v432_v63 = vunpack.c.h.bf16 %v289_v51 }
 0x117   : > { %1729 = vmatpush.bf16.msrb.mxu3 %v1052_v11  ;;  %v400_v15 = vunpack.c.l.bf16 %v272_v0  ;;  %v750_v11 = vld [vmem:[%s4323_s1 + $0x128] sm:$0xff]  ;;  %v599_v51 = vmul.f32 %v3227_v58, %v421_v44  ;;  %v716_v44 = vld [vmem:[%s4323_s1 + $0x18] sm:$0xff] }
 0x118   : > { %v3506_v17 = vadd.f32 %v1478_v13, %v1435_v33  ;;  %1531 = vmatmul.bf16.gmra.mxu2 %v3492_v27  ;;  %1614 = vmatmul.bf16.gmra.mxu0 %v3494_v35  ;;  %v401_v33 = vunpack.c.h.bf16 %v272_v0  ;;  %v412_v13 = vunpack.c.h.bf16 %v278_v28  ;;  %v589_v0 = vmul.f32 %v3299_v20, %v411_v47  ;;  %v782_v28 = vld [vmem:[%s4323_s1 + $0x228] sm:$0xff] }
 0x119   : > { %1575 = vmatmul.bf16.gmra.mxu3 %v3496_v23  ;;  %1658 = vmatmul.bf16.gmra.mxu1 %v3498_v34  ;;  %v752_v34 = vld [vmem:[%s4323_s1 + $0x138] sm:$0xff] }
 0x11a   : > { %v590_v42 = vmul.f32 %v3304_v61, %v412_v13 }
 0x11b   : > { %v1351_v16 = vpop.f32.mrf.mxu2 }
 0x11c   : > { %v1352_v12 = vadd.f32 %v1351_v16, %v3338_v21  ;;  %v1395_v36 = vpop.f32.mrf.mxu3  ;;  %v598_v21 = vmul.f32 %v3222_v59, %v420_v24  ;;  %v1068_v16 = vpack.c.bf16 %v752_v34, %v750_v11  ;;  %v714_v34 = vld [vmem:[%s4323_s1 + $0x8] sm:$0xff]  ;;  %v579_v24 = vmul.f32 %v3304_v61, %v401_v33 }
 0x11d   : > { %v1436_v50 = vpop.f32.mrf.mxu0 }
 0x11e   : > { %v1396_v62 = vadd.f32 %v1395_v36, %v1352_v12  ;;  %v1437_v25 = vadd.f32 %v1436_v50, %v1393_v38  ;;  %v1480_v23 = vpop.f32.mrf.mxu1  ;;  %v578_v38 = vmul.f32 %v3299_v20, %v400_v15  ;;  %v784_v12 = vld [vmem:[%s4323_s1 + $0x238] sm:$0xff]  ;;  %1773 = vmatpush.bf16.msrb.mxu0 %v1068_v16  ;;  %v1050_v15 = vpack.c.bf16 %v716_v44, %v714_v34 }
 0x11f   : > { %v1084_v36 = vpack.c.bf16 %v784_v12, %v782_v28  ;;  %v3552_v16 = vpack.c.bf16 %v590_v42, %v579_v24 }
 0x120   : > { %v3525_v35 = vadd.f32 %v1480_v23, %v1437_v25  ;;  %v610_v23 = vmul.f32 %v3227_v58, %v432_v63  ;;  %v3546_v63 = vpack.c.bf16 %v609_v45, %v598_v21  ;;  %v3548_v33 = vpack.c.bf16 %v589_v0, %v578_v38  ;;  %1730 = vmatpush.bf16.msrb.mxu3 %v1050_v15  ;;  %v301_v21 = vld [vmem:[%s2526_s24 + $0x254] sm:$0xff]  ;;  %v746_v38 = vld [vmem:[%s4323_s1 + $0x108] sm:$0xff] }
 0x121   : > { %1817 = vmatpush.bf16.msrb.mxu1 %v1084_v36  ;;  %4415 = vst [vmem:[#allocation42_spill] sm:$0xff] %v3552_v16  ;;  %v284_v45 = vld [vmem:[%s2526_s24 + $0x1d8] sm:$0xff]  ;;  %v453_v42 = vunpack.c.l.bf16 %v301_v21 }
 0x122   : > { %4412 = vst [vmem:[#allocation39_spill] sm:$0xff] %v3546_v63  ;;  %v3550_v11 = vpack.c.bf16 %v610_v23, %v599_v51  ;;  %v290_v51 = vld [vmem:[%s2526_s24 + $0x204] sm:$0xff] }
 0x123   : > { %v1353_v47 = vpop.f32.mrf.mxu2  ;;  %4413 = vst [vmem:[#allocation40_spill] sm:$0xff] %v3548_v33 }
 0x124   : > { %v1354_v50 = vadd.f32 %v1353_v47, %v3361_v32  ;;  %v1397_v25 = vpop.f32.mrf.mxu3  ;;  %4414 = vst [vmem:[#allocation41_spill] sm:$0xff] %v3550_v11  ;;  %v295_v32 = vld [vmem:[%s2526_s24 + $0x228] sm:$0xff] }
 0x125   : > { %v1439_v13 = vpop.f32.mrf.mxu0  ;;  %v442_v24 = vunpack.c.l.bf16 %v295_v32  ;;  %v443_v47 = vunpack.c.h.bf16 %v295_v32 }
 0x126   : > { %v1398_v28 = vadd.f32 %v1397_v25, %v1354_v50  ;;  %v1440_v12 = vadd.f32 %v1439_v13, %v1396_v62  ;;  %v1483_v34 = vpop.f32.mrf.mxu1  ;;  %v748_v62 = vld [vmem:[%s4323_s1 + $0x118] sm:$0xff]  ;;  %v422_v50 = vunpack.c.l.bf16 %v284_v45  ;;  %v433_v25 = vunpack.c.l.bf16 %v290_v51 }
 0x127   : > { %v1066_v0 = vpack.c.bf16 %v748_v62, %v746_v38  ;;  %v778_v38 = vld [vmem:[%s4323_s1 + $0x208] sm:$0xff]  ;;  %v620_v32 = vmul.f32 %v3222_v59, %v442_v24  ;;  %v631_v62 = vmul.f32 %v3222_v59, %v453_v42 }
 0x128   : > { %v3554_v36 = vadd.f32 %v1483_v34, %v1440_v12  ;;  %1536 = vmatmul.bf16.gmra.mxu2 %v3546_v63  ;;  %1619 = vmatmul.bf16.gmra.mxu0 %v3548_v33  ;;  %v454_v12 = vunpack.c.h.bf16 %v301_v21  ;;  %v423_v34 = vunpack.c.h.bf16 %v284_v45  ;;  %v621_v21 = vmul.f32 %v3227_v58, %v443_v47  ;;  %v870_v59 = vld [vmem:[%s4323_s1 + $0x4e8] sm:$0xff] }
 0x129   : > { %1580 = vmatmul.bf16.gmra.mxu3 %v3550_v11  ;;  %1663 = vmatmul.bf16.gmra.mxu1 %v3552_v16  ;;  %v434_v16 = vunpack.c.h.bf16 %v290_v51  ;;  %v611_v45 = vmul.f32 %v3299_v20, %v433_v25  ;;  %v838_v51 = vld [vmem:[%s4323_s1 + $0x3e8] sm:$0xff] }
 0x12a   : > { %1774 = vmatpush.bf16.msrb.mxu0 %v1066_v0 }
 0x12b   : > { %v1356_v23 = vpop.f32.mrf.mxu2  ;;  %v612_v24 = vmul.f32 %v3304_v61, %v434_v16 }
 0x12c   : > { %v1357_v44 = vadd.f32 %v1356_v23, %v3154_v53  ;;  %v1400_v15 = vpop.f32.mrf.mxu3  ;;  %v780_v53 = vld [vmem:[%s4323_s1 + $0x218] sm:$0xff] }
 0x12d   : > { %v1441_v13 = vpop.f32.mrf.mxu0  ;;  %v1082_v0 = vpack.c.bf16 %v780_v53, %v778_v38 }
 0x12e   : > { %v1401_v11 = vadd.f32 %v1400_v15, %v1357_v44  ;;  %v1442_v33 = vadd.f32 %v1441_v13, %v1398_v28  ;;  %v1485_v63 = vpop.f32.mrf.mxu1  ;;  %v600_v28 = vmul.f32 %v3299_v20, %v422_v50  ;;  %v840_v44 = vld [vmem:[%s4323_s1 + $0x3f8] sm:$0xff] }
 0x12f   : > { %1818 = vmatpush.bf16.msrb.mxu1 %v1082_v0  ;;  %v1112_v42 = vpack.c.bf16 %v840_v44, %v838_v51  ;;  %v872_v15 = vld [vmem:[%s4323_s1 + $0x4f8] sm:$0xff]  ;;  %v296_v44 = vld [vmem:[%s2526_s24 + $0x230] sm:$0xff] }
 0x130   : > { %v3579_v23 = vadd.f32 %v1485_v63, %v1442_v33  ;;  %v632_v63 = vmul.f32 %v3227_v58, %v454_v12  ;;  %v601_v33 = vmul.f32 %v3304_v61, %v423_v34  ;;  %v1128_v47 = vpack.c.bf16 %v872_v15, %v870_v59 }
 0x131   : > { %1855 = vmatpush.bf16.msra.mxu2 %v1112_v42  ;;  %v3600_v58 = vpack.c.bf16 %v631_v62, %v620_v32  ;;  %v3602_v12 = vpack.c.bf16 %v611_v45, %v600_v28  ;;  %v225_v32 = vld [vmem:[%s2526_s24 + $0x28] sm:$0xf]  ;;  %v231_v62 = vld [vmem:[%s2526_s24 + $0x54] sm:$0xf]  ;;  %v444_v42 = vunpack.c.l.bf16 %v296_v44 }
 0x132   : > { %1899 = vmatpush.bf16.msra.mxu3 %v1128_v47  ;;  %v3604_v34 = vpack.c.bf16 %v632_v63, %v621_v21  ;;  %v3606_v38 = vpack.c.bf16 %v612_v24, %v601_v33  ;;  %v902_v21 = vld [vmem:[%s4323_s1 + $0x5e8] sm:$0xff]  ;;  %v936_v63 = vld [vmem:[%s4323_s1 + $0x6f8] sm:$0xff]  ;;  %v3631_v33 = vperm.slane %v3284_v49, 2 }
 0x133   : > { %v1358_v50 = vpop.f32.mrf.mxu2  ;;  %v934_v28 = vld [vmem:[%s4323_s1 + $0x6e8] sm:$0xff] }
 0x134   : > { %v1359_v25 = vadd.f32 %v1358_v50, %v3191_v29  ;;  %v1402_v13 = vpop.f32.mrf.mxu3  ;;  %4416 = vst [vmem:[#allocation43_spill] sm:$0xff] %v3604_v34  ;;  %v302_v29 = vld [vmem:[%s2526_s24 + $0x25c] sm:$0xff]  ;;  %v1160_v15 = vpack.c.bf16 %v936_v63, %v934_v28  ;;  %v834_v49 = vld [vmem:[%s4323_s1 + $0x3c8] sm:$0xff]  ;;  %v622_v28 = vmul.f32 %v3299_v20, %v444_v42 }
 0x135   : > { %v1444_v16 = vpop.f32.mrf.mxu0  ;;  %4417 = vst [vmem:[#allocation44_spill] sm:$0xff] %v3606_v38  ;;  %v868_v63 = vld [vmem:[%s4323_s1 + $0x4d8] sm:$0xff] }
 0x136   : > { %v1403_v53 = vadd.f32 %v1402_v13, %v1359_v25  ;;  %v1445_v0 = vadd.f32 %v1444_v16, %v1401_v11  ;;  %v1488_v51 = vpop.f32.mrf.mxu1  ;;  %v904_v11 = vld [vmem:[%s4323_s1 + $0x5f8] sm:$0xff]  ;;  %v455_v25 = vunpack.c.l.bf16 %v302_v29  ;;  %v314_v13 = vunpack.c.l.bf16 %v225_v32  ;;  %1987 = vmatpush.bf16.msra.mxu1 %v1160_v15 }
 0x137   : > { %v1144_v45 = vpack.c.bf16 %v904_v11, %v902_v21  ;;  %v325_v16 = vunpack.c.l.bf16 %v231_v62  ;;  %v456_v21 = vunpack.c.h.bf16 %v302_v29 }
 0x138   : > { %v3609_v59 = vadd.f32 %v1488_v51, %v1445_v0  ;;  %1541 = vmatmul.bf16.gmra.mxu2 %v3600_v58  ;;  %1624 = vmatmul.bf16.gmra.mxu0 %v3602_v12  ;;  %v445_v51 = vunpack.c.h.bf16 %v296_v44  ;;  %v633_v44 = vmul.f32 %v3299_v20, %v455_v25  ;;  %v492_v29 = vmul.f32 %v3631_v33, %v314_v13 }
 0x139   : > { %1585 = vmatmul.bf16.gmra.mxu3 %v3604_v34  ;;  %1668 = vmatmul.bf16.gmra.mxu1 %v3606_v38 }
 0x13a   : > { %1943 = vmatpush.bf16.msra.mxu0 %v1144_v45  ;;  %v866_v45 = vld [vmem:[%s4323_s1 + $0x4c8] sm:$0xff] }
 0x13b   : > { %v1361_v24 = vpop.f32.mrf.mxu2 }
 0x13c   : > { %v1362_v47 = vadd.f32 %v1361_v24, %v3224_v43  ;;  %v1405_v50 = vpop.f32.mrf.mxu3  ;;  %v836_v43 = vld [vmem:[%s4323_s1 + $0x3d8] sm:$0xff]  ;;  %v623_v24 = vmul.f32 %v3304_v61, %v445_v51 }
 0x13d   : > { %v1446_v0 = vpop.f32.mrf.mxu0  ;;  %v1110_v32 = vpack.c.bf16 %v836_v43, %v834_v49  ;;  %v898_v49 = vld [vmem:[%s4323_s1 + $0x5c8] sm:$0xff]  ;;  %v900_v43 = vld [vmem:[%s4323_s1 + $0x5d8] sm:$0xff] }
 0x13e   : > { %v1406_v11 = vadd.f32 %v1405_v50, %v1362_v47  ;;  %v1447_v38 = vadd.f32 %v1446_v0, %v1403_v53  ;;  %v1490_v34 = vpop.f32.mrf.mxu1  ;;  %v503_v53 = vmul.f32 %v3631_v33, %v325_v16  ;;  %v3655_v47 = vpack.c.bf16 %v633_v44, %v622_v28  ;;  %v930_v28 = vld [vmem:[%s4323_s1 + $0x6c8] sm:$0xff] }
 0x13f   : > { %1856 = vmatpush.bf16.msra.mxu2 %v1110_v32  ;;  %v932_v32 = vld [vmem:[%s4323_s1 + $0x6d8] sm:$0xff]  ;;  %v830_v44 = vld [vmem:[%s4323_s1 + $0x3a8] sm:$0xff] }
 0x140   : > { %v3641_v62 = vadd.f32 %v1490_v34, %v1447_v38  ;;  %v634_v34 = vmul.f32 %v3304_v61, %v456_v21  ;;  %v1126_v38 = vpack.c.bf16 %v868_v63, %v866_v45  ;;  %v3657_v50 = vpack.c.bf16 %v503_v53, %v492_v29  ;;  %v237_v61 = vld [vmem:[%s2526_s24 + $0x80] sm:$0xf]  ;;  %v832_v53 = vld [vmem:[%s4323_s1 + $0x3b8] sm:$0xff] }
 0x141   : > { %v1158_v29 = vpack.c.bf16 %v932_v32, %v930_v28 }
 0x142   : > { %1900 = vmatpush.bf16.msra.mxu3 %v1126_v38  ;;  %v3659_v13 = vpack.c.bf16 %v634_v34, %v623_v24  ;;  %v336_v34 = vunpack.c.l.bf16 %v237_v61 }
 0x143   : > { %v1363_v20 = vpop.f32.mrf.mxu2  ;;  %1988 = vmatpush.bf16.msra.mxu1 %v1158_v29 }
 0x144   : > { %v1364_v42 = vadd.f32 %v1363_v20, %v3259_v52  ;;  %v1407_v15 = vpop.f32.mrf.mxu3  ;;  %v243_v52 = vld [vmem:[%s2526_s24 + $0xac] sm:$0xf]  ;;  %v514_v61 = vmul.f32 %v3631_v33, %v336_v34 }
 0x145   : > { %v1449_v25 = vpop.f32.mrf.mxu0  ;;  %v347_v38 = vunpack.c.l.bf16 %v243_v52 }
 0x146   : > { %v1408_v16 = vadd.f32 %v1407_v15, %v1364_v42  ;;  %v1450_v0 = vadd.f32 %v1449_v25, %v1406_v11  ;;  %v1493_v51 = vpop.f32.mrf.mxu1  ;;  %v1142_v11 = vpack.c.bf16 %v900_v43, %v898_v49 }
 0x147   : > { %v525_v52 = vmul.f32 %v3631_v33, %v347_v38  ;;  %v926_v38 = vld [vmem:[%s4323_s1 + $0x6a8] sm:$0xff] }
 0x148   : > { %v3662_v21 = vadd.f32 %v1493_v51, %v1450_v0  ;;  %1629 = vmatmul.bf16.gmra.mxu0 %v3655_v47  ;;  %2304 = vmatmul.msk.bf16.vlgmr.msrb.gmra.mxu2 %vm1217_vm8, %v3657_v50  ;;  %v862_v0 = vld [vmem:[%s4323_s1 + $0x4a8] sm:$0xff]  ;;  %v864_v51 = vld [vmem:[%s4323_s1 + $0x4b8] sm:$0xff] }
 0x149   : > { %1673 = vmatmul.bf16.gmra.mxu1 %v3659_v13  ;;  %1731 = vmatmul.bf16.vlgmr.msrb.gmra.mxu3 %v2645_v2  ;;  %v1108_v2 = vpack.c.bf16 %v832_v53, %v830_v44  ;;  %v1124_v49 = vpack.c.bf16 %v864_v51, %v862_v0  ;;  %v3700_v28 = vpack.c.bf16 %v525_v52, %v514_v61 }
 0x14a   : > { %1944 = vmatpush.bf16.msra.mxu0 %v1142_v11 }
 0x14b   : > { %v1366_v45 = vpop.f32.mrf.mxu2  ;;  %1857 = vmatpush.bf16.msra.mxu2 %v1108_v2  ;;  %1901 = vmatpush.bf16.msra.mxu3 %v1124_v49  ;;  %v896_v2 = vld [vmem:[%s4323_s1 + $0x5b8] sm:$0xff] }
 0x14c   : > { %v1367_v63 = vadd.f32 %v1366_v45, %v3301_v18  ;;  %v1410_v24 = vpop.f32.mrf.mxu3  ;;  %v894_v45 = vld [vmem:[%s4323_s1 + $0x5a8] sm:$0xff] }
 0x14d   : > { %v1451_v20 = vpop.f32.mrf.mxu0 }
 0x14e   : > { %v1411_v42 = vadd.f32 %v1410_v24, %v1367_v63  ;;  %v1452_v15 = vadd.f32 %v1451_v20, %v1408_v16  ;;  %v1495_v25 = vpop.f32.mrf.mxu1  ;;  %v249_v63 = vld [vmem:[%s2526_s24 + $0xd8] sm:$0xf]  ;;  %v1140_v24 = vpack.c.bf16 %v896_v2, %v894_v45 }
 0x14f   : > { %v928_v20 = vld [vmem:[%s4323_s1 + $0x6b8] sm:$0xff]  ;;  %v358_v52 = vunpack.c.l.bf16 %v249_v63 }
 0x150   : > { %v3695_v18 = vadd.f32 %v1495_v25, %v1452_v15  ;;  %v826_v15 = vld [vmem:[%s4323_s1 + $0x388] sm:$0xff]  ;;  %1945 = vmatpush.bf16.msra.mxu0 %v1140_v24 }
 0x151   : > { %v858_v25 = vld [vmem:[%s4323_s1 + $0x488] sm:$0xff]  ;;  %v536_v45 = vmul.f32 %v3631_v33, %v358_v52  ;;  %v267_v52 = vld [vmem:[%s2526_s24 + $0x15c] sm:$0xf] }
 0x152   : > { %v890_v24 = vld [vmem:[%s4323_s1 + $0x588] sm:$0xff] }
 0x153   : > { %v1368_v16 = vpop.f32.mrf.mxu2 }
 0x154   : > { %v1369_v43 = vadd.f32 %v1368_v16, %v3326_v48  ;;  %v1412_v11 = vpop.f32.mrf.mxu3  ;;  %v255_v48 = vld [vmem:[%s2526_s24 + $0x104] sm:$0xf] }
 0x155   : > { %v1454_v32 = vpop.f32.mrf.mxu0  ;;  %v369_v16 = vunpack.c.l.bf16 %v255_v48 }
 0x156   : > { %v1413_v44 = vadd.f32 %v1412_v11, %v1369_v43  ;;  %v1455_v29 = vadd.f32 %v1454_v32, %v1411_v42  ;;  %v1498_v53 = vpop.f32.mrf.mxu1  ;;  %v1156_v42 = vpack.c.bf16 %v928_v20, %v926_v38 }
 0x157   : > { %v547_v2 = vmul.f32 %v3631_v33, %v369_v16 }
 0x158   : > { %v3709_v34 = vadd.f32 %v1498_v53, %v1455_v29  ;;  %2305 = vmatmul.msk.bf16.gmra.mxu2 %vm1217_vm8, %v3700_v28  ;;  %1775 = vmatmul.bf16.vlgmr.msrb.gmra.mxu0 %v2649_v6  ;;  %v828_v6 = vld [vmem:[%s4323_s1 + $0x398] sm:$0xff] }
 0x159   : > { %1736 = vmatmul.bf16.gmra.mxu3 %v2735_v1  ;;  %1819 = vmatmul.bf16.vlgmr.msrb.gmra.mxu1 %v2863_v40  ;;  %v1106_v0 = vpack.c.bf16 %v828_v6, %v826_v15  ;;  %v860_v1 = vld [vmem:[%s4323_s1 + $0x498] sm:$0xff]  ;;  %v3747_v20 = vpack.c.bf16 %v547_v2, %v536_v45  ;;  %v391_v2 = vunpack.c.l.bf16 %v267_v52 }
 0x15a   : > { %1989 = vmatpush.bf16.msra.mxu1 %v1156_v42  ;;  %v1122_v51 = vpack.c.bf16 %v860_v1, %v858_v25  ;;  %v924_v1 = vld [vmem:[%s4323_s1 + $0x698] sm:$0xff] }
 0x15b   : > { %v1512_v40 = vpop.f32.mrf.mxu2  ;;  %1858 = vmatpush.bf16.msra.mxu2 %v1106_v0  ;;  %v922_v0 = vld [vmem:[%s4323_s1 + $0x688] sm:$0xff] }
 0x15c   : > { %v1513_v49 = vadd.f32 %v1512_v40, %v3394_v5  ;;  %v1556_v61 = vpop.f32.mrf.mxu3  ;;  %1902 = vmatpush.bf16.msra.mxu3 %v1122_v51  ;;  %v892_v5 = vld [vmem:[%s4323_s1 + $0x598] sm:$0xff]  ;;  %v1154_v40 = vpack.c.bf16 %v924_v1, %v922_v0 }
 0x15d   : > { %v1456_v43 = vpop.f32.mrf.mxu0  ;;  %v1138_v63 = vpack.c.bf16 %v892_v5, %v890_v24 }
 0x15e   : > { %v1557_v11 = vadd.f32 %v1556_v61, %v1513_v49  ;;  %v1457_v32 = vadd.f32 %v1456_v43, %v1413_v44  ;;  %v1500_v29 = vpop.f32.mrf.mxu1  ;;  %v822_v49 = vld [vmem:[%s4323_s1 + $0x368] sm:$0xff]  ;;  %v824_v61 = vld [vmem:[%s4323_s1 + $0x378] sm:$0xff]  ;;  %1990 = vmatpush.bf16.msra.mxu1 %v1154_v40 }
 0x15f   : > { %1946 = vmatpush.bf16.msra.mxu0 %v1138_v63  ;;  %v1104_v16 = vpack.c.bf16 %v824_v61, %v822_v49  ;;  %v854_v43 = vld [vmem:[%s4323_s1 + $0x468] sm:$0xff] }
 0x160   : > { %v3736_v53 = vadd.f32 %v1500_v29, %v1457_v32 }
 0x161   : > { %1859 = vmatpush.bf16.msra.mxu2 %v1104_v16 }
 0x163   : > { %v1514_v48 = vpop.f32.mrf.mxu2 }
 0x164   : > { %v1515_v44 = vadd.f32 %v1514_v48, %v3417_v30  ;;  %v1558_v38 = vpop.f32.mrf.mxu3  ;;  %v261_v30 = vld [vmem:[%s2526_s24 + $0x130] sm:$0xf] }
 0x165   : > { %v1600_v42 = vpop.f32.mrf.mxu0 }
 0x166   : > { %v1559_v15 = vadd.f32 %v1558_v38, %v1515_v44  ;;  %v1601_v6 = vadd.f32 %v1600_v42, %v1557_v11  ;;  %v1644_v25 = vpop.f32.mrf.mxu1  ;;  %v569_v38 = vmul.f32 %v3631_v33, %v391_v2  ;;  %v886_v42 = vld [vmem:[%s4323_s1 + $0x568] sm:$0xff]  ;;  %v279_v2 = vld [vmem:[%s2526_s24 + $0x1b4] sm:$0xf] }
 0x168   : > { %v3755_v51 = vadd.f32 %v1644_v25, %v1601_v6  ;;  %2306 = vmatmul.msk.bf16.gmra.mxu2 %vm1217_vm8, %v3747_v20  ;;  %1780 = vmatmul.bf16.gmra.mxu0 %v2745_v9  ;;  %v856_v9 = vld [vmem:[%s4323_s1 + $0x478] sm:$0xff]  ;;  %v918_v6 = vld [vmem:[%s4323_s1 + $0x668] sm:$0xff] }
 0x169   : > { %1741 = vmatmul.bf16.gmra.mxu3 %v2801_v54  ;;  %1824 = vmatmul.bf16.gmra.mxu1 %v2921_v31  ;;  %v1120_v11 = vpack.c.bf16 %v856_v9, %v854_v43  ;;  %v380_v54 = vunpack.c.l.bf16 %v261_v30  ;;  %v920_v25 = vld [vmem:[%s4323_s1 + $0x678] sm:$0xff]  ;;  %v818_v9 = vld [vmem:[%s4323_s1 + $0x348] sm:$0xff] }
 0x16a   : > { %v1152_v0 = vpack.c.bf16 %v920_v25, %v918_v6  ;;  %v882_v25 = vld [vmem:[%s4323_s1 + $0x548] sm:$0xff] }
 0x16b   : > { %v1517_v32 = vpop.f32.mrf.mxu2  ;;  %1903 = vmatpush.bf16.msra.mxu3 %v1120_v11  ;;  %v558_v44 = vmul.f32 %v3631_v33, %v380_v54  ;;  %v820_v11 = vld [vmem:[%s4323_s1 + $0x358] sm:$0xff]  ;;  %v273_v54 = vld [vmem:[%s2526_s24 + $0x188] sm:$0xf] }
 0x16c   : > { %v1518_v29 = vadd.f32 %v1517_v32, %v3447_v14  ;;  %v1561_v45 = vpop.f32.mrf.mxu3  ;;  %v888_v14 = vld [vmem:[%s4323_s1 + $0x578] sm:$0xff]  ;;  %1991 = vmatpush.bf16.msra.mxu1 %v1152_v0  ;;  %v1102_v32 = vpack.c.bf16 %v820_v11, %v818_v9  ;;  %v914_v0 = vld [vmem:[%s4323_s1 + $0x648] sm:$0xff] }
 0x16d   : > { %v1602_v31 = vpop.f32.mrf.mxu0  ;;  %v3794_v49 = vpack.c.bf16 %v569_v38, %v558_v44  ;;  %v413_v44 = vunpack.c.l.bf16 %v279_v2 }
 0x16e   : > { %v1562_v24 = vadd.f32 %v1561_v45, %v1518_v29  ;;  %v1603_v5 = vadd.f32 %v1602_v31, %v1559_v15  ;;  %v1646_v63 = vpop.f32.mrf.mxu1  ;;  %v1136_v15 = vpack.c.bf16 %v888_v14, %v886_v42  ;;  %v850_v29 = vld [vmem:[%s4323_s1 + $0x448] sm:$0xff]  ;;  %v852_v45 = vld [vmem:[%s4323_s1 + $0x458] sm:$0xff]  ;;  %1860 = vmatpush.bf16.msra.mxu2 %v1102_v32 }
 0x16f   : > { %v1118_v31 = vpack.c.bf16 %v852_v45, %v850_v29 }
 0x170   : > { %v3777_v48 = vadd.f32 %v1646_v63, %v1603_v5  ;;  %1947 = vmatpush.bf16.msra.mxu0 %v1136_v15  ;;  %v402_v63 = vunpack.c.l.bf16 %v273_v54 }
 0x171   : > { %1904 = vmatpush.bf16.msra.mxu3 %v1118_v31  ;;  %v846_v31 = vld [vmem:[%s4323_s1 + $0x428] sm:$0xff] }
 0x173   : > { %v1519_v1 = vpop.f32.mrf.mxu2 }
 0x174   : > { %v1520_v40 = vadd.f32 %v1519_v1, %v3465_v19  ;;  %v1563_v30 = vpop.f32.mrf.mxu3 }
 0x175   : > { %v1605_v61 = vpop.f32.mrf.mxu0 }
 0x176   : > { %v1564_v52 = vadd.f32 %v1563_v30, %v1520_v40  ;;  %v1606_v16 = vadd.f32 %v1605_v61, %v1562_v24  ;;  %v1649_v43 = vpop.f32.mrf.mxu1  ;;  %v916_v40 = vld [vmem:[%s4323_s1 + $0x658] sm:$0xff]  ;;  %v814_v30 = vld [vmem:[%s4323_s1 + $0x328] sm:$0xff] }
 0x177   : > { %v816_v61 = vld [vmem:[%s4323_s1 + $0x338] sm:$0xff] }
 0x178   : > { %v3802_v19 = vadd.f32 %v1649_v43, %v1606_v16  ;;  %2307 = vmatmul.msk.bf16.gmra.mxu2 %vm1217_vm8, %v3794_v49  ;;  %1785 = vmatmul.bf16.gmra.mxu0 %v2805_v56  ;;  %v1100_v16 = vpack.c.bf16 %v816_v61, %v814_v30  ;;  %v912_v30 = vld [vmem:[%s4323_s1 + $0x638] sm:$0xff]  ;;  %v810_v61 = vld [vmem:[%s4323_s1 + $0x308] sm:$0xff] }
 0x179   : > { %1746 = vmatmul.bf16.gmra.mxu3 %v2861_v39  ;;  %1829 = vmatmul.bf16.gmra.mxu1 %v2975_v26  ;;  %v580_v39 = vmul.f32 %v3631_v33, %v402_v63  ;;  %v591_v26 = vmul.f32 %v3631_v33, %v413_v44  ;;  %v291_v63 = vld [vmem:[%s2526_s24 + $0x20c] sm:$0xf] }
 0x17a   : > { %1861 = vmatpush.bf16.msra.mxu2 %v1100_v16  ;;  %v812_v16 = vld [vmem:[%s4323_s1 + $0x318] sm:$0xff] }
 0x17b   : > { %v1522_v24 = vpop.f32.mrf.mxu2  ;;  %v3841_v32 = vpack.c.bf16 %v591_v26, %v580_v39 }
 0x17c   : > { %v1523_v56 = vadd.f32 %v1522_v24, %v3506_v17  ;;  %v1566_v5 = vpop.f32.mrf.mxu3  ;;  %v884_v17 = vld [vmem:[%s4323_s1 + $0x558] sm:$0xff] }
 0x17d   : > { %v1607_v38 = vpop.f32.mrf.mxu0  ;;  %v1134_v1 = vpack.c.bf16 %v884_v17, %v882_v25  ;;  %v848_v24 = vld [vmem:[%s4323_s1 + $0x438] sm:$0xff] }
 0x17e   : > { %v1567_v42 = vadd.f32 %v1566_v5, %v1523_v56  ;;  %v1608_v14 = vadd.f32 %v1607_v38, %v1564_v52  ;;  %v1651_v6 = vpop.f32.mrf.mxu1  ;;  %v1150_v52 = vpack.c.bf16 %v916_v40, %v914_v0  ;;  %v285_v5 = vld [vmem:[%s2526_s24 + $0x1e0] sm:$0xf]  ;;  %v910_v40 = vld [vmem:[%s4323_s1 + $0x628] sm:$0xff] }
 0x17f   : > { %1948 = vmatpush.bf16.msra.mxu0 %v1134_v1 }
 0x180   : > { %v3818_v15 = vadd.f32 %v1651_v6, %v1608_v14  ;;  %1992 = vmatpush.bf16.msra.mxu1 %v1150_v52  ;;  %v424_v14 = vunpack.c.l.bf16 %v285_v5  ;;  %v435_v6 = vunpack.c.l.bf16 %v291_v63  ;;  %v1148_v52 = vpack.c.bf16 %v912_v30, %v910_v40 }
 0x182   : > { %v613_v1 = vmul.f32 %v3631_v33, %v435_v6 }
 0x183   : > { %v1524_v43 = vpop.f32.mrf.mxu2 }
 0x184   : > { %v1525_v9 = vadd.f32 %v1524_v43, %v3525_v35  ;;  %v1568_v11 = vpop.f32.mrf.mxu3  ;;  %v1116_v35 = vpack.c.bf16 %v848_v24, %v846_v31  ;;  %v842_v43 = vld [vmem:[%s4323_s1 + $0x408] sm:$0xff]  ;;  %1993 = vmatpush.bf16.msra.mxu1 %v1148_v52  ;;  %v968_v52 = vld [vmem:[%s4323_s1 + $0x7f8] sm:$0xff] }
 0x185   : > { %v1610_v29 = vpop.f32.mrf.mxu0 }
 0x186   : > { %v1569_v45 = vadd.f32 %v1568_v11, %v1525_v9  ;;  %v1611_v54 = vadd.f32 %v1610_v29, %v1567_v42  ;;  %v1654_v2 = vpop.f32.mrf.mxu1  ;;  %1905 = vmatpush.bf16.msra.mxu3 %v1116_v35  ;;  %v844_v9 = vld [vmem:[%s4323_s1 + $0x418] sm:$0xff]  ;;  %v1098_v11 = vpack.c.bf16 %v812_v16, %v810_v61  ;;  %v966_v61 = vld [vmem:[%s4323_s1 + $0x7e8] sm:$0xff] }
 0x187   : > { %v1114_v29 = vpack.c.bf16 %v844_v9, %v842_v43  ;;  %v998_v16 = vld [vmem:[%s4323_s1 + $0x8e8] sm:$0xff]  ;;  %v1176_v43 = vpack.c.bf16 %v968_v52, %v966_v61  ;;  %v1000_v9 = vld [vmem:[%s4323_s1 + $0x8f8] sm:$0xff] }
 0x188   : > { %v3849_v56 = vadd.f32 %v1654_v2, %v1611_v54  ;;  %2308 = vmatmul.msk.bf16.gmra.mxu2 %vm1217_vm8, %v3841_v32  ;;  %1790 = vmatmul.bf16.gmra.mxu0 %v2865_v46  ;;  %v878_v46 = vld [vmem:[%s4323_s1 + $0x528] sm:$0xff] }
 0x189   : > { %1751 = vmatmul.bf16.gmra.mxu3 %v2647_v3  ;;  %1834 = vmatmul.bf16.gmra.mxu1 %v3023_v22  ;;  %v880_v3 = vld [vmem:[%s4323_s1 + $0x538] sm:$0xff] }
 0x18a   : > { %v1132_v22 = vpack.c.bf16 %v880_v3, %v878_v46  ;;  %1862 = vmatpush.bf16.msra.mxu2 %v1098_v11  ;;  %1906 = vmatpush.bf16.msra.mxu3 %v1114_v29  ;;  %v1192_v11 = vpack.c.bf16 %v1000_v9, %v998_v16  ;;  %v1026_v9 = vld [vmem:[%s4323_s1 + $0x9c8] sm:$0xff] }
 0x18b   : > { %v1527_v44 = vpop.f32.mrf.mxu2 }
 0x18c   : > { %v1528_v38 = vadd.f32 %v1527_v44, %v3554_v36  ;;  %v1571_v42 = vpop.f32.mrf.mxu3  ;;  %v602_v36 = vmul.f32 %v3631_v33, %v424_v14  ;;  %1949 = vmatpush.bf16.msra.mxu0 %v1132_v22  ;;  %v876_v14 = vld [vmem:[%s4323_s1 + $0x518] sm:$0xff]  ;;  %v906_v22 = vld [vmem:[%s4323_s1 + $0x608] sm:$0xff] }
 0x18d   : > { %v1612_v39 = vpop.f32.mrf.mxu0 }
 0x18e   : > { %v1572_v26 = vadd.f32 %v1571_v42, %v1528_v38  ;;  %v1613_v25 = vadd.f32 %v1612_v39, %v1569_v45  ;;  %v1656_v17 = vpop.f32.mrf.mxu1  ;;  %v3888_v31 = vpack.c.bf16 %v613_v1, %v602_v36  ;;  %v297_v38 = vld [vmem:[%s2526_s24 + $0x238] sm:$0xf]  ;;  %v874_v42 = vld [vmem:[%s4323_s1 + $0x508] sm:$0xff]  ;;  %2031 = vmatpush.bf16.msrb.mxu2 %v1176_v43  ;;  %2075 = vmatpush.bf16.msrb.mxu3 %v1192_v11 }
 0x18f   : > { %v1130_v6 = vpack.c.bf16 %v876_v14, %v874_v42  ;;  %v908_v36 = vld [vmem:[%s4323_s1 + $0x618] sm:$0xff] }
 0x190   : > { %v3865_v0 = vadd.f32 %v1656_v17, %v1613_v25  ;;  %v1146_v1 = vpack.c.bf16 %v908_v36, %v906_v22  ;;  %v1028_v11 = vld [vmem:[%s4323_s1 + $0x9d8] sm:$0xff] }
 0x191   : > { %1950 = vmatpush.bf16.msra.mxu0 %v1130_v6 }
 0x192   : > { %1994 = vmatpush.bf16.msra.mxu1 %v1146_v1 }
 0x193   : > { %v1529_v45 = vpop.f32.mrf.mxu2 }
 0x194   : > { %v1530_v54 = vadd.f32 %v1529_v45, %v3579_v23  ;;  %v1573_v2 = vpop.f32.mrf.mxu3  ;;  %v303_v23 = vld [vmem:[%s2526_s24 + $0x264] sm:$0xf] }
 0x195   : > { %v1615_v24 = vpop.f32.mrf.mxu0  ;;  %v457_v17 = vunpack.c.l.bf16 %v303_v23  ;;  %v1046_v23 = vld [vmem:[%s4323_s1 + $0xa68] sm:$0xff] }
 0x196   : > { %v1574_v35 = vadd.f32 %v1573_v2, %v1530_v54  ;;  %v1616_v5 = vadd.f32 %v1615_v24, %v1572_v26  ;;  %v1659_v63 = vpop.f32.mrf.mxu1 }
 0x197   : > { %v635_v30 = vmul.f32 %v3631_v33, %v457_v17  ;;  %v962_v17 = vld [vmem:[%s4323_s1 + $0x7c8] sm:$0xff] }
 0x198   : > { %v3890_v44 = vadd.f32 %v1659_v63, %v1616_v5  ;;  %2309 = vmatmul.msk.bf16.gmra.mxu2 %vm1217_vm8, %v3888_v31  ;;  %1795 = vmatmul.bf16.gmra.mxu0 %v2651_v7  ;;  %v446_v7 = vunpack.c.l.bf16 %v297_v38  ;;  %v1032_v38 = vld [vmem:[%s4323_s1 + $0x9f8] sm:$0xff] }
 0x199   : > { %1756 = vmatmul.bf16.gmra.mxu3 %v2737_v4  ;;  %1839 = vmatmul.bf16.gmra.mxu1 %v3071_v37 }
 0x19b   : > { %v1532_v39 = vpop.f32.mrf.mxu2 }
 0x19c   : > { %v1533_v26 = vadd.f32 %v1532_v39, %v3609_v59  ;;  %v1576_v25 = vpop.f32.mrf.mxu3  ;;  %v624_v59 = vmul.f32 %v3631_v33, %v446_v7 }
 0x19d   : > { %v1617_v4 = vpop.f32.mrf.mxu0 }
 0x19e   : > { %v1577_v46 = vadd.f32 %v1576_v25, %v1533_v26  ;;  %v1618_v37 = vadd.f32 %v1617_v4, %v1574_v35  ;;  %v1661_v3 = vpop.f32.mrf.mxu1  ;;  %v3929_v54 = vpack.c.bf16 %v635_v30, %v624_v59  ;;  %v964_v4 = vld [vmem:[%s4323_s1 + $0x7d8] sm:$0xff] }
 0x1a0   : > { %v3912_v40 = vadd.f32 %v1661_v3, %v1618_v37  ;;  %v996_v3 = vld [vmem:[%s4323_s1 + $0x8d8] sm:$0xff] }
 0x1a3   : > { %v1534_v33 = vpop.f32.mrf.mxu2 }
 0x1a4   : > { %v1535_v29 = vadd.f32 %v1534_v33, %v3641_v62  ;;  %v1578_v45 = vpop.f32.mrf.mxu3  ;;  %v1030_v62 = vld [vmem:[%s4323_s1 + $0x9e8] sm:$0xff]  ;;  %v4419_v33 = vld [vmem:[#allocation2_spill] sm:$0xff] }
 0x1a5   : > { %v1620_v2 = vpop.f32.mrf.mxu0  ;;  %v1208_v42 = vpack.c.bf16 %v1032_v38, %v1030_v62 }
 0x1a6   : > { %v1579_v24 = vadd.f32 %v1578_v45, %v1535_v29  ;;  %v1621_v35 = vadd.f32 %v1620_v2, %v1577_v46  ;;  %v1664_v5 = vpop.f32.mrf.mxu1  ;;  %v1174_v46 = vpack.c.bf16 %v964_v4, %v962_v17  ;;  %v1206_v29 = vpack.c.bf16 %v1028_v11, %v1026_v9  ;;  %v958_v45 = vld [vmem:[%s4323_s1 + $0x7a8] sm:$0xff]  ;;  %v1024_v4 = vld [vmem:[%s4323_s1 + $0x9b8] sm:$0xff] }
 0x1a7   : > { %2119 = vmatpush.bf16.msrb.mxu0 %v1208_v42  ;;  %v990_v42 = vld [vmem:[%s4323_s1 + $0x8a8] sm:$0xff]  ;;  %v988_v11 = vld [vmem:[%s4323_s1 + $0x898] sm:$0xff] }
 0x1a8   : > { %v3931_v63 = vadd.f32 %v1664_v5, %v1621_v35  ;;  %2310 = vmatmul.msk.bf16.gmra.mxu2 %vm1217_vm8, %v3929_v54  ;;  %1800 = vmatmul.bf16.gmra.mxu0 %v2747_v10  ;;  %v1048_v10 = vld [vmem:[%s4323_s1 + $0xa78] sm:$0xff]  ;;  %v1022_v17 = vld [vmem:[%s4323_s1 + $0x9a8] sm:$0xff] }
 0x1a9   : > { %1761 = vmatmul.bf16.gmra.mxu3 %v2803_v55  ;;  %1844 = vmatmul.bf16.gmra.mxu1 %v3128_v60  ;;  %v1216_v14 = vpack.c.bf16 %v1048_v10, %v1046_v23  ;;  %v992_v10 = vld [vmem:[%s4323_s1 + $0x8b8] sm:$0xff] }
 0x1aa   : > { %2032 = vmatpush.bf16.msrb.mxu2 %v1174_v46  ;;  %v1204_v46 = vpack.c.bf16 %v1024_v4, %v1022_v17  ;;  %v982_v17 = vld [vmem:[%s4323_s1 + $0x868] sm:$0xff]  ;;  %v984_v4 = vld [vmem:[%s4323_s1 + $0x878] sm:$0xff] }
 0x1ab   : > { %v1537_v55 = vpop.f32.mrf.mxu2  ;;  %2167 = vmatpush.bf16.msrb.mxu1 %v1216_v14  ;;  %2120 = vmatpush.bf16.msrb.mxu0 %v1206_v29 }
 0x1ac   : > { %v1538_v60 = vadd.f32 %v1537_v55, %v3662_v21  ;;  %v1581_v6 = vpop.f32.mrf.mxu3  ;;  %v994_v21 = vld [vmem:[%s4323_s1 + $0x8c8] sm:$0xff]  ;;  %v1188_v55 = vpack.c.bf16 %v992_v10, %v990_v42 }
 0x1ad   : > { %v1622_v39 = vpop.f32.mrf.mxu0  ;;  %v1190_v22 = vpack.c.bf16 %v996_v3, %v994_v21  ;;  %v4420_v3 = vld [vmem:[#allocation3_spill] sm:$0xff] }
 0x1ae   : > { %v1582_v26 = vadd.f32 %v1581_v6, %v1538_v60  ;;  %v1623_v25 = vadd.f32 %v1622_v39, %v1579_v24  ;;  %v1666_v7 = vpop.f32.mrf.mxu1 }
 0x1af   : > { %2076 = vmatpush.bf16.msrb.mxu3 %v1190_v22  ;;  %v4421_v22 = vld [vmem:[#allocation4_spill] sm:$0xff]  ;;  %2121 = vmatpush.bf16.msrb.mxu0 %v1204_v46  ;;  %v1184_v46 = vpack.c.bf16 %v984_v4, %v982_v17  ;;  %v1010_v17 = vld [vmem:[%s4323_s1 + $0x948] sm:$0xff]  ;;  %v1012_v4 = vld [vmem:[%s4323_s1 + $0x958] sm:$0xff] }
 0x1b0   : > { %v3957_v37 = vadd.f32 %v1666_v7, %v1623_v25 }
 0x1b3   : > { %v1539_v36 = vpop.f32.mrf.mxu2  ;;  %2077 = vmatpush.bf16.msrb.mxu3 %v1188_v55 }
 0x1b4   : > { %v1540_v1 = vadd.f32 %v1539_v36, %v3695_v18  ;;  %v1583_v59 = vpop.f32.mrf.mxu3  ;;  %v4418_v18 = vld [vmem:[#allocation17_spill] sm:$0xff] }
 0x1b5   : > { %v1625_v30 = vpop.f32.mrf.mxu0  ;;  %v1044_v36 = vld [vmem:[%s4323_s1 + $0xa58] sm:$0xff] }
 0x1b6   : > { %v1584_v61 = vadd.f32 %v1583_v59, %v1540_v1  ;;  %v1626_v52 = vadd.f32 %v1625_v30, %v1582_v26  ;;  %v1669_v16 = vpop.f32.mrf.mxu1  ;;  %v4422_v1 = vld [vmem:[#allocation5_spill] sm:$0xff]  ;;  %v4423_v59 = vld [vmem:[#allocation22_spill] sm:$0xff] }
 0x1b8   : > { %v3966_v43 = vadd.f32 %v1669_v16, %v1626_v52  ;;  %1805 = vmatmul.bf16.gmra.mxu0 %v2807_v57  ;;  %1863 = vmatmul.bf16.vlgmr.msra.gmra.mxu2 %v2867_v41  ;;  %v960_v57 = vld [vmem:[%s4323_s1 + $0x7b8] sm:$0xff]  ;;  %v986_v16 = vld [vmem:[%s4323_s1 + $0x888] sm:$0xff] }
 0x1b9   : > { %1849 = vmatmul.bf16.gmra.mxu1 %v4418_v18  ;;  %1907 = vmatmul.bf16.vlgmr.msra.gmra.mxu3 %v4419_v33  ;;  %v1172_v41 = vpack.c.bf16 %v960_v57, %v958_v45  ;;  %v956_v52 = vld [vmem:[%s4323_s1 + $0x798] sm:$0xff]  ;;  %v1186_v33 = vpack.c.bf16 %v988_v11, %v986_v16 }
 0x1bb   : > { %v1542_v2 = vpop.f32.mrf.mxu2  ;;  %2033 = vmatpush.bf16.msrb.mxu2 %v1172_v41  ;;  %2078 = vmatpush.bf16.msrb.mxu3 %v1186_v33 }
 0x1bc   : > { %v1543_v24 = vadd.f32 %v1542_v2, %v3709_v34  ;;  %v1586_v35 = vpop.f32.mrf.mxu3 }
 0x1bd   : > { %v1627_v5 = vpop.f32.mrf.mxu0 }
 0x1be   : > { %v1587_v62 = vadd.f32 %v1586_v35, %v1543_v24  ;;  %v1628_v38 = vadd.f32 %v1627_v5, %v1584_v61  ;;  %v1671_v23 = vpop.f32.mrf.mxu1  ;;  %v954_v61 = vld [vmem:[%s4323_s1 + $0x788] sm:$0xff]  ;;  %v1020_v5 = vld [vmem:[%s4323_s1 + $0x998] sm:$0xff] }
 0x1bf   : > { %v1170_v9 = vpack.c.bf16 %v956_v52, %v954_v61  ;;  %v1018_v35 = vld [vmem:[%s4323_s1 + $0x988] sm:$0xff]  ;;  %2079 = vmatpush.bf16.msrb.mxu3 %v1184_v46  ;;  %v1016_v52 = vld [vmem:[%s4323_s1 + $0x978] sm:$0xff]  ;;  %v1198_v46 = vpack.c.bf16 %v1012_v4, %v1010_v17 }
 0x1c0   : > { %v3991_v14 = vadd.f32 %v1671_v23, %v1628_v38  ;;  %v1014_v61 = vld [vmem:[%s4323_s1 + $0x968] sm:$0xff] }
 0x1c1   : > { %2034 = vmatpush.bf16.msrb.mxu2 %v1170_v9  ;;  %v1200_v16 = vpack.c.bf16 %v1016_v52, %v1014_v61  ;;  %v1040_v9 = vld [vmem:[%s4323_s1 + $0xa38] sm:$0xff] }
 0x1c3   : > { %v1544_v34 = vpop.f32.mrf.mxu2 }
 0x1c4   : > { %v1545_v60 = vadd.f32 %v1544_v34, %v3736_v53  ;;  %v1588_v6 = vpop.f32.mrf.mxu3  ;;  %v1042_v53 = vld [vmem:[%s4323_s1 + $0xa48] sm:$0xff] }
 0x1c5   : > { %v1630_v39 = vpop.f32.mrf.mxu0  ;;  %v1214_v30 = vpack.c.bf16 %v1044_v36, %v1042_v53 }
 0x1c6   : > { %v1589_v26 = vadd.f32 %v1588_v6, %v1545_v60  ;;  %v1631_v25 = vadd.f32 %v1630_v39, %v1587_v62  ;;  %v1674_v7 = vpop.f32.mrf.mxu1  ;;  %v1202_v62 = vpack.c.bf16 %v1020_v5, %v1018_v35  ;;  %v4424_v60 = vld [vmem:[#allocation6_spill] sm:$0xff]  ;;  %v4425_v6 = vld [vmem:[#allocation7_spill] sm:$0xff]  ;;  %v948_v35 = vld [vmem:[%s4323_s1 + $0x758] sm:$0xff] }
 0x1c7   : > { %2168 = vmatpush.bf16.msrb.mxu1 %v1214_v30  ;;  %v950_v39 = vld [vmem:[%s4323_s1 + $0x768] sm:$0xff] }
 0x1c8   : > { %v4000_v21 = vadd.f32 %v1674_v7, %v1631_v25  ;;  %1868 = vmatmul.bf16.gmra.mxu2 %v4420_v3  ;;  %1951 = vmatmul.bf16.vlgmr.msra.gmra.mxu0 %v4421_v22  ;;  %v4427_v25 = vld [vmem:[#allocation25_spill] sm:$0xff] }
 0x1c9   : > { %1912 = vmatmul.bf16.gmra.mxu3 %v4422_v1  ;;  %1995 = vmatmul.bf16.vlgmr.msra.gmra.mxu1 %v4423_v59 }
 0x1ca   : > { %2122 = vmatpush.bf16.msrb.mxu0 %v1202_v62 }
 0x1cb   : > { %v1688_v18 = vpop.f32.mrf.mxu2 }
 0x1cc   : > { %v1689_v29 = vadd.f32 %v1688_v18, %v3755_v51  ;;  %v1732_v45 = vpop.f32.mrf.mxu3 }
 0x1cd   : > { %v1632_v57 = vpop.f32.mrf.mxu0 }
 0x1ce   : > { %2207 = vst [vmem:[%s4028_s30] sm:$0xff] %v1689_v29  ;;  %v1633_v41 = vadd.f32 %v1632_v57, %v1589_v26  ;;  %v1676_v2 = vpop.f32.mrf.mxu1  ;;  %v4426_v26 = vld [vmem:[#allocation8_spill] sm:$0xff]  ;;  %2123 = vmatpush.bf16.msrb.mxu0 %v1200_v16  ;;  %v976_v16 = vld [vmem:[%s4323_s1 + $0x838] sm:$0xff] }
 0x1d0   : > { %v4032_v24 = vadd.f32 %v1676_v2, %v1633_v41  ;;  %v946_v2 = vld [vmem:[%s4323_s1 + $0x748] sm:$0xff] }
 0x1d1   : > { %v1166_v5 = vpack.c.bf16 %v948_v35, %v946_v2 }
 0x1d2   : > { %2124 = vmatpush.bf16.msrb.mxu0 %v1198_v46 }
 0x1d3   : > { %v1690_v51 = vpop.f32.mrf.mxu2 }
 0x1d4   : > { %v1691_v38 = vadd.f32 %v1690_v51, %v3777_v48  ;;  %v1734_v23 = vpop.f32.mrf.mxu3  ;;  %v952_v48 = vld [vmem:[%s4323_s1 + $0x778] sm:$0xff] }
 0x1d5   : > { %v1776_v42 = vpop.f32.mrf.mxu0  ;;  %v1168_v7 = vpack.c.bf16 %v952_v48, %v950_v39  ;;  %v4428_v51 = vld [vmem:[#allocation9_spill] sm:$0xff] }
 0x1d6   : > { %2210 = vst [vmem:[%s4028_s30 + $0x10] sm:$0xff] %v1691_v38  ;;  %v1777_v10 = vadd.f32 %v1776_v42, %v1732_v45  ;;  %v1820_v55 = vpop.f32.mrf.mxu1  ;;  %v978_v38 = vld [vmem:[%s4323_s1 + $0x848] sm:$0xff] }
 0x1d7   : > { %2035 = vmatpush.bf16.msrb.mxu2 %v1168_v7  ;;  %v4430_v42 = vld [vmem:[#allocation11_spill] sm:$0xff] }
 0x1d8   : > { %v4042_v34 = vadd.f32 %v1820_v55, %v1777_v10  ;;  %1873 = vmatmul.bf16.gmra.mxu2 %v4424_v60  ;;  %1956 = vmatmul.bf16.gmra.mxu0 %v4425_v6  ;;  %v4431_v10 = vld [vmem:[#allocation29_spill] sm:$0xff] }
 0x1d9   : > { %1917 = vmatmul.bf16.gmra.mxu3 %v4426_v26  ;;  %2000 = vmatmul.bf16.gmra.mxu1 %v4427_v25 }
 0x1db   : > { %v1693_v3 = vpop.f32.mrf.mxu2  ;;  %2036 = vmatpush.bf16.msrb.mxu2 %v1166_v5  ;;  %v1006_v5 = vld [vmem:[%s4323_s1 + $0x928] sm:$0xff] }
 0x1dc   : > { %v1694_v22 = vadd.f32 %v1693_v3, %v3802_v19  ;;  %v1737_v53 = vpop.f32.mrf.mxu3  ;;  %v1038_v19 = vld [vmem:[%s4323_s1 + $0xa28] sm:$0xff]  ;;  %v944_v3 = vld [vmem:[%s4323_s1 + $0x738] sm:$0xff] }
 0x1dd   : > { %v1778_v36 = vpop.f32.mrf.mxu0  ;;  %v1212_v11 = vpack.c.bf16 %v1040_v9, %v1038_v19  ;;  %v974_v19 = vld [vmem:[%s4323_s1 + $0x828] sm:$0xff] }
 0x1de   : > { %2212 = vst [vmem:[%s4028_s30 + $0x20] sm:$0xff] %v1694_v22  ;;  %v1779_v1 = vadd.f32 %v1778_v36, %v1734_v23  ;;  %v1822_v59 = vpop.f32.mrf.mxu1  ;;  %v980_v23 = vld [vmem:[%s4323_s1 + $0x858] sm:$0xff]  ;;  %v1180_v9 = vpack.c.bf16 %v976_v16, %v974_v19 }
 0x1df   : > { %2169 = vmatpush.bf16.msrb.mxu1 %v1212_v11  ;;  %v1182_v55 = vpack.c.bf16 %v980_v23, %v978_v38  ;;  %v938_v23 = vld [vmem:[%s4323_s1 + $0x708] sm:$0xff] }
 0x1e0   : > { %v4062_v30 = vadd.f32 %v1822_v59, %v1779_v1 }
 0x1e1   : > { %2080 = vmatpush.bf16.msrb.mxu3 %v1182_v55  ;;  %v970_v55 = vld [vmem:[%s4323_s1 + $0x808] sm:$0xff] }
 0x1e3   : > { %v1695_v18 = vpop.f32.mrf.mxu2 }
 0x1e4   : > { %v1696_v33 = vadd.f32 %v1695_v18, %v3818_v15  ;;  %v1739_v29 = vpop.f32.mrf.mxu3  ;;  %v4429_v15 = vld [vmem:[#allocation10_spill] sm:$0xff]  ;;  %v4432_v18 = vld [vmem:[#allocation12_spill] sm:$0xff] }
 0x1e5   : > { %v1781_v45 = vpop.f32.mrf.mxu0  ;;  %2081 = vmatpush.bf16.msrb.mxu3 %v1180_v9 }
 0x1e6   : > { %2214 = vst [vmem:[%s4028_s30 + $0x30] sm:$0xff] %v1696_v33  ;;  %v1782_v57 = vadd.f32 %v1781_v45, %v1737_v53  ;;  %v1825_v41 = vpop.f32.mrf.mxu1  ;;  %v4434_v33 = vld [vmem:[#allocation14_spill] sm:$0xff] }
 0x1e8   : > { %v4084_v62 = vadd.f32 %v1825_v41, %v1782_v57  ;;  %1878 = vmatmul.bf16.gmra.mxu2 %v4428_v51  ;;  %1961 = vmatmul.bf16.gmra.mxu0 %v4429_v15  ;;  %v1008_v51 = vld [vmem:[%s4323_s1 + $0x938] sm:$0xff] }
 0x1e9   : > { %1922 = vmatmul.bf16.gmra.mxu3 %v4430_v42  ;;  %2005 = vmatmul.bf16.gmra.mxu1 %v4431_v10  ;;  %v1196_v15 = vpack.c.bf16 %v1008_v51, %v1006_v5  ;;  %v940_v10 = vld [vmem:[%s4323_s1 + $0x718] sm:$0xff]  ;;  %v4441_v5 = vld [vmem:[#allocation39_spill] sm:$0xff] }
 0x1eb   : > { %v1698_v60 = vpop.f32.mrf.mxu2  ;;  %2125 = vmatpush.bf16.msrb.mxu0 %v1196_v15 }
 0x1ec   : > { %v1699_v6 = vadd.f32 %v1698_v60, %v3849_v56  ;;  %v1742_v39 = vpop.f32.mrf.mxu3  ;;  %v942_v56 = vld [vmem:[%s4323_s1 + $0x728] sm:$0xff]  ;;  %v972_v60 = vld [vmem:[%s4323_s1 + $0x818] sm:$0xff] }
 0x1ed   : > { %v1783_v48 = vpop.f32.mrf.mxu0  ;;  %v1164_v22 = vpack.c.bf16 %v944_v3, %v942_v56  ;;  %v4435_v3 = vld [vmem:[#allocation15_spill] sm:$0xff] }
 0x1ee   : > { %2216 = vst [vmem:[%s4028_s30 + $0x40] sm:$0xff] %v1699_v6  ;;  %v1784_v26 = vadd.f32 %v1783_v48, %v1739_v29  ;;  %v1827_v25 = vpop.f32.mrf.mxu1  ;;  %v1162_v6 = vpack.c.bf16 %v940_v10, %v938_v23 }
 0x1ef   : > { %2037 = vmatpush.bf16.msrb.mxu2 %v1164_v22  ;;  %v4436_v22 = vld [vmem:[#allocation16_spill] sm:$0xff] }
 0x1f0   : > { %v4098_v7 = vadd.f32 %v1827_v25, %v1784_v26 }
 0x1f3   : > { %v1700_v53 = vpop.f32.mrf.mxu2  ;;  %2038 = vmatpush.bf16.msrb.mxu2 %v1162_v6 }
 0x1f4   : > { %v1701_v36 = vadd.f32 %v1700_v53, %v3865_v0  ;;  %v1744_v1 = vpop.f32.mrf.mxu3  ;;  %v4433_v0 = vld [vmem:[#allocation13_spill] sm:$0xff]  ;;  %v4437_v53 = vld [vmem:[#allocation18_spill] sm:$0xff] }
 0x1f5   : > { %v1786_v59 = vpop.f32.mrf.mxu0 }
 0x1f6   : > { %2218 = vst [vmem:[%s4028_s30 + $0x50] sm:$0xff] %v1701_v36  ;;  %v1787_v61 = vadd.f32 %v1786_v59, %v1742_v39  ;;  %v1830_v52 = vpop.f32.mrf.mxu1  ;;  %v1178_v39 = vpack.c.bf16 %v972_v60, %v970_v55  ;;  %v1004_v36 = vld [vmem:[%s4323_s1 + $0x918] sm:$0xff] }
 0x1f8   : > { %v4120_v11 = vadd.f32 %v1830_v52, %v1787_v61  ;;  %1883 = vmatmul.bf16.gmra.mxu2 %v4432_v18  ;;  %1966 = vmatmul.bf16.gmra.mxu0 %v4433_v0 }
 0x1f9   : > { %1927 = vmatmul.bf16.gmra.mxu3 %v4434_v33  ;;  %2010 = vmatmul.bf16.gmra.mxu1 %v3438_v8  ;;  %v1034_v8 = vld [vmem:[%s4323_s1 + $0xa08] sm:$0xff] }
 0x1fa   : > { %2082 = vmatpush.bf16.msrb.mxu3 %v1178_v39 }
 0x1fb   : > { %v1703_v29 = vpop.f32.mrf.mxu2 }
 0x1fc   : > { %v1704_v45 = vadd.f32 %v1703_v29, %v3890_v44  ;;  %v1747_v57 = vpop.f32.mrf.mxu3  ;;  %v1036_v44 = vld [vmem:[%s4323_s1 + $0xa18] sm:$0xff] }
 0x1fd   : > { %v1788_v41 = vpop.f32.mrf.mxu0  ;;  %v1210_v42 = vpack.c.bf16 %v1036_v44, %v1034_v8 }
 0x1fe   : > { %2220 = vst [vmem:[%s4028_s30 + $0x60] sm:$0xff] %v1704_v45  ;;  %v1789_v2 = vadd.f32 %v1788_v41, %v1744_v1  ;;  %v1832_v35 = vpop.f32.mrf.mxu1 }
 0x1ff   : > { %2170 = vmatpush.bf16.msrb.mxu1 %v1210_v42 }
 0x200   : > { %v4134_v38 = vadd.f32 %v1832_v35, %v1789_v2  ;;  %v4439_v2 = vld [vmem:[#allocation20_spill] sm:$0xff]  ;;  %v4440_v35 = vld [vmem:[#allocation21_spill] sm:$0xff] }
 0x203   : > { %v1705_v48 = vpop.f32.mrf.mxu2 }
 0x204   : > { %v1706_v26 = vadd.f32 %v1705_v48, %v3912_v40  ;;  %v1749_v25 = vpop.f32.mrf.mxu3  ;;  %v1002_v40 = vld [vmem:[%s4323_s1 + $0x908] sm:$0xff] }
 0x205   : > { %v1791_v17 = vpop.f32.mrf.mxu0  ;;  %v1194_v1 = vpack.c.bf16 %v1004_v36, %v1002_v40 }
 0x206   : > { %2222 = vst [vmem:[%s4028_s30 + $0x70] sm:$0xff] %v1706_v26  ;;  %v1792_v4 = vadd.f32 %v1791_v17, %v1747_v57  ;;  %v1835_v56 = vpop.f32.mrf.mxu1  ;;  %v4444_v17 = vld [vmem:[#allocation26_spill] sm:$0xff] }
 0x207   : > { %2126 = vmatpush.bf16.msrb.mxu0 %v1194_v1 }
 0x208   : > { %v4156_v46 = vadd.f32 %v1835_v56, %v1792_v4  ;;  %1888 = vmatmul.bf16.gmra.mxu2 %v4435_v3  ;;  %1971 = vmatmul.bf16.gmra.mxu0 %v4436_v22 }
 0x209   : > { %1932 = vmatmul.bf16.gmra.mxu3 %v4437_v53  ;;  %2015 = vmatmul.bf16.gmra.mxu1 %v3492_v27 }
 0x20b   : > { %v1708_v59 = vpop.f32.mrf.mxu2 }
 0x20c   : > { %v1709_v61 = vadd.f32 %v1708_v59, %v3931_v63  ;;  %v1752_v52 = vpop.f32.mrf.mxu3  ;;  %v4438_v63 = vld [vmem:[#allocation19_spill] sm:$0xff] }
 0x20d   : > { %v1793_v19 = vpop.f32.mrf.mxu0 }
 0x20e   : > { %2224 = vst [vmem:[%s4028_s30 + $0x80] sm:$0xff] %v1709_v61  ;;  %v1794_v16 = vadd.f32 %v1793_v19, %v1749_v25  ;;  %v1837_v9 = vpop.f32.mrf.mxu1  ;;  %v4442_v25 = vld [vmem:[#allocation23_spill] sm:$0xff] }
 0x210   : > { %v4170_v27 = vadd.f32 %v1837_v9, %v1794_v16  ;;  %v4445_v16 = vld [vmem:[#allocation27_spill] sm:$0xff]  ;;  %v4447_v9 = vld [vmem:[#allocation30_spill] sm:$0xff] }
 0x213   : > { %v1710_v18 = vpop.f32.mrf.mxu2 }
 0x214   : > { %v1711_v0 = vadd.f32 %v1710_v18, %v3957_v37  ;;  %v1754_v33 = vpop.f32.mrf.mxu3 }
 0x215   : > { %v1796_v29 = vpop.f32.mrf.mxu0 }
 0x216   : > { %2226 = vst [vmem:[%s4028_s30 + $0x90] sm:$0xff] %v1711_v0  ;;  %v1797_v45 = vadd.f32 %v1796_v29, %v1752_v52  ;;  %v1840_v57 = vpop.f32.mrf.mxu1 }
 0x218   : > { %v4174_v41 = vadd.f32 %v1840_v57, %v1797_v45  ;;  %1893 = vmatmul.bf16.gmra.mxu2 %v4438_v63  ;;  %1976 = vmatmul.bf16.gmra.mxu0 %v4439_v2 }
 0x219   : > { %1937 = vmatmul.bf16.gmra.mxu3 %v4440_v35  ;;  %2020 = vmatmul.bf16.gmra.mxu1 %v4441_v5 }
 0x21b   : > { %v1713_v51 = vpop.f32.mrf.mxu2 }
 0x21c   : > { %v1714_v15 = vadd.f32 %v1713_v51, %v3966_v43  ;;  %v1757_v37 = vpop.f32.mrf.mxu3  ;;  %v4443_v43 = vld [vmem:[#allocation24_spill] sm:$0xff] }
 0x21d   : > { %v1798_v8 = vpop.f32.mrf.mxu0 }
 0x21e   : > { %2228 = vst [vmem:[%s4028_s30 + $0xa0] sm:$0xff] %v1714_v15  ;;  %v1799_v44 = vadd.f32 %v1798_v8, %v1754_v33  ;;  %v1842_v23 = vpop.f32.mrf.mxu1 }
 0x220   : > { %v4182_v42 = vadd.f32 %v1842_v23, %v1799_v44  ;;  %v4450_v23 = vld [vmem:[#allocation33_spill] sm:$0xff] }
 0x223   : > { %v1715_v10 = vpop.f32.mrf.mxu2 }
 0x224   : > { %v1716_v55 = vadd.f32 %v1715_v10, %v3991_v14  ;;  %v1759_v60 = vpop.f32.mrf.mxu3 }
 0x225   : > { %v1801_v6 = vpop.f32.mrf.mxu0 }
 0x226   : > { %2230 = vst [vmem:[%s4028_s30 + $0xb0] sm:$0xff] %v1716_v55  ;;  %v1802_v39 = vadd.f32 %v1801_v6, %v1757_v37  ;;  %v1845_v48 = vpop.f32.mrf.mxu1 }
 0x228   : > { %v4186_v26 = vadd.f32 %v1845_v48, %v1802_v39  ;;  %1981 = vmatmul.bf16.gmra.mxu0 %v4442_v25  ;;  %2039 = vmatmul.bf16.vlgmr.msrb.gmra.mxu2 %v4443_v43 }
 0x229   : > { %2025 = vmatmul.bf16.gmra.mxu1 %v3600_v58  ;;  %2083 = vmatmul.bf16.vlgmr.msrb.gmra.mxu3 %v4444_v17 }
 0x22b   : > { %v1718_v4 = vpop.f32.mrf.mxu2 }
 0x22c   : > { %v1719_v56 = vadd.f32 %v1718_v4, %v4000_v21  ;;  %v1762_v14 = vpop.f32.mrf.mxu3  ;;  %v4446_v21 = vld [vmem:[#allocation28_spill] sm:$0xff] }
 0x22d   : > { %v1803_v3 = vpop.f32.mrf.mxu0 }
 0x22e   : > { %2232 = vst [vmem:[%s4028_s30 + $0xc0] sm:$0xff] %v1719_v56  ;;  %v1804_v22 = vadd.f32 %v1803_v3, %v1759_v60  ;;  %v1847_v53 = vpop.f32.mrf.mxu1 }
 0x230   : > { %v4194_v40 = vadd.f32 %v1847_v53, %v1804_v22 }
 0x233   : > { %v1720_v36 = vpop.f32.mrf.mxu2 }
 0x234   : > { %v1721_v1 = vadd.f32 %v1720_v36, %v4032_v24  ;;  %v1764_v59 = vpop.f32.mrf.mxu3  ;;  %v4453_v36 = vld [vmem:[#allocation36_spill] sm:$0xff] }
 0x235   : > { %v1806_v61 = vpop.f32.mrf.mxu0 }
 0x236   : > { %2234 = vst [vmem:[%s4028_s30 + $0xd0] sm:$0xff] %v1721_v1  ;;  %v1807_v52 = vadd.f32 %v1806_v61, %v1762_v14  ;;  %v1850_v58 = vpop.f32.mrf.mxu1 }
 0x238   : > { %v4198_v19 = vadd.f32 %v1850_v58, %v1807_v52  ;;  %2044 = vmatmul.bf16.gmra.mxu2 %v4445_v16  ;;  %2127 = vmatmul.bf16.vlgmr.msrb.gmra.mxu0 %v4446_v21 }
 0x239   : > { %2088 = vmatmul.bf16.gmra.mxu3 %v4447_v9  ;;  %2311 = vmatmul.msk.bf16.vlgmr.msrb.gmra.mxu1 %vm1217_vm8, %v3657_v50  ;;  %v4448_v50 = vld [vmem:[#allocation31_spill] sm:$0xff] }
 0x23b   : > { %v1864_v18 = vpop.f32.mrf.mxu2 }
 0x23c   : > { %v1865_v0 = vadd.f32 %v1864_v18, %v4042_v34  ;;  %v1908_v24 = vpop.f32.mrf.mxu3  ;;  %v4449_v34 = vld [vmem:[#allocation32_spill] sm:$0xff] }
 0x23d   : > { %v1808_v33 = vpop.f32.mrf.mxu0 }
 0x23e   : > { %v1909_v29 = vadd.f32 %v1908_v24, %v1865_v0  ;;  %v1809_v45 = vadd.f32 %v1808_v33, %v1764_v59  ;;  %v1852_v57 = vpop.f32.mrf.mxu1 }
 0x240   : > { %v4206_v63 = vadd.f32 %v1852_v57, %v1809_v45 }
 0x243   : > { %v1866_v2 = vpop.f32.mrf.mxu2 }
 0x244   : > { %v1867_v35 = vadd.f32 %v1866_v2, %v4062_v30  ;;  %v1910_v5 = vpop.f32.mrf.mxu3  ;;  %v4456_v2 = vld [vmem:[#allocation40_spill] sm:$0xff] }
 0x245   : > { %v1952_v51 = vpop.f32.mrf.mxu0 }
 0x246   : > { %v1911_v15 = vadd.f32 %v1910_v5, %v1867_v35  ;;  %v1953_v37 = vadd.f32 %v1952_v51, %v1909_v29  ;;  %v1996_v8 = vpop.f32.mrf.mxu1 }
 0x248   : > { %v4209_v44 = vadd.f32 %v1996_v8, %v1953_v37  ;;  %2049 = vmatmul.bf16.gmra.mxu2 %v4448_v50  ;;  %2132 = vmatmul.bf16.gmra.mxu0 %v4449_v34 }
 0x249   : > { %2093 = vmatmul.bf16.gmra.mxu3 %v4450_v23  ;;  %2312 = vmatmul.msk.bf16.gmra.mxu1 %vm1217_vm8, %v3700_v28  ;;  %v4451_v28 = vld [vmem:[#allocation34_spill] sm:$0xff] }
 0x24b   : > { %v1869_v10 = vpop.f32.mrf.mxu2 }
 0x24c   : > { %v1870_v55 = vadd.f32 %v1869_v10, %v4084_v62  ;;  %v1913_v30 = vpop.f32.mrf.mxu3  ;;  %v4452_v62 = vld [vmem:[#allocation35_spill] sm:$0xff] }
 0x24d   : > { %v1954_v60 = vpop.f32.mrf.mxu0 }
 0x24e   : > { %v1914_v6 = vadd.f32 %v1913_v30, %v1870_v55  ;;  %v1955_v39 = vadd.f32 %v1954_v60, %v1911_v15  ;;  %v1998_v48 = vpop.f32.mrf.mxu1 }
 0x250   : > { %v4217_v25 = vadd.f32 %v1998_v48, %v1955_v39 }
 0x253   : > { %v1871_v43 = vpop.f32.mrf.mxu2 }
 0x254   : > { %v1872_v17 = vadd.f32 %v1871_v43, %v4098_v7  ;;  %v1915_v4 = vpop.f32.mrf.mxu3 }
 0x255   : > { %v1957_v56 = vpop.f32.mrf.mxu0 }
 0x256   : > { %v1916_v14 = vadd.f32 %v1915_v4, %v1872_v17  ;;  %v1958_v3 = vadd.f32 %v1957_v56, %v1914_v6  ;;  %v2001_v22 = vpop.f32.mrf.mxu1 }
 0x258   : > { %v4220_v53 = vadd.f32 %v2001_v22, %v1958_v3  ;;  %2054 = vmatmul.bf16.gmra.mxu2 %v4451_v28  ;;  %2137 = vmatmul.bf16.gmra.mxu0 %v4452_v62 }
 0x259   : > { %2098 = vmatmul.bf16.gmra.mxu3 %v4453_v36  ;;  %2313 = vmatmul.msk.bf16.gmra.mxu1 %vm1217_vm8, %v3747_v20  ;;  %v4454_v20 = vld [vmem:[#allocation37_spill] sm:$0xff] }
 0x25b   : > { %v1874_v1 = vpop.f32.mrf.mxu2 }
 0x25c   : > { %v1875_v59 = vadd.f32 %v1874_v1, %v4120_v11  ;;  %v1918_v7 = vpop.f32.mrf.mxu3  ;;  %v4455_v11 = vld [vmem:[#allocation38_spill] sm:$0xff] }
 0x25d   : > { %v1959_v61 = vpop.f32.mrf.mxu0 }
 0x25e   : > { %v1919_v52 = vadd.f32 %v1918_v7, %v1875_v59  ;;  %v1960_v58 = vadd.f32 %v1959_v61, %v1916_v14  ;;  %v2003_v16 = vpop.f32.mrf.mxu1 }
 0x260   : > { %v4228_v21 = vadd.f32 %v2003_v16, %v1960_v58 }
 0x263   : > { %v1876_v9 = vpop.f32.mrf.mxu2 }
 0x264   : > { %v1877_v18 = vadd.f32 %v1876_v9, %v4134_v38  ;;  %v1920_v0 = vpop.f32.mrf.mxu3 }
 0x265   : > { %v1962_v24 = vpop.f32.mrf.mxu0 }
 0x266   : > { %v1921_v33 = vadd.f32 %v1920_v0, %v1877_v18  ;;  %v1963_v29 = vadd.f32 %v1962_v24, %v1919_v52  ;;  %v2006_v45 = vpop.f32.mrf.mxu1 }
 0x268   : > { %v4231_v57 = vadd.f32 %v2006_v45, %v1963_v29  ;;  %2059 = vmatmul.bf16.gmra.mxu2 %v4454_v20  ;;  %2142 = vmatmul.bf16.gmra.mxu0 %v4455_v11 }
 0x269   : > { %2103 = vmatmul.bf16.gmra.mxu3 %v4456_v2  ;;  %2314 = vmatmul.msk.bf16.gmra.mxu1 %vm1217_vm8, %v3794_v49  ;;  %v4457_v49 = vld [vmem:[#allocation41_spill] sm:$0xff] }
 0x26b   : > { %v1879_v35 = vpop.f32.mrf.mxu2 }
 0x26c   : > { %v1880_v5 = vadd.f32 %v1879_v35, %v4156_v46  ;;  %v1923_v38 = vpop.f32.mrf.mxu3  ;;  %v4458_v46 = vld [vmem:[#allocation42_spill] sm:$0xff] }
 0x26d   : > { %v1964_v51 = vpop.f32.mrf.mxu0 }
 0x26e   : > { %v1924_v15 = vadd.f32 %v1923_v38, %v1880_v5  ;;  %v1965_v37 = vadd.f32 %v1964_v51, %v1921_v33  ;;  %v2008_v8 = vpop.f32.mrf.mxu1 }
 0x270   : > { %v4239_v50 = vadd.f32 %v2008_v8, %v1965_v37 }
 0x273   : > { %v1881_v34 = vpop.f32.mrf.mxu2 }
 0x274   : > { %v1882_v23 = vadd.f32 %v1881_v34, %v4170_v27  ;;  %v1925_v10 = vpop.f32.mrf.mxu3 }
 0x275   : > { %v1967_v55 = vpop.f32.mrf.mxu0 }
 0x276   : > { %v1926_v30 = vadd.f32 %v1925_v10, %v1882_v23  ;;  %v1968_v60 = vadd.f32 %v1967_v55, %v1924_v15  ;;  %v2011_v6 = vpop.f32.mrf.mxu1 }
 0x278   : > { %v4242_v39 = vadd.f32 %v2011_v6, %v1968_v60  ;;  %2064 = vmatmul.bf16.gmra.mxu2 %v4457_v49  ;;  %2147 = vmatmul.bf16.gmra.mxu0 %v4458_v46 }
 0x279   : > { %2108 = vmatmul.bf16.gmra.mxu3 %v3602_v12  ;;  %2315 = vmatmul.msk.bf16.gmra.mxu1 %vm1217_vm8, %v3841_v32  ;;  %v4459_v32 = vld [vmem:[#allocation43_spill] sm:$0xff] }
 0x27b   : > { %v1884_v48 = vpop.f32.mrf.mxu2 }
 0x27c   : > { %v1885_v43 = vadd.f32 %v1884_v48, %v4174_v41  ;;  %v1928_v27 = vpop.f32.mrf.mxu3  ;;  %v4460_v41 = vld [vmem:[#allocation44_spill] sm:$0xff] }
 0x27d   : > { %v1969_v17 = vpop.f32.mrf.mxu0 }
 0x27e   : > { %v1929_v4 = vadd.f32 %v1928_v27, %v1885_v43  ;;  %v1970_v56 = vadd.f32 %v1969_v17, %v1926_v30  ;;  %v2013_v14 = vpop.f32.mrf.mxu1 }
 0x280   : > { %v4250_v3 = vadd.f32 %v2013_v14, %v1970_v56 }
 0x283   : > { %v1886_v22 = vpop.f32.mrf.mxu2 }
 0x284   : > { %v1887_v28 = vadd.f32 %v1886_v22, %v4182_v42  ;;  %v1930_v62 = vpop.f32.mrf.mxu3 }
 0x285   : > { %v1972_v36 = vpop.f32.mrf.mxu0 }
 0x286   : > { %v1931_v1 = vadd.f32 %v1930_v62, %v1887_v28  ;;  %v1973_v12 = vadd.f32 %v1972_v36, %v1929_v4  ;;  %v2016_v59 = vpop.f32.mrf.mxu1 }
 0x288   : > { %v4253_v7 = vadd.f32 %v2016_v59, %v1973_v12  ;;  %2069 = vmatmul.bf16.gmra.mxu2 %v4459_v32  ;;  %2152 = vmatmul.bf16.gmra.mxu0 %v4460_v41 }
 0x289   : > { %2113 = vmatmul.bf16.gmra.mxu3 %v3655_v47  ;;  %2316 = vmatmul.msk.bf16.gmra.mxu1 %vm1217_vm8, %v3888_v31 }
 0x28b   : > { %v1889_v61 = vpop.f32.mrf.mxu2 }
 0x28c   : > { %v1890_v52 = vadd.f32 %v1889_v61, %v4186_v26  ;;  %v1933_v42 = vpop.f32.mrf.mxu3 }
 0x28d   : > { %v1974_v58 = vpop.f32.mrf.mxu0 }
 0x28e   : > { %v1934_v16 = vadd.f32 %v1933_v42, %v1890_v52  ;;  %v1975_v9 = vadd.f32 %v1974_v58, %v1931_v1  ;;  %v2018_v18 = vpop.f32.mrf.mxu1 }
 0x290   : > { %v4261_v0 = vadd.f32 %v2018_v18, %v1975_v9 }
 0x293   : > { %v1891_v24 = vpop.f32.mrf.mxu2 }
 0x294   : > { %v1892_v33 = vadd.f32 %v1891_v24, %v4194_v40  ;;  %v1935_v29 = vpop.f32.mrf.mxu3 }
 0x295   : > { %v1977_v45 = vpop.f32.mrf.mxu0 }
 0x296   : > { %v1936_v20 = vadd.f32 %v1935_v29, %v1892_v33  ;;  %v1978_v47 = vadd.f32 %v1977_v45, %v1934_v16  ;;  %v2021_v11 = vpop.f32.mrf.mxu1 }
 0x298   : > { %v4264_v2 = vadd.f32 %v2021_v11, %v1978_v47  ;;  %2157 = vmatmul.bf16.gmra.mxu0 %v3659_v13 }
 0x299   : > { %2317 = vmatmul.msk.bf16.gmra.mxu1 %vm1217_vm8, %v3929_v54 }
 0x29b   : > { %v1894_v31 = vpop.f32.mrf.mxu2 }
 0x29c   : > { %v1895_v26 = vadd.f32 %v1894_v31, %v4198_v19  ;;  %v1938_v35 = vpop.f32.mrf.mxu3 }
 0x29d   : > { %v1979_v5 = vpop.f32.mrf.mxu0 }
 0x29e   : > { %v1939_v38 = vadd.f32 %v1938_v35, %v1895_v26  ;;  %v1980_v51 = vadd.f32 %v1979_v5, %v1936_v20  ;;  %v2023_v40 = vpop.f32.mrf.mxu1 }
 0x2a0   : > { %v4270_v15 = vadd.f32 %v2023_v40, %v1980_v51 }
 0x2a3   : > { %v1896_v37 = vpop.f32.mrf.mxu2 }
 0x2a4   : > { %v1897_v8 = vadd.f32 %v1896_v37, %v4206_v63  ;;  %v1940_v34 = vpop.f32.mrf.mxu3 }
 0x2a5   : > { %v1982_v23 = vpop.f32.mrf.mxu0 }
 0x2a6   : > { %v1941_v10 = vadd.f32 %v1940_v34, %v1897_v8  ;;  %v1983_v13 = vadd.f32 %v1982_v23, %v1939_v38  ;;  %v2026_v55 = vpop.f32.mrf.mxu1 }
 0x2a8   : > { %v4273_v30 = vadd.f32 %v2026_v55, %v1983_v13 }
 0x2ab   : > { %v2040_v54 = vpop.f32.mrf.mxu2 }
 0x2ac   : > { %v2084_v19 = vpop.f32.mrf.mxu3  ;;  %v2041_v46 = vadd.f32 %v2040_v54, %v4209_v44 }
 0x2ad   : > { %v1984_v60 = vpop.f32.mrf.mxu0 }
 0x2ae   : > { %v1985_v6 = vadd.f32 %v1984_v60, %v1941_v10  ;;  %v2028_v49 = vpop.f32.mrf.mxu1  ;;  %v2085_v27 = vadd.f32 %v2084_v19, %v2041_v46 }
 0x2b0   : > { %v4276_v48 = vadd.f32 %v2028_v49, %v1985_v6 }
 0x2b3   : > { %v2042_v43 = vpop.f32.mrf.mxu2 }
 0x2b4   : > { %v2086_v63 = vpop.f32.mrf.mxu3  ;;  %v2043_v14 = vadd.f32 %v2042_v43, %v4217_v25 }
 0x2b5   : > { %v2128_v17 = vpop.f32.mrf.mxu0 }
 0x2b6   : > { %v2129_v4 = vadd.f32 %v2128_v17, %v2085_v27  ;;  %v2172_v56 = vpop.f32.mrf.mxu1  ;;  %v2087_v62 = vadd.f32 %v2086_v63, %v2043_v14 }
 0x2b8   : > { %v2173_v22 = vadd.f32 %v2172_v56, %v2129_v4 }
 0x2ba   : > { %2209 = vst.msk [vmem:[%s4028_s30 + $0x8] sm:$0xff] %vm2208_vm9, %v2173_v22 }
 0x2bb   : > { %v2045_v28 = vpop.f32.mrf.mxu2 }
 0x2bc   : > { %v2089_v36 = vpop.f32.mrf.mxu3  ;;  %v2046_v59 = vadd.f32 %v2045_v28, %v4220_v53 }
 0x2bd   : > { %v2130_v44 = vpop.f32.mrf.mxu0 }
 0x2be   : > { %v2131_v1 = vadd.f32 %v2130_v44, %v2087_v62  ;;  %v2174_v12 = vpop.f32.mrf.mxu1  ;;  %v2090_v61 = vadd.f32 %v2089_v36, %v2046_v59 }
 0x2c0   : > { %v2175_v32 = vadd.f32 %v2174_v12, %v2131_v1 }
 0x2c2   : > { %2211 = vst.msk [vmem:[%s4028_s30 + $0x18] sm:$0xff] %vm2208_vm9, %v2175_v32 }
 0x2c3   : > { %v2047_v41 = vpop.f32.mrf.mxu2 }
 0x2c4   : > { %v2091_v52 = vpop.f32.mrf.mxu3  ;;  %v2048_v16 = vadd.f32 %v2047_v41, %v4228_v21 }
 0x2c5   : > { %v2133_v25 = vpop.f32.mrf.mxu0 }
 0x2c6   : > { %v2134_v42 = vadd.f32 %v2133_v25, %v2090_v61  ;;  %v2177_v58 = vpop.f32.mrf.mxu1  ;;  %v2092_v24 = vadd.f32 %v2091_v52, %v2048_v16 }
 0x2c8   : > { %v2178_v9 = vadd.f32 %v2177_v58, %v2134_v42 }
 0x2ca   : > { %2213 = vst.msk [vmem:[%s4028_s30 + $0x28] sm:$0xff] %vm2208_vm9, %v2178_v9 }
 0x2cb   : > { %v2050_v18 = vpop.f32.mrf.mxu2 }
 0x2cc   : > { %v2094_v33 = vpop.f32.mrf.mxu3  ;;  %v2051_v20 = vadd.f32 %v2050_v18, %v4231_v57 }
 0x2cd   : > { %v2135_v53 = vpop.f32.mrf.mxu0 }
 0x2ce   : > { %v2136_v29 = vadd.f32 %v2135_v53, %v2092_v24  ;;  %v2179_v45 = vpop.f32.mrf.mxu1  ;;  %v2095_v31 = vadd.f32 %v2094_v33, %v2051_v20 }
 0x2d0   : > { %v2180_v47 = vadd.f32 %v2179_v45, %v2136_v29 }
 0x2d2   : > { %2215 = vst.msk [vmem:[%s4028_s30 + $0x38] sm:$0xff] %vm2208_vm9, %v2180_v47 }
 0x2d3   : > { %v2052_v11 = vpop.f32.mrf.mxu2 }
 0x2d4   : > { %v2096_v26 = vpop.f32.mrf.mxu3  ;;  %v2053_v38 = vadd.f32 %v2052_v11, %v4239_v50 }
 0x2d5   : > { %v2138_v21 = vpop.f32.mrf.mxu0 }
 0x2d6   : > { %v2139_v35 = vadd.f32 %v2138_v21, %v2095_v31  ;;  %v2182_v5 = vpop.f32.mrf.mxu1  ;;  %v2097_v37 = vadd.f32 %v2096_v26, %v2053_v38 }
 0x2d8   : > { %v2183_v51 = vadd.f32 %v2182_v5, %v2139_v35 }
 0x2da   : > { %2217 = vst.msk [vmem:[%s4028_s30 + $0x48] sm:$0xff] %vm2208_vm9, %v2183_v51 }
 0x2db   : > { %v2055_v40 = vpop.f32.mrf.mxu2 }
 0x2dc   : > { %v2099_v8 = vpop.f32.mrf.mxu3  ;;  %v2056_v10 = vadd.f32 %v2055_v40, %v4242_v39 }
 0x2dd   : > { %v2140_v57 = vpop.f32.mrf.mxu0 }
 0x2de   : > { %v2141_v34 = vadd.f32 %v2140_v57, %v2097_v37  ;;  %v2184_v23 = vpop.f32.mrf.mxu1  ;;  %v2100_v54 = vadd.f32 %v2099_v8, %v2056_v10 }
 0x2e0   : > { %v2185_v13 = vadd.f32 %v2184_v23, %v2141_v34 }
 0x2e2   : > { %2219 = vst.msk [vmem:[%s4028_s30 + $0x58] sm:$0xff] %vm2208_vm9, %v2185_v13 }
 0x2e3   : > { %v2057_v55 = vpop.f32.mrf.mxu2 }
 0x2e4   : > { %v2101_v19 = vpop.f32.mrf.mxu3  ;;  %v2058_v49 = vadd.f32 %v2057_v55, %v4250_v3 }
 0x2e5   : > { %v2143_v50 = vpop.f32.mrf.mxu0 }
 0x2e6   : > { %v2144_v60 = vadd.f32 %v2143_v50, %v2100_v54  ;;  %v2187_v6 = vpop.f32.mrf.mxu1  ;;  %v2102_v27 = vadd.f32 %v2101_v19, %v2058_v49 }
 0x2e8   : > { %v2188_v46 = vadd.f32 %v2187_v6, %v2144_v60 }
 0x2ea   : > { %2221 = vst.msk [vmem:[%s4028_s30 + $0x68] sm:$0xff] %vm2208_vm9, %v2188_v46 }
 0x2eb   : > { %v2060_v43 = vpop.f32.mrf.mxu2 }
 0x2ec   : > { %v2104_v63 = vpop.f32.mrf.mxu3  ;;  %v2061_v56 = vadd.f32 %v2060_v43, %v4253_v7 }
 0x2ed   : > { %v2145_v39 = vpop.f32.mrf.mxu0 }
 0x2ee   : > { %v2146_v17 = vadd.f32 %v2145_v39, %v2102_v27  ;;  %v2189_v4 = vpop.f32.mrf.mxu1  ;;  %v2105_v28 = vadd.f32 %v2104_v63, %v2061_v56 }
 0x2f0   : > { %v2190_v14 = vadd.f32 %v2189_v4, %v2146_v17 }
 0x2f2   : > { %2223 = vst.msk [vmem:[%s4028_s30 + $0x78] sm:$0xff] %vm2208_vm9, %v2190_v14 }
 0x2f3   : > { %v2062_v22 = vpop.f32.mrf.mxu2 }
 0x2f4   : > { %v2106_v62 = vpop.f32.mrf.mxu3  ;;  %v2063_v1 = vadd.f32 %v2062_v22, %v4261_v0 }
 0x2f5   : > { %v2148_v3 = vpop.f32.mrf.mxu0 }
 0x2f6   : > { %v2149_v36 = vadd.f32 %v2148_v3, %v2105_v28  ;;  %v2192_v44 = vpop.f32.mrf.mxu1  ;;  %v2107_v32 = vadd.f32 %v2106_v62, %v2063_v1 }
 0x2f8   : > { %v2193_v12 = vadd.f32 %v2192_v44, %v2149_v36 }
 0x2fa   : > { %2225 = vst.msk [vmem:[%s4028_s30 + $0x88] sm:$0xff] %vm2208_vm9, %v2193_v12 }
 0x2fb   : > { %v2065_v59 = vpop.f32.mrf.mxu2 }
 0x2fc   : > { %v2109_v41 = vpop.f32.mrf.mxu3  ;;  %v2066_v25 = vadd.f32 %v2065_v59, %v4264_v2 }
 0x2fd   : > { %v2150_v7 = vpop.f32.mrf.mxu0 }
 0x2fe   : > { %v2151_v61 = vadd.f32 %v2150_v7, %v2107_v32  ;;  %v2194_v52 = vpop.f32.mrf.mxu1  ;;  %v2110_v16 = vadd.f32 %v2109_v41, %v2066_v25 }
 0x300   : > { %v2195_v42 = vadd.f32 %v2194_v52, %v2151_v61 }
 0x302   : > { %2227 = vst.msk [vmem:[%s4028_s30 + $0x98] sm:$0xff] %vm2208_vm9, %v2195_v42 }
 0x303   : > { %v2067_v58 = vpop.f32.mrf.mxu2 }
 0x304   : > { %v2111_v24 = vpop.f32.mrf.mxu3  ;;  %v2068_v33 = vadd.f32 %v2067_v58, %v4270_v15 }
 0x305   : > { %v2153_v9 = vpop.f32.mrf.mxu0 }
 0x306   : > { %v2154_v0 = vadd.f32 %v2153_v9, %v2110_v16  ;;  %v2197_v18 = vpop.f32.mrf.mxu1  ;;  %v2112_v45 = vadd.f32 %v2111_v24, %v2068_v33 }
 0x308   : > { %v2198_v53 = vadd.f32 %v2197_v18, %v2154_v0 }
 0x30a   : > { %2229 = vst.msk [vmem:[%s4028_s30 + $0xa8] sm:$0xff] %vm2208_vm9, %v2198_v53 }
 0x30b   : > { %v2070_v29 = vpop.f32.mrf.mxu2 }
 0x30c   : > { %v2071_v11 = vadd.f32 %v2070_v29, %v4273_v30  ;;  %v2114_v26 = vpop.f32.mrf.mxu3 }
 0x30d   : > { %v2155_v20 = vpop.f32.mrf.mxu0 }
 0x30e   : > { %v2156_v2 = vadd.f32 %v2155_v20, %v2112_v45  ;;  %v2199_v47 = vpop.f32.mrf.mxu1  ;;  %v2115_v21 = vadd.f32 %v2114_v26, %v2071_v11 }
 0x310   : > { %v2200_v31 = vadd.f32 %v2199_v47, %v2156_v2 }
 0x312   : > { %2231 = vst.msk [vmem:[%s4028_s30 + $0xb8] sm:$0xff] %vm2208_vm9, %v2200_v31 }
 0x313   : > { %v2072_v35 = vpop.f32.mrf.mxu2 }
 0x314   : > { %v2073_v51 = vadd.f32 %v2072_v35, %v4276_v48  ;;  %v2116_v37 = vpop.f32.mrf.mxu3 }
 0x315   : > { %v2158_v5 = vpop.f32.mrf.mxu0 }
 0x316   : > { %v2159_v15 = vadd.f32 %v2158_v5, %v2115_v21  ;;  %v2202_v38 = vpop.f32.mrf.mxu1  ;;  %v2117_v8 = vadd.f32 %v2116_v37, %v2073_v51 }
 0x318   : > { %v2203_v40 = vadd.f32 %v2202_v38, %v2159_v15 }
 0x31a   : > { %2233 = vst.msk [vmem:[%s4028_s30 + $0xc8] sm:$0xff] %vm2208_vm9, %v2203_v40 }
 0x31d   : > { %v2160_v57 = vpop.f32.mrf.mxu0 }
 0x31e   : > { %v2161_v34 = vadd.f32 %v2160_v57, %v2117_v8  ;;  %v2204_v30 = vpop.f32.mrf.mxu1 }
 0x320   : > { %v2205_v23 = vadd.f32 %v2204_v30, %v2161_v34 }
 0x322   : > { %2235 = vst.msk [vmem:[%s4028_s30 + $0xd8] sm:$0xff] %vm2208_vm9, %v2205_v23 }
 0x323 PF: > { %s13_s12 = sadd.s32 1, %s2360_s12  }
 0x324   : > { %p10_p4 = scmp.ge.s32.totalorder %s13_s12, 4  }
 0x326   :  { %12 = sbr.rel (!%p10_p4) target bundleno = 1 (0x1), region = 62 }

</bundles_post_ra>
